<compile_context>
chip_gen: v7x
topology: tpu7x:2x2x1
jax: 0.10.0
libtpu: 0.0.40
codegen_flags: <defaults>
</compile_context>

<pallas_src>
import functools

import jax
import jax.numpy as jnp
from jax import lax
from jax.experimental import pallas as pl
from jax.experimental.pallas import tpu as pltpu


def _round_up(x, m):
    return ((x + m - 1) // m) * m


# ----------------------------------------------------------------------------
# Fused kernel: all GRU layers + classifier, single invocation (no grid).
# Gate order follows PyTorch nn.GRU: [r | z | n], each gate padded to Hp lanes.
# ref order: x, (w_ih, w_hh, b_fused, b_hh_n) * n_layer, w_cls, b_cls,
#            out, gx_scratch, seq_scratch
# ----------------------------------------------------------------------------
def _make_fused_kernel(n_layer, T, Bp, Hp, mm_dtype, unroll):

    def kernel(*refs):
        x_ref = refs[0]
        layer_refs = refs[1:1 + 4 * n_layer]
        wcls_ref = refs[1 + 4 * n_layer]
        bcls_ref = refs[2 + 4 * n_layer]
        out_ref = refs[3 + 4 * n_layer]
        gx_ref = refs[4 + 4 * n_layer]      # (T*Bp, 3Hp) hoisted input projections (f32)
        seq_ref = refs[5 + 4 * n_layer]     # (T*Bp, Hp)  inter-layer hidden sequence (f32)

        cur_in = x_ref[...]                  # (T*Bp, D_layer), already mm_dtype for layer 0
        h_last = None

        for layer in range(n_layer):
            wih_ref = layer_refs[4 * layer + 0]    # (Din, 3Hp) gate-lane-padded, mm_dtype
            whh_ref = layer_refs[4 * layer + 1]    # (Hp,  3Hp) mm_dtype
            bfused_ref = layer_refs[4 * layer + 2] # (1,   3Hp) f32: b_ih + [b_hh_r, b_hh_z, 0]
            bhhn_ref = layer_refs[4 * layer + 3]   # (1,   Hp)  f32: b_hh_n
            is_last = layer == n_layer - 1

            # Hoisted input projection for ALL timesteps: one big MXU matmul,
            # fused (b_ih + b_hh_{r,z}) bias folded in once, not per step.
            gx_ref[...] = (
                jnp.dot(cur_in.astype(mm_dtype), wih_ref[...],
                        preferred_element_type=jnp.float32)
                + bfused_ref[...]
            )

            # Hoist the (Bp, Hp) b_hh_n broadcast out of the serial time loop.
            bhh_n = jnp.broadcast_to(bhhn_ref[...], (Bp, Hp))

            def step(t, h_prev, whh_ref=whh_ref, bhh_n=bhh_n,
                     write_seq=not is_last):
                row = pl.multiple_of(t * Bp, Bp)
                gx_t = gx_ref[pl.ds(row, Bp), :]                      # (Bp, 3Hp) f32
                gh = jnp.dot(h_prev.astype(mm_dtype), whh_ref[...],
                             preferred_element_type=jnp.float32)      # (Bp, 3Hp) f32
                # 128-aligned, 128-wide gate slices (lane-dense); gate math in f32.
                r = jax.nn.sigmoid(gx_t[:, 0 * Hp:1 * Hp] + gh[:, 0 * Hp:1 * Hp])
                z = jax.nn.sigmoid(gx_t[:, 1 * Hp:2 * Hp] + gh[:, 1 * Hp:2 * Hp])
                n = jnp.tanh(gx_t[:, 2 * Hp:3 * Hp]
                             + r * (gh[:, 2 * Hp:3 * Hp] + bhh_n))
                h_new = (1.0 - z) * n + z * h_prev
                if write_seq:
                    # Only non-final layers need the full sequence (next layer's
                    # input); the final layer only feeds h_last to the classifier.
                    seq_ref[pl.ds(row, Bp), :] = h_new
                return h_new

            h_last = lax.fori_loop(0, T, step,
                                   jnp.zeros((Bp, Hp), jnp.float32),
                                   unroll=unroll)
            if not is_last:
                cur_in = seq_ref[...]                                  # (T*Bp, Hp) f32

        # Classifier: out = h_last @ W_cls^T + b  (padded to Cp lanes).
        out_ref[...] = (
            jnp.dot(h_last.astype(mm_dtype), wcls_ref[...],
                    preferred_element_type=jnp.float32)
            + bcls_ref[...]
        ).astype(out_ref.dtype)

    return kernel


# ----------------------------------------------------------------------------
# One-time parameter preparation: transpose, split gates, pad each gate to Hp
# lanes, fold b_hh_{r,z} into the hoisted bias, pad classifier to Cp lanes,
# cast matmul operands to mm_dtype. Done once, outside the per-forward path.
# ----------------------------------------------------------------------------
def prepare_params(params, in_dim, hidden_dim, n_class,
                   matmul_dtype=jnp.bfloat16):
    H = hidden_dim
    Hp = _round_up(H, 128)
    Cp = _round_up(n_class, 128)

    def pad_gate_w(w_t, rows_p):
        # w_t: (d_in, 3H) -> (rows_p, 3Hp) with each gate block lane-padded.
        d = w_t.shape[0]
        gates = [w_t[:, g * H:(g + 1) * H] for g in range(3)]
        gates = [jnp.pad(g_, ((0, rows_p - d), (0, Hp - H))) for g_ in gates]
        return jnp.concatenate(gates, axis=1).astype(matmul_dtype)

    def pad_gate_b(b):
        # (3H,) -> (1, 3Hp), pad lanes exactly zero (padding invariant).
        gates = [b[g * H:(g + 1) * H] for g in range(3)]
        gates = [jnp.pad(g_, (0, Hp - H)) for g_ in gates]
        return jnp.concatenate(gates).reshape(1, 3 * Hp).astype(jnp.float32)

    flat = []
    for li, layer in enumerate(params["gru"]):
        rows_p = in_dim if li == 0 else Hp
        flat.append(pad_gate_w(layer["w_ih"].T, rows_p))   # (Din, 3Hp)
        flat.append(pad_gate_w(layer["w_hh"].T, Hp))       # (Hp,  3Hp)
        # Fused bias: b_ih + [b_hh_r, b_hh_z, 0]; b_hh_n must stay inside r*(...).
        b_hh = layer["b_hh"]
        b_hh_rz0 = jnp.concatenate([b_hh[:2 * H], jnp.zeros((H,), jnp.float32)])
        flat.append(pad_gate_b(layer["b_ih"] + b_hh_rz0))  # (1, 3Hp)
        flat.append(jnp.pad(b_hh[2 * H:3 * H], (0, Hp - H))
                    .reshape(1, Hp).astype(jnp.float32))   # (1, Hp) b_hh_n

    flat.append(jnp.pad(params["cls_w"].T,
                        ((0, Hp - H), (0, Cp - n_class))).astype(matmul_dtype))
    flat.append(jnp.pad(params["cls_b"], (0, Cp - n_class))
                .reshape(1, Cp).astype(jnp.float32))

    return {"flat": flat, "n_layer": len(params["gru"]), "Hp": Hp, "Cp": Cp,
            "n_class": n_class, "hidden_dim": H, "in_dim": in_dim,
            "matmul_dtype": matmul_dtype}


# ----------------------------------------------------------------------------
# Forward wrapper (matches PyTorch batch_first module: x is (B, T, in_dim)).
# ----------------------------------------------------------------------------
def gru_forward(x_btd, prepped):
    B, T, D = x_btd.shape
    n_layer = prepped["n_layer"]
    Hp, Cp = prepped["Hp"], prepped["Cp"]
    mm_dtype = prepped["matmul_dtype"]
    Bp = _round_up(B, 8)  # full sublane group; keep whole batch in one matmul

    # batch_first -> time-major, pad batch to Bp, flatten to (T*Bp, D).
    # (Single fused XLA copy; fold into the input DMA at large T*D — see TODO.)
    x_tbd = jnp.transpose(x_btd, (1, 0, 2))
    x_pad = jnp.pad(x_tbd, ((0, 0), (0, Bp - B), (0, 0)))
    x_flat = x_pad.reshape(T * Bp, D).astype(mm_dtype)

    # Bounded partial unroll: full for small T, unroll=8 otherwise.
    unroll = T if T <= 16 else 8

    # Explicit scoped-VMEM budget (defaults: 16 MiB v5e / 32 MiB v6e,v7x).
    itemsize = jnp.dtype(mm_dtype).itemsize
    gx_bytes = T * Bp * 3 * Hp * 4
    seq_bytes = T * Bp * Hp * 4
    x_bytes = T * Bp * D * itemsize
    w_bytes = sum(int(a.size) * a.dtype.itemsize for a in prepped["flat"])
    out_bytes = Bp * Cp * 4
    needed = x_bytes + w_bytes + gx_bytes + seq_bytes + out_bytes
    vmem_limit = max(min(int(needed * 1.5) + (2 << 20), 64 << 20), 16 << 20)

    kernel = _make_fused_kernel(n_layer, T, Bp, Hp, mm_dtype, unroll)
    out_p = pl.pallas_call(
        kernel,
        out_shape=jax.ShapeDtypeStruct((Bp, Cp), jnp.float32),
        scratch_shapes=[
            pltpu.VMEM((T * Bp, 3 * Hp), jnp.float32),   # hoisted input projections
            pltpu.VMEM((T * Bp, Hp), jnp.float32),       # inter-layer hidden sequence
        ],
        compiler_params=pltpu.CompilerParams(vmem_limit_bytes=vmem_limit),
    )(x_flat, *prepped["flat"])
    return out_p[:B, :prepped["n_class"]]


# ----------------------------------------------------------------------------
# Pure-JAX reference (PyTorch nn.GRU semantics) for correctness check.
# ----------------------------------------------------------------------------
def gru_forward_ref(x_btd, params):
    B, T, _ = x_btd.shape
    seq = x_btd
    for layer in params["gru"]:
        H = layer["w_hh"].shape[1]
        h = jnp.zeros((B, H), jnp.float32)
        outs = []
        for t in range(T):
            x_t = seq[:, t, :]
            gx = x_t @ layer["w_ih"].T + layer["b_ih"]
            gh = h @ layer["w_hh"].T + layer["b_hh"]
            r = jax.nn.sigmoid(gx[:, 0 * H:1 * H] + gh[:, 0 * H:1 * H])
            z = jax.nn.sigmoid(gx[:, 1 * H:2 * H] + gh[:, 1 * H:2 * H])
            n = jnp.tanh(gx[:, 2 * H:3 * H] + r * gh[:, 2 * H:3 * H])
            h = (1.0 - z) * n + z * h
            outs.append(h)
        seq = jnp.stack(outs, axis=1)
    h_last = seq[:, -1, :]
    return h_last @ params["cls_w"].T + params["cls_b"]


def init_params(key, in_dim, hidden_dim, n_layer, n_class):
    """Deterministic synthetic init (PyTorch GRU default U(-1/sqrt(H), 1/sqrt(H)))."""
    params = {"gru": []}
    bound = 1.0 / jnp.sqrt(jnp.float32(hidden_dim))
    for layer in range(n_layer):
        d_in = in_dim if layer == 0 else hidden_dim
        key, k1, k2, k3, k4 = jax.random.split(key, 5)
        params["gru"].append({
            "w_ih": jax.random.uniform(k1, (3 * hidden_dim, d_in), jnp.float32, -bound, bound),
            "w_hh": jax.random.uniform(k2, (3 * hidden_dim, hidden_dim), jnp.float32, -bound, bound),
            "b_ih": jax.random.uniform(k3, (3 * hidden_dim,), jnp.float32, -bound, bound),
            "b_hh": jax.random.uniform(k4, (3 * hidden_dim,), jnp.float32, -bound, bound),
        })
    key, k5, k6 = jax.random.split(key, 3)
    cb = 1.0 / jnp.sqrt(jnp.float32(hidden_dim))
    params["cls_w"] = jax.random.uniform(k5, (n_class, hidden_dim), jnp.float32, -cb, cb)
    params["cls_b"] = jax.random.uniform(k6, (n_class,), jnp.float32, -cb, cb)
    return params


if __name__ == "__main__":
    B, T, IN_DIM, HIDDEN, N_LAYER, N_CLASS = 2, 8, 16, 32, 2, 8

    key = jax.random.PRNGKey(0)
    key, kx = jax.random.split(key)
    x = jax.random.normal(kx, (B, T, IN_DIM), jnp.float32)

    params = init_params(key, IN_DIM, HIDDEN, N_LAYER, N_CLASS)
    ref = gru_forward_ref(x, params)

    # f32 matmul path: exact semantics check vs. PyTorch-style reference.
    prepped_f32 = prepare_params(params, IN_DIM, HIDDEN, N_CLASS,
                                 matmul_dtype=jnp.float32)
    fwd_f32 = jax.jit(functools.partial(gru_forward, prepped=prepped_f32))
    out_f32 = jax.block_until_ready(fwd_f32(x))
    assert out_f32.shape == (B, N_CLASS)
    assert jnp.allclose(out_f32, ref, atol=1e-4, rtol=1e-4), \
        float(jnp.max(jnp.abs(out_f32 - ref)))

    # bf16 matmul-operand path (recommended for v6e/v7x MXUs): loose tolerance.
    prepped_bf16 = prepare_params(params, IN_DIM, HIDDEN, N_CLASS,
                                  matmul_dtype=jnp.bfloat16)
    fwd_bf16 = jax.jit(functools.partial(gru_forward, prepped=prepped_bf16))
    out_bf16 = jax.block_until_ready(fwd_bf16(x))
    assert jnp.allclose(out_bf16, ref, atol=1e-1, rtol=1e-1), \
        float(jnp.max(jnp.abs(out_bf16 - ref)))

    # 3-layer f32 sanity check (exercises repeated seq_ref reuse across layers).
    params3 = init_params(jax.random.PRNGKey(1), IN_DIM, HIDDEN, 3, N_CLASS)
    prepped3 = prepare_params(params3, IN_DIM, HIDDEN, N_CLASS,
                              matmul_dtype=jnp.float32)
    fwd3 = jax.jit(functools.partial(gru_forward, prepped=prepped3))
    out3 = jax.block_until_ready(fwd3(x))
    ref3 = gru_forward_ref(x, params3)
    assert jnp.allclose(out3, ref3, atol=1e-4, rtol=1e-4), \
        float(jnp.max(jnp.abs(out3 - ref3)))

    print("KERNEL_OK")
</pallas_src>

<mosaic_0001>
module attributes {stable_mosaic.version = 11 : i64} {
  func.func @kernel(%arg0: memref<64x16xf32, #tpu.memory_space<vmem>>, %arg1: memref<16x384xf32, #tpu.memory_space<vmem>>, %arg2: memref<128x384xf32, #tpu.memory_space<vmem>>, %arg3: memref<1x384xf32, #tpu.memory_space<vmem>>, %arg4: memref<1x128xf32, #tpu.memory_space<vmem>>, %arg5: memref<128x384xf32, #tpu.memory_space<vmem>>, %arg6: memref<128x384xf32, #tpu.memory_space<vmem>>, %arg7: memref<1x384xf32, #tpu.memory_space<vmem>>, %arg8: memref<1x128xf32, #tpu.memory_space<vmem>>, %arg9: memref<128x128xf32, #tpu.memory_space<vmem>>, %arg10: memref<1x128xf32, #tpu.memory_space<vmem>>, %arg11: memref<8x128xf32, #tpu.memory_space<vmem>>, %arg12: memref<64x384xf32, #tpu.memory_space<vmem>>, %arg13: memref<64x128xf32, #tpu.memory_space<vmem>>) attributes {dimension_semantics = [], scalar_prefetch = 0 : i64, scratch_operands = 2 : i64, tpu.core_type = #tpu.core_type<tc>} {
    %c0 = arith.constant 0 : index
    %c0_0 = arith.constant 0 : index
    %0 = vector.load %arg0[%c0, %c0_0] : memref<64x16xf32, #tpu.memory_space<vmem>>, vector<64x16xf32>
    %c0_1 = arith.constant 0 : index
    %c0_2 = arith.constant 0 : index
    %1 = vector.load %arg1[%c0_1, %c0_2] : memref<16x384xf32, #tpu.memory_space<vmem>>, vector<16x384xf32>
    %cst = arith.constant dense<0.000000e+00> : vector<64x384xf32>
    %2 = tpu.matmul %0, %1, %cst {dimension_numbers = #tpu.dot_dimension_numbers<[1], [0], [0], [1], [0, 0, 1, 1], [], []>} : vector<64x16xf32>, vector<16x384xf32>, vector<64x384xf32> -> vector<64x384xf32>
    %c0_3 = arith.constant 0 : index
    %c0_4 = arith.constant 0 : index
    %3 = vector.load %arg3[%c0_3, %c0_4] : memref<1x384xf32, #tpu.memory_space<vmem>>, vector<1x384xf32>
    %4 = vector.broadcast %3 : vector<1x384xf32> to vector<64x384xf32>
    %5 = arith.addf %2, %4 : vector<64x384xf32>
    %c0_5 = arith.constant 0 : index
    %c0_6 = arith.constant 0 : index
    %6 = vector.load %arg12[%c0_5, %c0_6] : memref<64x384xf32, #tpu.memory_space<vmem>>, vector<64x384xf32>
    tpu.vector_store %arg12[%c0_5, %c0_6], %5 {strides = array<i32>} : memref<64x384xf32, #tpu.memory_space<vmem>>, vector<64x384xf32>,
    %c0_7 = arith.constant 0 : index
    %c0_8 = arith.constant 0 : index
    %7 = vector.load %arg4[%c0_7, %c0_8] : memref<1x128xf32, #tpu.memory_space<vmem>>, vector<1x128xf32>
    %8 = vector.shape_cast %7 : vector<1x128xf32> to vector<1x128xf32>
    %9 = vector.broadcast %8 : vector<1x128xf32> to vector<8x128xf32>
    %cst_9 = arith.constant 0.000000e+00 : f32
    %10 = vector.broadcast %cst_9 : f32 to vector<8x128xf32>
    %c0_i32 = arith.constant 0 : i32
    %c8_i32 = arith.constant 8 : i32
    %11 = arith.muli %c0_i32, %c8_i32 : i32
    %12 = tpu.assume_multiple %11, 8 : i32
    %13 = arith.index_cast %12 : i32 to index
    %c0_10 = arith.constant 0 : index
    %14 = vector.load %arg12[%13, %c0_10] : memref<64x384xf32, #tpu.memory_space<vmem>>, vector<8x384xf32>
    %c0_11 = arith.constant 0 : index
    %c0_12 = arith.constant 0 : index
    %15 = vector.load %arg2[%c0_11, %c0_12] : memref<128x384xf32, #tpu.memory_space<vmem>>, vector<128x384xf32>
    %cst_13 = arith.constant dense<0.000000e+00> : vector<8x384xf32>
    %16 = tpu.matmul %10, %15, %cst_13 {dimension_numbers = #tpu.dot_dimension_numbers<[1], [0], [0], [1], [0, 0, 1, 1], [], []>} : vector<8x128xf32>, vector<128x384xf32>, vector<8x384xf32> -> vector<8x384xf32>
    %17 = vector.extract_strided_slice %14 {offsets = [0, 0], sizes = [8, 128], strides = [1, 1]} : vector<8x384xf32> to vector<8x128xf32>
    %18 = vector.extract_strided_slice %16 {offsets = [0, 0], sizes = [8, 128], strides = [1, 1]} : vector<8x384xf32> to vector<8x128xf32>
    %19 = arith.addf %17, %18 : vector<8x128xf32>
    %20 = arith.negf %19 : vector<8x128xf32>
    %21 = math.exp %20 : vector<8x128xf32>
    %cst_14 = arith.constant 1.000000e+00 : f32
    %22 = vector.broadcast %cst_14 : f32 to vector<8x128xf32>
    %23 = arith.addf %22, %21 : vector<8x128xf32>
    %24 = arith.divf %22, %23 : vector<8x128xf32>
    %25 = vector.extract_strided_slice %14 {offsets = [0, 128], sizes = [8, 128], strides = [1, 1]} : vector<8x384xf32> to vector<8x128xf32>
    %26 = vector.extract_strided_slice %16 {offsets = [0, 128], sizes = [8, 128], strides = [1, 1]} : vector<8x384xf32> to vector<8x128xf32>
    %27 = arith.addf %25, %26 : vector<8x128xf32>
    %28 = arith.negf %27 : vector<8x128xf32>
    %29 = math.exp %28 : vector<8x128xf32>
    %cst_15 = arith.constant 1.000000e+00 : f32
    %30 = vector.broadcast %cst_15 : f32 to vector<8x128xf32>
    %31 = arith.addf %30, %29 : vector<8x128xf32>
    %32 = arith.divf %30, %31 : vector<8x128xf32>
    %33 = vector.extract_strided_slice %14 {offsets = [0, 256], sizes = [8, 128], strides = [1, 1]} : vector<8x384xf32> to vector<8x128xf32>
    %34 = vector.extract_strided_slice %16 {offsets = [0, 256], sizes = [8, 128], strides = [1, 1]} : vector<8x384xf32> to vector<8x128xf32>
    %35 = arith.addf %34, %9 : vector<8x128xf32>
    %36 = arith.mulf %24, %35 : vector<8x128xf32>
    %37 = arith.addf %33, %36 : vector<8x128xf32>
    %38 = math.tanh %37 : vector<8x128xf32>
    %cst_16 = arith.constant 1.000000e+00 : f32
    %39 = vector.broadcast %cst_16 : f32 to vector<8x128xf32>
    %40 = arith.subf %39, %32 : vector<8x128xf32>
    %41 = arith.mulf %40, %38 : vector<8x128xf32>
    %42 = arith.mulf %32, %10 : vector<8x128xf32>
    %43 = arith.addf %41, %42 : vector<8x128xf32>
    %44 = arith.index_cast %12 : i32 to index
    %c0_17 = arith.constant 0 : index
    %45 = vector.load %arg13[%44, %c0_17] : memref<64x128xf32, #tpu.memory_space<vmem>>, vector<8x128xf32>
    tpu.vector_store %arg13[%44, %c0_17], %43 {strides = array<i32>} : memref<64x128xf32, #tpu.memory_space<vmem>>, vector<8x128xf32>,
    %c1_i32 = arith.constant 1 : i32
    %c8_i32_18 = arith.constant 8 : i32
    %46 = arith.muli %c1_i32, %c8_i32_18 : i32
    %47 = tpu.assume_multiple %46, 8 : i32
    %48 = arith.index_cast %47 : i32 to index
    %c0_19 = arith.constant 0 : index
    %49 = vector.load %arg12[%48, %c0_19] : memref<64x384xf32, #tpu.memory_space<vmem>>, vector<8x384xf32>
    %c0_20 = arith.constant 0 : index
    %c0_21 = arith.constant 0 : index
    %50 = vector.load %arg2[%c0_20, %c0_21] : memref<128x384xf32, #tpu.memory_space<vmem>>, vector<128x384xf32>
    %cst_22 = arith.constant dense<0.000000e+00> : vector<8x384xf32>
    %51 = tpu.matmul %43, %50, %cst_22 {dimension_numbers = #tpu.dot_dimension_numbers<[1], [0], [0], [1], [0, 0, 1, 1], [], []>} : vector<8x128xf32>, vector<128x384xf32>, vector<8x384xf32> -> vector<8x384xf32>
    %52 = vector.extract_strided_slice %49 {offsets = [0, 0], sizes = [8, 128], strides = [1, 1]} : vector<8x384xf32> to vector<8x128xf32>
    %53 = vector.extract_strided_slice %51 {offsets = [0, 0], sizes = [8, 128], strides = [1, 1]} : vector<8x384xf32> to vector<8x128xf32>
    %54 = arith.addf %52, %53 : vector<8x128xf32>
    %55 = arith.negf %54 : vector<8x128xf32>
    %56 = math.exp %55 : vector<8x128xf32>
    %cst_23 = arith.constant 1.000000e+00 : f32
    %57 = vector.broadcast %cst_23 : f32 to vector<8x128xf32>
    %58 = arith.addf %57, %56 : vector<8x128xf32>
    %59 = arith.divf %57, %58 : vector<8x128xf32>
    %60 = vector.extract_strided_slice %49 {offsets = [0, 128], sizes = [8, 128], strides = [1, 1]} : vector<8x384xf32> to vector<8x128xf32>
    %61 = vector.extract_strided_slice %51 {offsets = [0, 128], sizes = [8, 128], strides = [1, 1]} : vector<8x384xf32> to vector<8x128xf32>
    %62 = arith.addf %60, %61 : vector<8x128xf32>
    %63 = arith.negf %62 : vector<8x128xf32>
    %64 = math.exp %63 : vector<8x128xf32>
    %cst_24 = arith.constant 1.000000e+00 : f32
    %65 = vector.broadcast %cst_24 : f32 to vector<8x128xf32>
    %66 = arith.addf %65, %64 : vector<8x128xf32>
    %67 = arith.divf %65, %66 : vector<8x128xf32>
    %68 = vector.extract_strided_slice %49 {offsets = [0, 256], sizes = [8, 128], strides = [1, 1]} : vector<8x384xf32> to vector<8x128xf32>
    %69 = vector.extract_strided_slice %51 {offsets = [0, 256], sizes = [8, 128], strides = [1, 1]} : vector<8x384xf32> to vector<8x128xf32>
    %70 = arith.addf %69, %9 : vector<8x128xf32>
    %71 = arith.mulf %59, %70 : vector<8x128xf32>
    %72 = arith.addf %68, %71 : vector<8x128xf32>
    %73 = math.tanh %72 : vector<8x128xf32>
    %cst_25 = arith.constant 1.000000e+00 : f32
    %74 = vector.broadcast %cst_25 : f32 to vector<8x128xf32>
    %75 = arith.subf %74, %67 : vector<8x128xf32>
    %76 = arith.mulf %75, %73 : vector<8x128xf32>
    %77 = arith.mulf %67, %43 : vector<8x128xf32>
    %78 = arith.addf %76, %77 : vector<8x128xf32>
    %79 = arith.index_cast %47 : i32 to index
    %c0_26 = arith.constant 0 : index
    %80 = vector.load %arg13[%79, %c0_26] : memref<64x128xf32, #tpu.memory_space<vmem>>, vector<8x128xf32>
    tpu.vector_store %arg13[%79, %c0_26], %78 {strides = array<i32>} : memref<64x128xf32, #tpu.memory_space<vmem>>, vector<8x128xf32>,
    %c2_i32 = arith.constant 2 : i32
    %c8_i32_27 = arith.constant 8 : i32
    %81 = arith.muli %c2_i32, %c8_i32_27 : i32
    %82 = tpu.assume_multiple %81, 8 : i32
    %83 = arith.index_cast %82 : i32 to index
    %c0_28 = arith.constant 0 : index
    %84 = vector.load %arg12[%83, %c0_28] : memref<64x384xf32, #tpu.memory_space<vmem>>, vector<8x384xf32>
    %c0_29 = arith.constant 0 : index
    %c0_30 = arith.constant 0 : index
    %85 = vector.load %arg2[%c0_29, %c0_30] : memref<128x384xf32, #tpu.memory_space<vmem>>, vector<128x384xf32>
    %cst_31 = arith.constant dense<0.000000e+00> : vector<8x384xf32>
    %86 = tpu.matmul %78, %85, %cst_31 {dimension_numbers = #tpu.dot_dimension_numbers<[1], [0], [0], [1], [0, 0, 1, 1], [], []>} : vector<8x128xf32>, vector<128x384xf32>, vector<8x384xf32> -> vector<8x384xf32>
    %87 = vector.extract_strided_slice %84 {offsets = [0, 0], sizes = [8, 128], strides = [1, 1]} : vector<8x384xf32> to vector<8x128xf32>
    %88 = vector.extract_strided_slice %86 {offsets = [0, 0], sizes = [8, 128], strides = [1, 1]} : vector<8x384xf32> to vector<8x128xf32>
    %89 = arith.addf %87, %88 : vector<8x128xf32>
    %90 = arith.negf %89 : vector<8x128xf32>
    %91 = math.exp %90 : vector<8x128xf32>
    %cst_32 = arith.constant 1.000000e+00 : f32
    %92 = vector.broadcast %cst_32 : f32 to vector<8x128xf32>
    %93 = arith.addf %92, %91 : vector<8x128xf32>
    %94 = arith.divf %92, %93 : vector<8x128xf32>
    %95 = vector.extract_strided_slice %84 {offsets = [0, 128], sizes = [8, 128], strides = [1, 1]} : vector<8x384xf32> to vector<8x128xf32>
    %96 = vector.extract_strided_slice %86 {offsets = [0, 128], sizes = [8, 128], strides = [1, 1]} : vector<8x384xf32> to vector<8x128xf32>
    %97 = arith.addf %95, %96 : vector<8x128xf32>
    %98 = arith.negf %97 : vector<8x128xf32>
    %99 = math.exp %98 : vector<8x128xf32>
    %cst_33 = arith.constant 1.000000e+00 : f32
    %100 = vector.broadcast %cst_33 : f32 to vector<8x128xf32>
    %101 = arith.addf %100, %99 : vector<8x128xf32>
    %102 = arith.divf %100, %101 : vector<8x128xf32>
    %103 = vector.extract_strided_slice %84 {offsets = [0, 256], sizes = [8, 128], strides = [1, 1]} : vector<8x384xf32> to vector<8x128xf32>
    %104 = vector.extract_strided_slice %86 {offsets = [0, 256], sizes = [8, 128], strides = [1, 1]} : vector<8x384xf32> to vector<8x128xf32>
    %105 = arith.addf %104, %9 : vector<8x128xf32>
    %106 = arith.mulf %94, %105 : vector<8x128xf32>
    %107 = arith.addf %103, %106 : vector<8x128xf32>
    %108 = math.tanh %107 : vector<8x128xf32>
    %cst_34 = arith.constant 1.000000e+00 : f32
    %109 = vector.broadcast %cst_34 : f32 to vector<8x128xf32>
    %110 = arith.subf %109, %102 : vector<8x128xf32>
    %111 = arith.mulf %110, %108 : vector<8x128xf32>
    %112 = arith.mulf %102, %78 : vector<8x128xf32>
    %113 = arith.addf %111, %112 : vector<8x128xf32>
    %114 = arith.index_cast %82 : i32 to index
    %c0_35 = arith.constant 0 : index
    %115 = vector.load %arg13[%114, %c0_35] : memref<64x128xf32, #tpu.memory_space<vmem>>, vector<8x128xf32>
    tpu.vector_store %arg13[%114, %c0_35], %113 {strides = array<i32>} : memref<64x128xf32, #tpu.memory_space<vmem>>, vector<8x128xf32>,
    %c3_i32 = arith.constant 3 : i32
    %c8_i32_36 = arith.constant 8 : i32
    %116 = arith.muli %c3_i32, %c8_i32_36 : i32
    %117 = tpu.assume_multiple %116, 8 : i32
    %118 = arith.index_cast %117 : i32 to index
    %c0_37 = arith.constant 0 : index
    %119 = vector.load %arg12[%118, %c0_37] : memref<64x384xf32, #tpu.memory_space<vmem>>, vector<8x384xf32>
    %c0_38 = arith.constant 0 : index
    %c0_39 = arith.constant 0 : index
    %120 = vector.load %arg2[%c0_38, %c0_39] : memref<128x384xf32, #tpu.memory_space<vmem>>, vector<128x384xf32>
    %cst_40 = arith.constant dense<0.000000e+00> : vector<8x384xf32>
    %121 = tpu.matmul %113, %120, %cst_40 {dimension_numbers = #tpu.dot_dimension_numbers<[1], [0], [0], [1], [0, 0, 1, 1], [], []>} : vector<8x128xf32>, vector<128x384xf32>, vector<8x384xf32> -> vector<8x384xf32>
    %122 = vector.extract_strided_slice %119 {offsets = [0, 0], sizes = [8, 128], strides = [1, 1]} : vector<8x384xf32> to vector<8x128xf32>
    %123 = vector.extract_strided_slice %121 {offsets = [0, 0], sizes = [8, 128], strides = [1, 1]} : vector<8x384xf32> to vector<8x128xf32>
    %124 = arith.addf %122, %123 : vector<8x128xf32>
    %125 = arith.negf %124 : vector<8x128xf32>
    %126 = math.exp %125 : vector<8x128xf32>
    %cst_41 = arith.constant 1.000000e+00 : f32
    %127 = vector.broadcast %cst_41 : f32 to vector<8x128xf32>
    %128 = arith.addf %127, %126 : vector<8x128xf32>
    %129 = arith.divf %127, %128 : vector<8x128xf32>
    %130 = vector.extract_strided_slice %119 {offsets = [0, 128], sizes = [8, 128], strides = [1, 1]} : vector<8x384xf32> to vector<8x128xf32>
    %131 = vector.extract_strided_slice %121 {offsets = [0, 128], sizes = [8, 128], strides = [1, 1]} : vector<8x384xf32> to vector<8x128xf32>
    %132 = arith.addf %130, %131 : vector<8x128xf32>
    %133 = arith.negf %132 : vector<8x128xf32>
    %134 = math.exp %133 : vector<8x128xf32>
    %cst_42 = arith.constant 1.000000e+00 : f32
    %135 = vector.broadcast %cst_42 : f32 to vector<8x128xf32>
    %136 = arith.addf %135, %134 : vector<8x128xf32>
    %137 = arith.divf %135, %136 : vector<8x128xf32>
    %138 = vector.extract_strided_slice %119 {offsets = [0, 256], sizes = [8, 128], strides = [1, 1]} : vector<8x384xf32> to vector<8x128xf32>
    %139 = vector.extract_strided_slice %121 {offsets = [0, 256], sizes = [8, 128], strides = [1, 1]} : vector<8x384xf32> to vector<8x128xf32>
    %140 = arith.addf %139, %9 : vector<8x128xf32>
    %141 = arith.mulf %129, %140 : vector<8x128xf32>
    %142 = arith.addf %138, %141 : vector<8x128xf32>
    %143 = math.tanh %142 : vector<8x128xf32>
    %cst_43 = arith.constant 1.000000e+00 : f32
    %144 = vector.broadcast %cst_43 : f32 to vector<8x128xf32>
    %145 = arith.subf %144, %137 : vector<8x128xf32>
    %146 = arith.mulf %145, %143 : vector<8x128xf32>
    %147 = arith.mulf %137, %113 : vector<8x128xf32>
    %148 = arith.addf %146, %147 : vector<8x128xf32>
    %149 = arith.index_cast %117 : i32 to index
    %c0_44 = arith.constant 0 : index
    %150 = vector.load %arg13[%149, %c0_44] : memref<64x128xf32, #tpu.memory_space<vmem>>, vector<8x128xf32>
    tpu.vector_store %arg13[%149, %c0_44], %148 {strides = array<i32>} : memref<64x128xf32, #tpu.memory_space<vmem>>, vector<8x128xf32>,
    %c4_i32 = arith.constant 4 : i32
    %c8_i32_45 = arith.constant 8 : i32
    %151 = arith.muli %c4_i32, %c8_i32_45 : i32
    %152 = tpu.assume_multiple %151, 8 : i32
    %153 = arith.index_cast %152 : i32 to index
    %c0_46 = arith.constant 0 : index
    %154 = vector.load %arg12[%153, %c0_46] : memref<64x384xf32, #tpu.memory_space<vmem>>, vector<8x384xf32>
    %c0_47 = arith.constant 0 : index
    %c0_48 = arith.constant 0 : index
    %155 = vector.load %arg2[%c0_47, %c0_48] : memref<128x384xf32, #tpu.memory_space<vmem>>, vector<128x384xf32>
    %cst_49 = arith.constant dense<0.000000e+00> : vector<8x384xf32>
    %156 = tpu.matmul %148, %155, %cst_49 {dimension_numbers = #tpu.dot_dimension_numbers<[1], [0], [0], [1], [0, 0, 1, 1], [], []>} : vector<8x128xf32>, vector<128x384xf32>, vector<8x384xf32> -> vector<8x384xf32>
    %157 = vector.extract_strided_slice %154 {offsets = [0, 0], sizes = [8, 128], strides = [1, 1]} : vector<8x384xf32> to vector<8x128xf32>
    %158 = vector.extract_strided_slice %156 {offsets = [0, 0], sizes = [8, 128], strides = [1, 1]} : vector<8x384xf32> to vector<8x128xf32>
    %159 = arith.addf %157, %158 : vector<8x128xf32>
    %160 = arith.negf %159 : vector<8x128xf32>
    %161 = math.exp %160 : vector<8x128xf32>
    %cst_50 = arith.constant 1.000000e+00 : f32
    %162 = vector.broadcast %cst_50 : f32 to vector<8x128xf32>
    %163 = arith.addf %162, %161 : vector<8x128xf32>
    %164 = arith.divf %162, %163 : vector<8x128xf32>
    %165 = vector.extract_strided_slice %154 {offsets = [0, 128], sizes = [8, 128], strides = [1, 1]} : vector<8x384xf32> to vector<8x128xf32>
    %166 = vector.extract_strided_slice %156 {offsets = [0, 128], sizes = [8, 128], strides = [1, 1]} : vector<8x384xf32> to vector<8x128xf32>
    %167 = arith.addf %165, %166 : vector<8x128xf32>
    %168 = arith.negf %167 : vector<8x128xf32>
    %169 = math.exp %168 : vector<8x128xf32>
    %cst_51 = arith.constant 1.000000e+00 : f32
    %170 = vector.broadcast %cst_51 : f32 to vector<8x128xf32>
    %171 = arith.addf %170, %169 : vector<8x128xf32>
    %172 = arith.divf %170, %171 : vector<8x128xf32>
    %173 = vector.extract_strided_slice %154 {offsets = [0, 256], sizes = [8, 128], strides = [1, 1]} : vector<8x384xf32> to vector<8x128xf32>
    %174 = vector.extract_strided_slice %156 {offsets = [0, 256], sizes = [8, 128], strides = [1, 1]} : vector<8x384xf32> to vector<8x128xf32>
    %175 = arith.addf %174, %9 : vector<8x128xf32>
    %176 = arith.mulf %164, %175 : vector<8x128xf32>
    %177 = arith.addf %173, %176 : vector<8x128xf32>
    %178 = math.tanh %177 : vector<8x128xf32>
    %cst_52 = arith.constant 1.000000e+00 : f32
    %179 = vector.broadcast %cst_52 : f32 to vector<8x128xf32>
    %180 = arith.subf %179, %172 : vector<8x128xf32>
    %181 = arith.mulf %180, %178 : vector<8x128xf32>
    %182 = arith.mulf %172, %148 : vector<8x128xf32>
    %183 = arith.addf %181, %182 : vector<8x128xf32>
    %184 = arith.index_cast %152 : i32 to index
    %c0_53 = arith.constant 0 : index
    %185 = vector.load %arg13[%184, %c0_53] : memref<64x128xf32, #tpu.memory_space<vmem>>, vector<8x128xf32>
    tpu.vector_store %arg13[%184, %c0_53], %183 {strides = array<i32>} : memref<64x128xf32, #tpu.memory_space<vmem>>, vector<8x128xf32>,
    %c5_i32 = arith.constant 5 : i32
    %c8_i32_54 = arith.constant 8 : i32
    %186 = arith.muli %c5_i32, %c8_i32_54 : i32
    %187 = tpu.assume_multiple %186, 8 : i32
    %188 = arith.index_cast %187 : i32 to index
    %c0_55 = arith.constant 0 : index
    %189 = vector.load %arg12[%188, %c0_55] : memref<64x384xf32, #tpu.memory_space<vmem>>, vector<8x384xf32>
    %c0_56 = arith.constant 0 : index
    %c0_57 = arith.constant 0 : index
    %190 = vector.load %arg2[%c0_56, %c0_57] : memref<128x384xf32, #tpu.memory_space<vmem>>, vector<128x384xf32>
    %cst_58 = arith.constant dense<0.000000e+00> : vector<8x384xf32>
    %191 = tpu.matmul %183, %190, %cst_58 {dimension_numbers = #tpu.dot_dimension_numbers<[1], [0], [0], [1], [0, 0, 1, 1], [], []>} : vector<8x128xf32>, vector<128x384xf32>, vector<8x384xf32> -> vector<8x384xf32>
    %192 = vector.extract_strided_slice %189 {offsets = [0, 0], sizes = [8, 128], strides = [1, 1]} : vector<8x384xf32> to vector<8x128xf32>
    %193 = vector.extract_strided_slice %191 {offsets = [0, 0], sizes = [8, 128], strides = [1, 1]} : vector<8x384xf32> to vector<8x128xf32>
    %194 = arith.addf %192, %193 : vector<8x128xf32>
    %195 = arith.negf %194 : vector<8x128xf32>
    %196 = math.exp %195 : vector<8x128xf32>
    %cst_59 = arith.constant 1.000000e+00 : f32
    %197 = vector.broadcast %cst_59 : f32 to vector<8x128xf32>
    %198 = arith.addf %197, %196 : vector<8x128xf32>
    %199 = arith.divf %197, %198 : vector<8x128xf32>
    %200 = vector.extract_strided_slice %189 {offsets = [0, 128], sizes = [8, 128], strides = [1, 1]} : vector<8x384xf32> to vector<8x128xf32>
    %201 = vector.extract_strided_slice %191 {offsets = [0, 128], sizes = [8, 128], strides = [1, 1]} : vector<8x384xf32> to vector<8x128xf32>
    %202 = arith.addf %200, %201 : vector<8x128xf32>
    %203 = arith.negf %202 : vector<8x128xf32>
    %204 = math.exp %203 : vector<8x128xf32>
    %cst_60 = arith.constant 1.000000e+00 : f32
    %205 = vector.broadcast %cst_60 : f32 to vector<8x128xf32>
    %206 = arith.addf %205, %204 : vector<8x128xf32>
    %207 = arith.divf %205, %206 : vector<8x128xf32>
    %208 = vector.extract_strided_slice %189 {offsets = [0, 256], sizes = [8, 128], strides = [1, 1]} : vector<8x384xf32> to vector<8x128xf32>
    %209 = vector.extract_strided_slice %191 {offsets = [0, 256], sizes = [8, 128], strides = [1, 1]} : vector<8x384xf32> to vector<8x128xf32>
    %210 = arith.addf %209, %9 : vector<8x128xf32>
    %211 = arith.mulf %199, %210 : vector<8x128xf32>
    %212 = arith.addf %208, %211 : vector<8x128xf32>
    %213 = math.tanh %212 : vector<8x128xf32>
    %cst_61 = arith.constant 1.000000e+00 : f32
    %214 = vector.broadcast %cst_61 : f32 to vector<8x128xf32>
    %215 = arith.subf %214, %207 : vector<8x128xf32>
    %216 = arith.mulf %215, %213 : vector<8x128xf32>
    %217 = arith.mulf %207, %183 : vector<8x128xf32>
    %218 = arith.addf %216, %217 : vector<8x128xf32>
    %219 = arith.index_cast %187 : i32 to index
    %c0_62 = arith.constant 0 : index
    %220 = vector.load %arg13[%219, %c0_62] : memref<64x128xf32, #tpu.memory_space<vmem>>, vector<8x128xf32>
    tpu.vector_store %arg13[%219, %c0_62], %218 {strides = array<i32>} : memref<64x128xf32, #tpu.memory_space<vmem>>, vector<8x128xf32>,
    %c6_i32 = arith.constant 6 : i32
    %c8_i32_63 = arith.constant 8 : i32
    %221 = arith.muli %c6_i32, %c8_i32_63 : i32
    %222 = tpu.assume_multiple %221, 8 : i32
    %223 = arith.index_cast %222 : i32 to index
    %c0_64 = arith.constant 0 : index
    %224 = vector.load %arg12[%223, %c0_64] : memref<64x384xf32, #tpu.memory_space<vmem>>, vector<8x384xf32>
    %c0_65 = arith.constant 0 : index
    %c0_66 = arith.constant 0 : index
    %225 = vector.load %arg2[%c0_65, %c0_66] : memref<128x384xf32, #tpu.memory_space<vmem>>, vector<128x384xf32>
    %cst_67 = arith.constant dense<0.000000e+00> : vector<8x384xf32>
    %226 = tpu.matmul %218, %225, %cst_67 {dimension_numbers = #tpu.dot_dimension_numbers<[1], [0], [0], [1], [0, 0, 1, 1], [], []>} : vector<8x128xf32>, vector<128x384xf32>, vector<8x384xf32> -> vector<8x384xf32>
    %227 = vector.extract_strided_slice %224 {offsets = [0, 0], sizes = [8, 128], strides = [1, 1]} : vector<8x384xf32> to vector<8x128xf32>
    %228 = vector.extract_strided_slice %226 {offsets = [0, 0], sizes = [8, 128], strides = [1, 1]} : vector<8x384xf32> to vector<8x128xf32>
    %229 = arith.addf %227, %228 : vector<8x128xf32>
    %230 = arith.negf %229 : vector<8x128xf32>
    %231 = math.exp %230 : vector<8x128xf32>
    %cst_68 = arith.constant 1.000000e+00 : f32
    %232 = vector.broadcast %cst_68 : f32 to vector<8x128xf32>
    %233 = arith.addf %232, %231 : vector<8x128xf32>
    %234 = arith.divf %232, %233 : vector<8x128xf32>
    %235 = vector.extract_strided_slice %224 {offsets = [0, 128], sizes = [8, 128], strides = [1, 1]} : vector<8x384xf32> to vector<8x128xf32>
    %236 = vector.extract_strided_slice %226 {offsets = [0, 128], sizes = [8, 128], strides = [1, 1]} : vector<8x384xf32> to vector<8x128xf32>
    %237 = arith.addf %235, %236 : vector<8x128xf32>
    %238 = arith.negf %237 : vector<8x128xf32>
    %239 = math.exp %238 : vector<8x128xf32>
    %cst_69 = arith.constant 1.000000e+00 : f32
    %240 = vector.broadcast %cst_69 : f32 to vector<8x128xf32>
    %241 = arith.addf %240, %239 : vector<8x128xf32>
    %242 = arith.divf %240, %241 : vector<8x128xf32>
    %243 = vector.extract_strided_slice %224 {offsets = [0, 256], sizes = [8, 128], strides = [1, 1]} : vector<8x384xf32> to vector<8x128xf32>
    %244 = vector.extract_strided_slice %226 {offsets = [0, 256], sizes = [8, 128], strides = [1, 1]} : vector<8x384xf32> to vector<8x128xf32>
    %245 = arith.addf %244, %9 : vector<8x128xf32>
    %246 = arith.mulf %234, %245 : vector<8x128xf32>
    %247 = arith.addf %243, %246 : vector<8x128xf32>
    %248 = math.tanh %247 : vector<8x128xf32>
    %cst_70 = arith.constant 1.000000e+00 : f32
    %249 = vector.broadcast %cst_70 : f32 to vector<8x128xf32>
    %250 = arith.subf %249, %242 : vector<8x128xf32>
    %251 = arith.mulf %250, %248 : vector<8x128xf32>
    %252 = arith.mulf %242, %218 : vector<8x128xf32>
    %253 = arith.addf %251, %252 : vector<8x128xf32>
    %254 = arith.index_cast %222 : i32 to index
    %c0_71 = arith.constant 0 : index
    %255 = vector.load %arg13[%254, %c0_71] : memref<64x128xf32, #tpu.memory_space<vmem>>, vector<8x128xf32>
    tpu.vector_store %arg13[%254, %c0_71], %253 {strides = array<i32>} : memref<64x128xf32, #tpu.memory_space<vmem>>, vector<8x128xf32>,
    %c7_i32 = arith.constant 7 : i32
    %c8_i32_72 = arith.constant 8 : i32
    %256 = arith.muli %c7_i32, %c8_i32_72 : i32
    %257 = tpu.assume_multiple %256, 8 : i32
    %258 = arith.index_cast %257 : i32 to index
    %c0_73 = arith.constant 0 : index
    %259 = vector.load %arg12[%258, %c0_73] : memref<64x384xf32, #tpu.memory_space<vmem>>, vector<8x384xf32>
    %c0_74 = arith.constant 0 : index
    %c0_75 = arith.constant 0 : index
    %260 = vector.load %arg2[%c0_74, %c0_75] : memref<128x384xf32, #tpu.memory_space<vmem>>, vector<128x384xf32>
    %cst_76 = arith.constant dense<0.000000e+00> : vector<8x384xf32>
    %261 = tpu.matmul %253, %260, %cst_76 {dimension_numbers = #tpu.dot_dimension_numbers<[1], [0], [0], [1], [0, 0, 1, 1], [], []>} : vector<8x128xf32>, vector<128x384xf32>, vector<8x384xf32> -> vector<8x384xf32>
    %262 = vector.extract_strided_slice %259 {offsets = [0, 0], sizes = [8, 128], strides = [1, 1]} : vector<8x384xf32> to vector<8x128xf32>
    %263 = vector.extract_strided_slice %261 {offsets = [0, 0], sizes = [8, 128], strides = [1, 1]} : vector<8x384xf32> to vector<8x128xf32>
    %264 = arith.addf %262, %263 : vector<8x128xf32>
    %265 = arith.negf %264 : vector<8x128xf32>
    %266 = math.exp %265 : vector<8x128xf32>
    %cst_77 = arith.constant 1.000000e+00 : f32
    %267 = vector.broadcast %cst_77 : f32 to vector<8x128xf32>
    %268 = arith.addf %267, %266 : vector<8x128xf32>
    %269 = arith.divf %267, %268 : vector<8x128xf32>
    %270 = vector.extract_strided_slice %259 {offsets = [0, 128], sizes = [8, 128], strides = [1, 1]} : vector<8x384xf32> to vector<8x128xf32>
    %271 = vector.extract_strided_slice %261 {offsets = [0, 128], sizes = [8, 128], strides = [1, 1]} : vector<8x384xf32> to vector<8x128xf32>
    %272 = arith.addf %270, %271 : vector<8x128xf32>
    %273 = arith.negf %272 : vector<8x128xf32>
    %274 = math.exp %273 : vector<8x128xf32>
    %cst_78 = arith.constant 1.000000e+00 : f32
    %275 = vector.broadcast %cst_78 : f32 to vector<8x128xf32>
    %276 = arith.addf %275, %274 : vector<8x128xf32>
    %277 = arith.divf %275, %276 : vector<8x128xf32>
    %278 = vector.extract_strided_slice %259 {offsets = [0, 256], sizes = [8, 128], strides = [1, 1]} : vector<8x384xf32> to vector<8x128xf32>
    %279 = vector.extract_strided_slice %261 {offsets = [0, 256], sizes = [8, 128], strides = [1, 1]} : vector<8x384xf32> to vector<8x128xf32>
    %280 = arith.addf %279, %9 : vector<8x128xf32>
    %281 = arith.mulf %269, %280 : vector<8x128xf32>
    %282 = arith.addf %278, %281 : vector<8x128xf32>
    %283 = math.tanh %282 : vector<8x128xf32>
    %cst_79 = arith.constant 1.000000e+00 : f32
    %284 = vector.broadcast %cst_79 : f32 to vector<8x128xf32>
    %285 = arith.subf %284, %277 : vector<8x128xf32>
    %286 = arith.mulf %285, %283 : vector<8x128xf32>
    %287 = arith.mulf %277, %253 : vector<8x128xf32>
    %288 = arith.addf %286, %287 : vector<8x128xf32>
    %289 = arith.index_cast %257 : i32 to index
    %c0_80 = arith.constant 0 : index
    %290 = vector.load %arg13[%289, %c0_80] : memref<64x128xf32, #tpu.memory_space<vmem>>, vector<8x128xf32>
    tpu.vector_store %arg13[%289, %c0_80], %288 {strides = array<i32>} : memref<64x128xf32, #tpu.memory_space<vmem>>, vector<8x128xf32>,
    %c8_i32_81 = arith.constant 8 : i32
    %c0_82 = arith.constant 0 : index
    %c0_83 = arith.constant 0 : index
    %291 = vector.load %arg13[%c0_82, %c0_83] : memref<64x128xf32, #tpu.memory_space<vmem>>, vector<64x128xf32>
    %c0_84 = arith.constant 0 : index
    %c0_85 = arith.constant 0 : index
    %292 = vector.load %arg5[%c0_84, %c0_85] : memref<128x384xf32, #tpu.memory_space<vmem>>, vector<128x384xf32>
    %cst_86 = arith.constant dense<0.000000e+00> : vector<64x384xf32>
    %293 = tpu.matmul %291, %292, %cst_86 {dimension_numbers = #tpu.dot_dimension_numbers<[1], [0], [0], [1], [0, 0, 1, 1], [], []>} : vector<64x128xf32>, vector<128x384xf32>, vector<64x384xf32> -> vector<64x384xf32>
    %c0_87 = arith.constant 0 : index
    %c0_88 = arith.constant 0 : index
    %294 = vector.load %arg7[%c0_87, %c0_88] : memref<1x384xf32, #tpu.memory_space<vmem>>, vector<1x384xf32>
    %295 = vector.broadcast %294 : vector<1x384xf32> to vector<64x384xf32>
    %296 = arith.addf %293, %295 : vector<64x384xf32>
    %c0_89 = arith.constant 0 : index
    %c0_90 = arith.constant 0 : index
    %297 = vector.load %arg12[%c0_89, %c0_90] : memref<64x384xf32, #tpu.memory_space<vmem>>, vector<64x384xf32>
    tpu.vector_store %arg12[%c0_89, %c0_90], %296 {strides = array<i32>} : memref<64x384xf32, #tpu.memory_space<vmem>>, vector<64x384xf32>,
    %c0_91 = arith.constant 0 : index
    %c0_92 = arith.constant 0 : index
    %298 = vector.load %arg8[%c0_91, %c0_92] : memref<1x128xf32, #tpu.memory_space<vmem>>, vector<1x128xf32>
    %299 = vector.shape_cast %298 : vector<1x128xf32> to vector<1x128xf32>
    %300 = vector.broadcast %299 : vector<1x128xf32> to vector<8x128xf32>
    %cst_93 = arith.constant 0.000000e+00 : f32
    %301 = vector.broadcast %cst_93 : f32 to vector<8x128xf32>
    %c0_i32_94 = arith.constant 0 : i32
    %c8_i32_95 = arith.constant 8 : i32
    %302 = arith.muli %c0_i32_94, %c8_i32_95 : i32
    %303 = tpu.assume_multiple %302, 8 : i32
    %304 = arith.index_cast %303 : i32 to index
    %c0_96 = arith.constant 0 : index
    %305 = vector.load %arg12[%304, %c0_96] : memref<64x384xf32, #tpu.memory_space<vmem>>, vector<8x384xf32>
    %c0_97 = arith.constant 0 : index
    %c0_98 = arith.constant 0 : index
    %306 = vector.load %arg6[%c0_97, %c0_98] : memref<128x384xf32, #tpu.memory_space<vmem>>, vector<128x384xf32>
    %cst_99 = arith.constant dense<0.000000e+00> : vector<8x384xf32>
    %307 = tpu.matmul %301, %306, %cst_99 {dimension_numbers = #tpu.dot_dimension_numbers<[1], [0], [0], [1], [0, 0, 1, 1], [], []>} : vector<8x128xf32>, vector<128x384xf32>, vector<8x384xf32> -> vector<8x384xf32>
    %308 = vector.extract_strided_slice %305 {offsets = [0, 0], sizes = [8, 128], strides = [1, 1]} : vector<8x384xf32> to vector<8x128xf32>
    %309 = vector.extract_strided_slice %307 {offsets = [0, 0], sizes = [8, 128], strides = [1, 1]} : vector<8x384xf32> to vector<8x128xf32>
    %310 = arith.addf %308, %309 : vector<8x128xf32>
    %311 = arith.negf %310 : vector<8x128xf32>
    %312 = math.exp %311 : vector<8x128xf32>
    %cst_100 = arith.constant 1.000000e+00 : f32
    %313 = vector.broadcast %cst_100 : f32 to vector<8x128xf32>
    %314 = arith.addf %313, %312 : vector<8x128xf32>
    %315 = arith.divf %313, %314 : vector<8x128xf32>
    %316 = vector.extract_strided_slice %305 {offsets = [0, 128], sizes = [8, 128], strides = [1, 1]} : vector<8x384xf32> to vector<8x128xf32>
    %317 = vector.extract_strided_slice %307 {offsets = [0, 128], sizes = [8, 128], strides = [1, 1]} : vector<8x384xf32> to vector<8x128xf32>
    %318 = arith.addf %316, %317 : vector<8x128xf32>
    %319 = arith.negf %318 : vector<8x128xf32>
    %320 = math.exp %319 : vector<8x128xf32>
    %cst_101 = arith.constant 1.000000e+00 : f32
    %321 = vector.broadcast %cst_101 : f32 to vector<8x128xf32>
    %322 = arith.addf %321, %320 : vector<8x128xf32>
    %323 = arith.divf %321, %322 : vector<8x128xf32>
    %324 = vector.extract_strided_slice %305 {offsets = [0, 256], sizes = [8, 128], strides = [1, 1]} : vector<8x384xf32> to vector<8x128xf32>
    %325 = vector.extract_strided_slice %307 {offsets = [0, 256], sizes = [8, 128], strides = [1, 1]} : vector<8x384xf32> to vector<8x128xf32>
    %326 = arith.addf %325, %300 : vector<8x128xf32>
    %327 = arith.mulf %315, %326 : vector<8x128xf32>
    %328 = arith.addf %324, %327 : vector<8x128xf32>
    %329 = math.tanh %328 : vector<8x128xf32>
    %cst_102 = arith.constant 1.000000e+00 : f32
    %330 = vector.broadcast %cst_102 : f32 to vector<8x128xf32>
    %331 = arith.subf %330, %323 : vector<8x128xf32>
    %332 = arith.mulf %331, %329 : vector<8x128xf32>
    %333 = arith.mulf %323, %301 : vector<8x128xf32>
    %334 = arith.addf %332, %333 : vector<8x128xf32>
    %c1_i32_103 = arith.constant 1 : i32
    %c8_i32_104 = arith.constant 8 : i32
    %335 = arith.muli %c1_i32_103, %c8_i32_104 : i32
    %336 = tpu.assume_multiple %335, 8 : i32
    %337 = arith.index_cast %336 : i32 to index
    %c0_105 = arith.constant 0 : index
    %338 = vector.load %arg12[%337, %c0_105] : memref<64x384xf32, #tpu.memory_space<vmem>>, vector<8x384xf32>
    %c0_106 = arith.constant 0 : index
    %c0_107 = arith.constant 0 : index
    %339 = vector.load %arg6[%c0_106, %c0_107] : memref<128x384xf32, #tpu.memory_space<vmem>>, vector<128x384xf32>
    %cst_108 = arith.constant dense<0.000000e+00> : vector<8x384xf32>
    %340 = tpu.matmul %334, %339, %cst_108 {dimension_numbers = #tpu.dot_dimension_numbers<[1], [0], [0], [1], [0, 0, 1, 1], [], []>} : vector<8x128xf32>, vector<128x384xf32>, vector<8x384xf32> -> vector<8x384xf32>
    %341 = vector.extract_strided_slice %338 {offsets = [0, 0], sizes = [8, 128], strides = [1, 1]} : vector<8x384xf32> to vector<8x128xf32>
    %342 = vector.extract_strided_slice %340 {offsets = [0, 0], sizes = [8, 128], strides = [1, 1]} : vector<8x384xf32> to vector<8x128xf32>
    %343 = arith.addf %341, %342 : vector<8x128xf32>
    %344 = arith.negf %343 : vector<8x128xf32>
    %345 = math.exp %344 : vector<8x128xf32>
    %cst_109 = arith.constant 1.000000e+00 : f32
    %346 = vector.broadcast %cst_109 : f32 to vector<8x128xf32>
    %347 = arith.addf %346, %345 : vector<8x128xf32>
    %348 = arith.divf %346, %347 : vector<8x128xf32>
    %349 = vector.extract_strided_slice %338 {offsets = [0, 128], sizes = [8, 128], strides = [1, 1]} : vector<8x384xf32> to vector<8x128xf32>
    %350 = vector.extract_strided_slice %340 {offsets = [0, 128], sizes = [8, 128], strides = [1, 1]} : vector<8x384xf32> to vector<8x128xf32>
    %351 = arith.addf %349, %350 : vector<8x128xf32>
    %352 = arith.negf %351 : vector<8x128xf32>
    %353 = math.exp %352 : vector<8x128xf32>
    %cst_110 = arith.constant 1.000000e+00 : f32
    %354 = vector.broadcast %cst_110 : f32 to vector<8x128xf32>
    %355 = arith.addf %354, %353 : vector<8x128xf32>
    %356 = arith.divf %354, %355 : vector<8x128xf32>
    %357 = vector.extract_strided_slice %338 {offsets = [0, 256], sizes = [8, 128], strides = [1, 1]} : vector<8x384xf32> to vector<8x128xf32>
    %358 = vector.extract_strided_slice %340 {offsets = [0, 256], sizes = [8, 128], strides = [1, 1]} : vector<8x384xf32> to vector<8x128xf32>
    %359 = arith.addf %358, %300 : vector<8x128xf32>
    %360 = arith.mulf %348, %359 : vector<8x128xf32>
    %361 = arith.addf %357, %360 : vector<8x128xf32>
    %362 = math.tanh %361 : vector<8x128xf32>
    %cst_111 = arith.constant 1.000000e+00 : f32
    %363 = vector.broadcast %cst_111 : f32 to vector<8x128xf32>
    %364 = arith.subf %363, %356 : vector<8x128xf32>
    %365 = arith.mulf %364, %362 : vector<8x128xf32>
    %366 = arith.mulf %356, %334 : vector<8x128xf32>
    %367 = arith.addf %365, %366 : vector<8x128xf32>
    %c2_i32_112 = arith.constant 2 : i32
    %c8_i32_113 = arith.constant 8 : i32
    %368 = arith.muli %c2_i32_112, %c8_i32_113 : i32
    %369 = tpu.assume_multiple %368, 8 : i32
    %370 = arith.index_cast %369 : i32 to index
    %c0_114 = arith.constant 0 : index
    %371 = vector.load %arg12[%370, %c0_114] : memref<64x384xf32, #tpu.memory_space<vmem>>, vector<8x384xf32>
    %c0_115 = arith.constant 0 : index
    %c0_116 = arith.constant 0 : index
    %372 = vector.load %arg6[%c0_115, %c0_116] : memref<128x384xf32, #tpu.memory_space<vmem>>, vector<128x384xf32>
    %cst_117 = arith.constant dense<0.000000e+00> : vector<8x384xf32>
    %373 = tpu.matmul %367, %372, %cst_117 {dimension_numbers = #tpu.dot_dimension_numbers<[1], [0], [0], [1], [0, 0, 1, 1], [], []>} : vector<8x128xf32>, vector<128x384xf32>, vector<8x384xf32> -> vector<8x384xf32>
    %374 = vector.extract_strided_slice %371 {offsets = [0, 0], sizes = [8, 128], strides = [1, 1]} : vector<8x384xf32> to vector<8x128xf32>
    %375 = vector.extract_strided_slice %373 {offsets = [0, 0], sizes = [8, 128], strides = [1, 1]} : vector<8x384xf32> to vector<8x128xf32>
    %376 = arith.addf %374, %375 : vector<8x128xf32>
    %377 = arith.negf %376 : vector<8x128xf32>
    %378 = math.exp %377 : vector<8x128xf32>
    %cst_118 = arith.constant 1.000000e+00 : f32
    %379 = vector.broadcast %cst_118 : f32 to vector<8x128xf32>
    %380 = arith.addf %379, %378 : vector<8x128xf32>
    %381 = arith.divf %379, %380 : vector<8x128xf32>
    %382 = vector.extract_strided_slice %371 {offsets = [0, 128], sizes = [8, 128], strides = [1, 1]} : vector<8x384xf32> to vector<8x128xf32>
    %383 = vector.extract_strided_slice %373 {offsets = [0, 128], sizes = [8, 128], strides = [1, 1]} : vector<8x384xf32> to vector<8x128xf32>
    %384 = arith.addf %382, %383 : vector<8x128xf32>
    %385 = arith.negf %384 : vector<8x128xf32>
    %386 = math.exp %385 : vector<8x128xf32>
    %cst_119 = arith.constant 1.000000e+00 : f32
    %387 = vector.broadcast %cst_119 : f32 to vector<8x128xf32>
    %388 = arith.addf %387, %386 : vector<8x128xf32>
    %389 = arith.divf %387, %388 : vector<8x128xf32>
    %390 = vector.extract_strided_slice %371 {offsets = [0, 256], sizes = [8, 128], strides = [1, 1]} : vector<8x384xf32> to vector<8x128xf32>
    %391 = vector.extract_strided_slice %373 {offsets = [0, 256], sizes = [8, 128], strides = [1, 1]} : vector<8x384xf32> to vector<8x128xf32>
    %392 = arith.addf %391, %300 : vector<8x128xf32>
    %393 = arith.mulf %381, %392 : vector<8x128xf32>
    %394 = arith.addf %390, %393 : vector<8x128xf32>
    %395 = math.tanh %394 : vector<8x128xf32>
    %cst_120 = arith.constant 1.000000e+00 : f32
    %396 = vector.broadcast %cst_120 : f32 to vector<8x128xf32>
    %397 = arith.subf %396, %389 : vector<8x128xf32>
    %398 = arith.mulf %397, %395 : vector<8x128xf32>
    %399 = arith.mulf %389, %367 : vector<8x128xf32>
    %400 = arith.addf %398, %399 : vector<8x128xf32>
    %c3_i32_121 = arith.constant 3 : i32
    %c8_i32_122 = arith.constant 8 : i32
    %401 = arith.muli %c3_i32_121, %c8_i32_122 : i32
    %402 = tpu.assume_multiple %401, 8 : i32
    %403 = arith.index_cast %402 : i32 to index
    %c0_123 = arith.constant 0 : index
    %404 = vector.load %arg12[%403, %c0_123] : memref<64x384xf32, #tpu.memory_space<vmem>>, vector<8x384xf32>
    %c0_124 = arith.constant 0 : index
    %c0_125 = arith.constant 0 : index
    %405 = vector.load %arg6[%c0_124, %c0_125] : memref<128x384xf32, #tpu.memory_space<vmem>>, vector<128x384xf32>
    %cst_126 = arith.constant dense<0.000000e+00> : vector<8x384xf32>
    %406 = tpu.matmul %400, %405, %cst_126 {dimension_numbers = #tpu.dot_dimension_numbers<[1], [0], [0], [1], [0, 0, 1, 1], [], []>} : vector<8x128xf32>, vector<128x384xf32>, vector<8x384xf32> -> vector<8x384xf32>
    %407 = vector.extract_strided_slice %404 {offsets = [0, 0], sizes = [8, 128], strides = [1, 1]} : vector<8x384xf32> to vector<8x128xf32>
    %408 = vector.extract_strided_slice %406 {offsets = [0, 0], sizes = [8, 128], strides = [1, 1]} : vector<8x384xf32> to vector<8x128xf32>
    %409 = arith.addf %407, %408 : vector<8x128xf32>
    %410 = arith.negf %409 : vector<8x128xf32>
    %411 = math.exp %410 : vector<8x128xf32>
    %cst_127 = arith.constant 1.000000e+00 : f32
    %412 = vector.broadcast %cst_127 : f32 to vector<8x128xf32>
    %413 = arith.addf %412, %411 : vector<8x128xf32>
    %414 = arith.divf %412, %413 : vector<8x128xf32>
    %415 = vector.extract_strided_slice %404 {offsets = [0, 128], sizes = [8, 128], strides = [1, 1]} : vector<8x384xf32> to vector<8x128xf32>
    %416 = vector.extract_strided_slice %406 {offsets = [0, 128], sizes = [8, 128], strides = [1, 1]} : vector<8x384xf32> to vector<8x128xf32>
    %417 = arith.addf %415, %416 : vector<8x128xf32>
    %418 = arith.negf %417 : vector<8x128xf32>
    %419 = math.exp %418 : vector<8x128xf32>
    %cst_128 = arith.constant 1.000000e+00 : f32
    %420 = vector.broadcast %cst_128 : f32 to vector<8x128xf32>
    %421 = arith.addf %420, %419 : vector<8x128xf32>
    %422 = arith.divf %420, %421 : vector<8x128xf32>
    %423 = vector.extract_strided_slice %404 {offsets = [0, 256], sizes = [8, 128], strides = [1, 1]} : vector<8x384xf32> to vector<8x128xf32>
    %424 = vector.extract_strided_slice %406 {offsets = [0, 256], sizes = [8, 128], strides = [1, 1]} : vector<8x384xf32> to vector<8x128xf32>
    %425 = arith.addf %424, %300 : vector<8x128xf32>
    %426 = arith.mulf %414, %425 : vector<8x128xf32>
    %427 = arith.addf %423, %426 : vector<8x128xf32>
    %428 = math.tanh %427 : vector<8x128xf32>
    %cst_129 = arith.constant 1.000000e+00 : f32
    %429 = vector.broadcast %cst_129 : f32 to vector<8x128xf32>
    %430 = arith.subf %429, %422 : vector<8x128xf32>
    %431 = arith.mulf %430, %428 : vector<8x128xf32>
    %432 = arith.mulf %422, %400 : vector<8x128xf32>
    %433 = arith.addf %431, %432 : vector<8x128xf32>
    %c4_i32_130 = arith.constant 4 : i32
    %c8_i32_131 = arith.constant 8 : i32
    %434 = arith.muli %c4_i32_130, %c8_i32_131 : i32
    %435 = tpu.assume_multiple %434, 8 : i32
    %436 = arith.index_cast %435 : i32 to index
    %c0_132 = arith.constant 0 : index
    %437 = vector.load %arg12[%436, %c0_132] : memref<64x384xf32, #tpu.memory_space<vmem>>, vector<8x384xf32>
    %c0_133 = arith.constant 0 : index
    %c0_134 = arith.constant 0 : index
    %438 = vector.load %arg6[%c0_133, %c0_134] : memref<128x384xf32, #tpu.memory_space<vmem>>, vector<128x384xf32>
    %cst_135 = arith.constant dense<0.000000e+00> : vector<8x384xf32>
    %439 = tpu.matmul %433, %438, %cst_135 {dimension_numbers = #tpu.dot_dimension_numbers<[1], [0], [0], [1], [0, 0, 1, 1], [], []>} : vector<8x128xf32>, vector<128x384xf32>, vector<8x384xf32> -> vector<8x384xf32>
    %440 = vector.extract_strided_slice %437 {offsets = [0, 0], sizes = [8, 128], strides = [1, 1]} : vector<8x384xf32> to vector<8x128xf32>
    %441 = vector.extract_strided_slice %439 {offsets = [0, 0], sizes = [8, 128], strides = [1, 1]} : vector<8x384xf32> to vector<8x128xf32>
    %442 = arith.addf %440, %441 : vector<8x128xf32>
    %443 = arith.negf %442 : vector<8x128xf32>
    %444 = math.exp %443 : vector<8x128xf32>
    %cst_136 = arith.constant 1.000000e+00 : f32
    %445 = vector.broadcast %cst_136 : f32 to vector<8x128xf32>
    %446 = arith.addf %445, %444 : vector<8x128xf32>
    %447 = arith.divf %445, %446 : vector<8x128xf32>
    %448 = vector.extract_strided_slice %437 {offsets = [0, 128], sizes = [8, 128], strides = [1, 1]} : vector<8x384xf32> to vector<8x128xf32>
    %449 = vector.extract_strided_slice %439 {offsets = [0, 128], sizes = [8, 128], strides = [1, 1]} : vector<8x384xf32> to vector<8x128xf32>
    %450 = arith.addf %448, %449 : vector<8x128xf32>
    %451 = arith.negf %450 : vector<8x128xf32>
    %452 = math.exp %451 : vector<8x128xf32>
    %cst_137 = arith.constant 1.000000e+00 : f32
    %453 = vector.broadcast %cst_137 : f32 to vector<8x128xf32>
    %454 = arith.addf %453, %452 : vector<8x128xf32>
    %455 = arith.divf %453, %454 : vector<8x128xf32>
    %456 = vector.extract_strided_slice %437 {offsets = [0, 256], sizes = [8, 128], strides = [1, 1]} : vector<8x384xf32> to vector<8x128xf32>
    %457 = vector.extract_strided_slice %439 {offsets = [0, 256], sizes = [8, 128], strides = [1, 1]} : vector<8x384xf32> to vector<8x128xf32>
    %458 = arith.addf %457, %300 : vector<8x128xf32>
    %459 = arith.mulf %447, %458 : vector<8x128xf32>
    %460 = arith.addf %456, %459 : vector<8x128xf32>
    %461 = math.tanh %460 : vector<8x128xf32>
    %cst_138 = arith.constant 1.000000e+00 : f32
    %462 = vector.broadcast %cst_138 : f32 to vector<8x128xf32>
    %463 = arith.subf %462, %455 : vector<8x128xf32>
    %464 = arith.mulf %463, %461 : vector<8x128xf32>
    %465 = arith.mulf %455, %433 : vector<8x128xf32>
    %466 = arith.addf %464, %465 : vector<8x128xf32>
    %c5_i32_139 = arith.constant 5 : i32
    %c8_i32_140 = arith.constant 8 : i32
    %467 = arith.muli %c5_i32_139, %c8_i32_140 : i32
    %468 = tpu.assume_multiple %467, 8 : i32
    %469 = arith.index_cast %468 : i32 to index
    %c0_141 = arith.constant 0 : index
    %470 = vector.load %arg12[%469, %c0_141] : memref<64x384xf32, #tpu.memory_space<vmem>>, vector<8x384xf32>
    %c0_142 = arith.constant 0 : index
    %c0_143 = arith.constant 0 : index
    %471 = vector.load %arg6[%c0_142, %c0_143] : memref<128x384xf32, #tpu.memory_space<vmem>>, vector<128x384xf32>
    %cst_144 = arith.constant dense<0.000000e+00> : vector<8x384xf32>
    %472 = tpu.matmul %466, %471, %cst_144 {dimension_numbers = #tpu.dot_dimension_numbers<[1], [0], [0], [1], [0, 0, 1, 1], [], []>} : vector<8x128xf32>, vector<128x384xf32>, vector<8x384xf32> -> vector<8x384xf32>
    %473 = vector.extract_strided_slice %470 {offsets = [0, 0], sizes = [8, 128], strides = [1, 1]} : vector<8x384xf32> to vector<8x128xf32>
    %474 = vector.extract_strided_slice %472 {offsets = [0, 0], sizes = [8, 128], strides = [1, 1]} : vector<8x384xf32> to vector<8x128xf32>
    %475 = arith.addf %473, %474 : vector<8x128xf32>
    %476 = arith.negf %475 : vector<8x128xf32>
    %477 = math.exp %476 : vector<8x128xf32>
    %cst_145 = arith.constant 1.000000e+00 : f32
    %478 = vector.broadcast %cst_145 : f32 to vector<8x128xf32>
    %479 = arith.addf %478, %477 : vector<8x128xf32>
    %480 = arith.divf %478, %479 : vector<8x128xf32>
    %481 = vector.extract_strided_slice %470 {offsets = [0, 128], sizes = [8, 128], strides = [1, 1]} : vector<8x384xf32> to vector<8x128xf32>
    %482 = vector.extract_strided_slice %472 {offsets = [0, 128], sizes = [8, 128], strides = [1, 1]} : vector<8x384xf32> to vector<8x128xf32>
    %483 = arith.addf %481, %482 : vector<8x128xf32>
    %484 = arith.negf %483 : vector<8x128xf32>
    %485 = math.exp %484 : vector<8x128xf32>
    %cst_146 = arith.constant 1.000000e+00 : f32
    %486 = vector.broadcast %cst_146 : f32 to vector<8x128xf32>
    %487 = arith.addf %486, %485 : vector<8x128xf32>
    %488 = arith.divf %486, %487 : vector<8x128xf32>
    %489 = vector.extract_strided_slice %470 {offsets = [0, 256], sizes = [8, 128], strides = [1, 1]} : vector<8x384xf32> to vector<8x128xf32>
    %490 = vector.extract_strided_slice %472 {offsets = [0, 256], sizes = [8, 128], strides = [1, 1]} : vector<8x384xf32> to vector<8x128xf32>
    %491 = arith.addf %490, %300 : vector<8x128xf32>
    %492 = arith.mulf %480, %491 : vector<8x128xf32>
    %493 = arith.addf %489, %492 : vector<8x128xf32>
    %494 = math.tanh %493 : vector<8x128xf32>
    %cst_147 = arith.constant 1.000000e+00 : f32
    %495 = vector.broadcast %cst_147 : f32 to vector<8x128xf32>
    %496 = arith.subf %495, %488 : vector<8x128xf32>
    %497 = arith.mulf %496, %494 : vector<8x128xf32>
    %498 = arith.mulf %488, %466 : vector<8x128xf32>
    %499 = arith.addf %497, %498 : vector<8x128xf32>
    %c6_i32_148 = arith.constant 6 : i32
    %c8_i32_149 = arith.constant 8 : i32
    %500 = arith.muli %c6_i32_148, %c8_i32_149 : i32
    %501 = tpu.assume_multiple %500, 8 : i32
    %502 = arith.index_cast %501 : i32 to index
    %c0_150 = arith.constant 0 : index
    %503 = vector.load %arg12[%502, %c0_150] : memref<64x384xf32, #tpu.memory_space<vmem>>, vector<8x384xf32>
    %c0_151 = arith.constant 0 : index
    %c0_152 = arith.constant 0 : index
    %504 = vector.load %arg6[%c0_151, %c0_152] : memref<128x384xf32, #tpu.memory_space<vmem>>, vector<128x384xf32>
    %cst_153 = arith.constant dense<0.000000e+00> : vector<8x384xf32>
    %505 = tpu.matmul %499, %504, %cst_153 {dimension_numbers = #tpu.dot_dimension_numbers<[1], [0], [0], [1], [0, 0, 1, 1], [], []>} : vector<8x128xf32>, vector<128x384xf32>, vector<8x384xf32> -> vector<8x384xf32>
    %506 = vector.extract_strided_slice %503 {offsets = [0, 0], sizes = [8, 128], strides = [1, 1]} : vector<8x384xf32> to vector<8x128xf32>
    %507 = vector.extract_strided_slice %505 {offsets = [0, 0], sizes = [8, 128], strides = [1, 1]} : vector<8x384xf32> to vector<8x128xf32>
    %508 = arith.addf %506, %507 : vector<8x128xf32>
    %509 = arith.negf %508 : vector<8x128xf32>
    %510 = math.exp %509 : vector<8x128xf32>
    %cst_154 = arith.constant 1.000000e+00 : f32
    %511 = vector.broadcast %cst_154 : f32 to vector<8x128xf32>
    %512 = arith.addf %511, %510 : vector<8x128xf32>
    %513 = arith.divf %511, %512 : vector<8x128xf32>
    %514 = vector.extract_strided_slice %503 {offsets = [0, 128], sizes = [8, 128], strides = [1, 1]} : vector<8x384xf32> to vector<8x128xf32>
    %515 = vector.extract_strided_slice %505 {offsets = [0, 128], sizes = [8, 128], strides = [1, 1]} : vector<8x384xf32> to vector<8x128xf32>
    %516 = arith.addf %514, %515 : vector<8x128xf32>
    %517 = arith.negf %516 : vector<8x128xf32>
    %518 = math.exp %517 : vector<8x128xf32>
    %cst_155 = arith.constant 1.000000e+00 : f32
    %519 = vector.broadcast %cst_155 : f32 to vector<8x128xf32>
    %520 = arith.addf %519, %518 : vector<8x128xf32>
    %521 = arith.divf %519, %520 : vector<8x128xf32>
    %522 = vector.extract_strided_slice %503 {offsets = [0, 256], sizes = [8, 128], strides = [1, 1]} : vector<8x384xf32> to vector<8x128xf32>
    %523 = vector.extract_strided_slice %505 {offsets = [0, 256], sizes = [8, 128], strides = [1, 1]} : vector<8x384xf32> to vector<8x128xf32>
    %524 = arith.addf %523, %300 : vector<8x128xf32>
    %525 = arith.mulf %513, %524 : vector<8x128xf32>
    %526 = arith.addf %522, %525 : vector<8x128xf32>
    %527 = math.tanh %526 : vector<8x128xf32>
    %cst_156 = arith.constant 1.000000e+00 : f32
    %528 = vector.broadcast %cst_156 : f32 to vector<8x128xf32>
    %529 = arith.subf %528, %521 : vector<8x128xf32>
    %530 = arith.mulf %529, %527 : vector<8x128xf32>
    %531 = arith.mulf %521, %499 : vector<8x128xf32>
    %532 = arith.addf %530, %531 : vector<8x128xf32>
    %c7_i32_157 = arith.constant 7 : i32
    %c8_i32_158 = arith.constant 8 : i32
    %533 = arith.muli %c7_i32_157, %c8_i32_158 : i32
    %534 = tpu.assume_multiple %533, 8 : i32
    %535 = arith.index_cast %534 : i32 to index
    %c0_159 = arith.constant 0 : index
    %536 = vector.load %arg12[%535, %c0_159] : memref<64x384xf32, #tpu.memory_space<vmem>>, vector<8x384xf32>
    %c0_160 = arith.constant 0 : index
    %c0_161 = arith.constant 0 : index
    %537 = vector.load %arg6[%c0_160, %c0_161] : memref<128x384xf32, #tpu.memory_space<vmem>>, vector<128x384xf32>
    %cst_162 = arith.constant dense<0.000000e+00> : vector<8x384xf32>
    %538 = tpu.matmul %532, %537, %cst_162 {dimension_numbers = #tpu.dot_dimension_numbers<[1], [0], [0], [1], [0, 0, 1, 1], [], []>} : vector<8x128xf32>, vector<128x384xf32>, vector<8x384xf32> -> vector<8x384xf32>
    %539 = vector.extract_strided_slice %536 {offsets = [0, 0], sizes = [8, 128], strides = [1, 1]} : vector<8x384xf32> to vector<8x128xf32>
    %540 = vector.extract_strided_slice %538 {offsets = [0, 0], sizes = [8, 128], strides = [1, 1]} : vector<8x384xf32> to vector<8x128xf32>
    %541 = arith.addf %539, %540 : vector<8x128xf32>
    %542 = arith.negf %541 : vector<8x128xf32>
    %543 = math.exp %542 : vector<8x128xf32>
    %cst_163 = arith.constant 1.000000e+00 : f32
    %544 = vector.broadcast %cst_163 : f32 to vector<8x128xf32>
    %545 = arith.addf %544, %543 : vector<8x128xf32>
    %546 = arith.divf %544, %545 : vector<8x128xf32>
    %547 = vector.extract_strided_slice %536 {offsets = [0, 128], sizes = [8, 128], strides = [1, 1]} : vector<8x384xf32> to vector<8x128xf32>
    %548 = vector.extract_strided_slice %538 {offsets = [0, 128], sizes = [8, 128], strides = [1, 1]} : vector<8x384xf32> to vector<8x128xf32>
    %549 = arith.addf %547, %548 : vector<8x128xf32>
    %550 = arith.negf %549 : vector<8x128xf32>
    %551 = math.exp %550 : vector<8x128xf32>
    %cst_164 = arith.constant 1.000000e+00 : f32
    %552 = vector.broadcast %cst_164 : f32 to vector<8x128xf32>
    %553 = arith.addf %552, %551 : vector<8x128xf32>
    %554 = arith.divf %552, %553 : vector<8x128xf32>
    %555 = vector.extract_strided_slice %536 {offsets = [0, 256], sizes = [8, 128], strides = [1, 1]} : vector<8x384xf32> to vector<8x128xf32>
    %556 = vector.extract_strided_slice %538 {offsets = [0, 256], sizes = [8, 128], strides = [1, 1]} : vector<8x384xf32> to vector<8x128xf32>
    %557 = arith.addf %556, %300 : vector<8x128xf32>
    %558 = arith.mulf %546, %557 : vector<8x128xf32>
    %559 = arith.addf %555, %558 : vector<8x128xf32>
    %560 = math.tanh %559 : vector<8x128xf32>
    %cst_165 = arith.constant 1.000000e+00 : f32
    %561 = vector.broadcast %cst_165 : f32 to vector<8x128xf32>
    %562 = arith.subf %561, %554 : vector<8x128xf32>
    %563 = arith.mulf %562, %560 : vector<8x128xf32>
    %564 = arith.mulf %554, %532 : vector<8x128xf32>
    %565 = arith.addf %563, %564 : vector<8x128xf32>
    %c8_i32_166 = arith.constant 8 : i32
    %c0_167 = arith.constant 0 : index
    %c0_168 = arith.constant 0 : index
    %566 = vector.load %arg9[%c0_167, %c0_168] : memref<128x128xf32, #tpu.memory_space<vmem>>, vector<128x128xf32>
    %cst_169 = arith.constant dense<0.000000e+00> : vector<8x128xf32>
    %567 = tpu.matmul %565, %566, %cst_169 {dimension_numbers = #tpu.dot_dimension_numbers<[1], [0], [0], [1], [0, 0, 1, 1], [], []>} : vector<8x128xf32>, vector<128x128xf32>, vector<8x128xf32> -> vector<8x128xf32>
    %c0_170 = arith.constant 0 : index
    %c0_171 = arith.constant 0 : index
    %568 = vector.load %arg10[%c0_170, %c0_171] : memref<1x128xf32, #tpu.memory_space<vmem>>, vector<1x128xf32>
    %569 = vector.broadcast %568 : vector<1x128xf32> to vector<8x128xf32>
    %570 = arith.addf %567, %569 : vector<8x128xf32>
    %c0_172 = arith.constant 0 : index
    %c0_173 = arith.constant 0 : index
    %571 = vector.load %arg11[%c0_172, %c0_173] : memref<8x128xf32, #tpu.memory_space<vmem>>, vector<8x128xf32>
    tpu.vector_store %arg11[%c0_172, %c0_173], %570 {strides = array<i32>} : memref<8x128xf32, #tpu.memory_space<vmem>>, vector<8x128xf32>,
    return
  }
}

</mosaic_0001>

<bundles_post_ra>
// kernel: gru_forward.1
= control target key start
LH: loop header
LB: loop body
LE: loop exit
PB: predicated region body
PF: predicated region fallthrough
CT: control target
= control target key end

     0   :  { %16 = vsyncpa [#allocation5], 0  ;;  %s7500_s0 = inlined_call_operand.vmem [shape: f32[64,16], index: 0, kind: input, shape index: {}]   ;;  %s7501_s1 = inlined_call_operand.hbm [shape: f32[16,384], index: 1, kind: input, shape index: {}]   ;;  %s7502_s2 = inlined_call_operand.hbm [shape: f32[128,384], index: 2, kind: input, shape index: {}]   ;;  %s7503_s3 = inlined_call_operand.vmem [shape: f32[1,384], index: 3, kind: input, shape index: {}]   ;;  %s7504_s4 = inlined_call_operand.vmem [shape: f32[1,128], index: 4, kind: input, shape index: {}]   ;;  %s7505_s5 = inlined_call_operand.hbm [shape: f32[128,384], index: 5, kind: input, shape index: {}]   ;;  %s7506_s6 = inlined_call_operand.hbm [shape: f32[128,384], index: 6, kind: input, shape index: {}]   ;;  %s7507_s7 = inlined_call_operand.vmem [shape: f32[1,384], index: 7, kind: input, shape index: {}]   ;;  %s7508_s8 = inlined_call_operand.vmem [shape: f32[1,128], index: 8, kind: input, shape index: {}]   ;;  %s7509_s9 = inlined_call_operand.vmem [shape: f32[128,128], index: 9, kind: input, shape index: {}]   ;;  %s7510_s10 = inlined_call_operand.vmem [shape: f32[1,128], index: 10, kind: input, shape index: {}]   ;;  %s7511_s11 = inlined_call_operand.vmem [shape: f32[8,128], index: 11, kind: output, shape index: {}]  }
   0x1   :  { %17 = vsyncpa [#allocation7], 0 }
   0x2   :  { %18 = vsyncpa [#allocation10], 0  ;;  %s6304_s17 = smov [#allocation6]   ;;  %s6305_s19 = smov [#allocation4]  }
   0x3   :  { %s38_s18 = sshll.u32 %s6304_s17, 4  ;;  %s26_s20 = sshll.u32 %s6305_s19, 4  ;;  %s39_s18 = int_to_ptr.vmem [resolvable:$true] %s38_s18  ;;  %s6373_s20 = int_to_ptr.vmem [resolvable:$true] %s26_s20 }
   0x4   :  { %s6210_s23 = scalar_lea.hbm %s7502_s2, 6144 }
   0x5   :  { %p6211_p0 = scmp.ne.s32.totalorder %s7502_s2, %s6210_s23  ;;  %p6214_p1 = scmp.lt.u32.totalorder %s6210_s23, %s7502_s2 }
   0x7   :  { %p6216_p2 = pnand %p6214_p1, %p6211_p0 }
   0x9   :  { %6219 = shalt.err (!%p6216_p2)
}
   0xa   :  { %s6220_s28 = scalar_lea.vmem %s39_s18, 6144  ;;  %p6225_p4 = scmp.lt.s32.totalorder %s39_s18, %s39_s18 }
   0xb   :  { %p6221_p3 = scmp.ne.s32.totalorder %s39_s18, %s6220_s28  ;;  %p6226_p5 = scmp.lt.s32.totalorder %s6220_s28, %s6220_s28 }
   0xd   :  { %p6227_p6 = por %p6226_p5, %p6225_p4 }
   0xf   :  { %p6228_p7 = pnand %p6227_p6, %p6221_p3 }
  0x11   :  { %6231 = shalt.err (!%p6228_p7)
}
  0x12   :  { %s6306_s29 = smov 384   ;;  %s6307_s30 = smov 24  }
  0x13   :  { %44 = dma.hbm_to_vmem [thread:$0]  %s7502_s2, 6144, %s39_s18, [#allocation7], %s6306_s29, %s6306_s29, %s6307_s30  }
  0x14   :  { %s6232_s16 = scalar_lea.hbm %s7501_s1, 768 }
  0x15   :  { %p6233_p8 = scmp.ne.s32.totalorder %s7501_s1, %s6232_s16  ;;  %p6236_p9 = scmp.lt.u32.totalorder %s6232_s16, %s7501_s1 }
  0x17   :  { %p6238_p10 = pnand %p6236_p9, %p6233_p8 }
  0x19   :  { %6241 = shalt.err (!%p6238_p10)
}
  0x1a   :  { %s6242_s23 = scalar_lea.vmem %s6373_s20, 768  ;;  %p6247_p12 = scmp.lt.s32.totalorder %s6373_s20, %s6373_s20 }
  0x1b   :  { %p6243_p11 = scmp.ne.s32.totalorder %s6373_s20, %s6242_s23  ;;  %p6248_p13 = scmp.lt.s32.totalorder %s6242_s23, %s6242_s23 }
  0x1d   :  { %p6249_p0 = por %p6248_p13, %p6247_p12 }
  0x1f   :  { %p6250_p1 = pnand %p6249_p0, %p6243_p11 }
  0x21   :  { %6253 = shalt.err (!%p6250_p1)
}
  0x22   :  { %32 = dma.hbm_to_vmem [thread:$0]  %s7501_s1, 768, %s6373_s20, [#allocation5], %s6306_s29, %s6306_s29, %s6307_s30  }
  0x23   :  { %s6308_s24 = smov [#allocation8]   ;;  %s6309_s26 = smov [#allocation9]  }
  0x24   :  { %s54_s25 = sshll.u32 %s6308_s24, 4  ;;  %s66_s27 = sshll.u32 %s6309_s26, 4  ;;  %s55_s25 = int_to_ptr.vmem [resolvable:$true] %s54_s25  ;;  %s6410_s27 = int_to_ptr.vmem [resolvable:$true] %s66_s27 }
  0x25   :  { %s6254_s13 = scalar_lea.hbm %s7505_s5, 6144 }
  0x26   :  { %p6255_p2 = scmp.ne.s32.totalorder %s7505_s5, %s6254_s13  ;;  %p6258_p3 = scmp.lt.u32.totalorder %s6254_s13, %s7505_s5 }
  0x28   :  { %p6260_p4 = pnand %p6258_p3, %p6255_p2 }
  0x2a   :  { %6263 = shalt.err (!%p6260_p4)
}
  0x2b   :  { %s6264_s1 = scalar_lea.vmem %s55_s25, 6144  ;;  %p6269_p6 = scmp.lt.s32.totalorder %s55_s25, %s55_s25 }
  0x2c   :  { %p6265_p5 = scmp.ne.s32.totalorder %s55_s25, %s6264_s1  ;;  %p6270_p7 = scmp.lt.s32.totalorder %s6264_s1, %s6264_s1 }
  0x2e   :  { %p6271_p8 = por %p6270_p7, %p6269_p6 }
  0x30   :  { %p6272_p9 = pnand %p6271_p8, %p6265_p5 }
  0x32   :  { %6275 = shalt.err (!%p6272_p9)
}
  0x33   :  { %60 = dma.hbm_to_vmem [thread:$0]  %s7505_s5, 6144, %s55_s25, [#allocation7], %s6306_s29, %s6306_s29, %s6307_s30  }
  0x34   :  { %s6276_s23 = scalar_lea.hbm %s7506_s6, 6144 }
  0x35   :  { %p6277_p10 = scmp.ne.s32.totalorder %s7506_s6, %s6276_s23  ;;  %p6280_p11 = scmp.lt.u32.totalorder %s6276_s23, %s7506_s6 }
  0x37   :  { %p6282_p12 = pnand %p6280_p11, %p6277_p10 }
  0x39   :  { %6285 = shalt.err (!%p6282_p12)
}
  0x3a   :  { %s6286_s28 = scalar_lea.vmem %s6410_s27, 6144  ;;  %p6291_p0 = scmp.lt.s32.totalorder %s6410_s27, %s6410_s27 }
  0x3b   :  { %p6287_p13 = scmp.ne.s32.totalorder %s6410_s27, %s6286_s28  ;;  %p6292_p1 = scmp.lt.s32.totalorder %s6286_s28, %s6286_s28 }
  0x3d   :  { %p6293_p2 = por %p6292_p1, %p6291_p0 }
  0x3f   :  { %p6294_p3 = pnand %p6293_p2, %p6287_p13 }
  0x41   :  { %6297 = shalt.err (!%p6294_p3)
}
  0x42   :  { %72 = dma.hbm_to_vmem [thread:$0]  %s7506_s6, 6144, %s6410_s27, [#allocation10], %s6306_s29, %s6306_s29, %s6307_s30  }
  0x43   :  { %6298 = dma.done.wait [#allocation5], 768  }
  0x44   :  { %6299 = vsyncadd [#allocation5], 4294966528 }
  0x45   :  { %6300 = dma.done.wait [#allocation7], 12288  }
  0x46   :  { %6301 = vsyncadd [#allocation7], 4294955008 }
  0x47   :  { %6302 = dma.done.wait [#allocation10], 6144  }
  0x48   :  { %6303 = vsyncadd [#allocation10], 4294961152  ;;  %v6310_v0 = vmov 0.0   ;;  %v102_v1 = vld [vmem:[#allocation4 + $0x8] sm:$0xff]  ;;  %v105_v2 = vld [vmem:[#allocation4 + $0x20] sm:$0xff]  ;;  %vm124_vm0 = vcmask 130048  }
  0x49   :  { %213 = vmatprep.mubr.f32.mxu0 %v6310_v0  ;;  %v101_v3 = vld [vmem:[#allocation4] sm:$0xff]  ;;  %v4984_v4 = vpack.c.bf16 %v105_v2, %v102_v1  ;;  %v104_v5 = vld [vmem:[#allocation4 + $0x18] sm:$0xff]  ;;  %v408_v9 = vld [vmem:[#allocation6 + $0x20] sm:$0xff]  ;;  %v6311_v48 = vmov 0.0|0.0   ;;  %vm6312_vm1 = vmmov 0  }
  0x4a   :  { %v93_v6 = vld [vmem:[%s7500_s0] sm:$0xff]  ;;  %v405_v7 = vld [vmem:[#allocation6 + $0x8] sm:$0xff]  ;;  %v4986_v8 = vpack.c.bf16 %v104_v5, %v101_v3  ;;  %v404_v10 = vld [vmem:[#allocation6] sm:$0xff] }
  0x4b   :  { %v407_v11 = vld [vmem:[#allocation6 + $0x18] sm:$0xff]  ;;  %4333 = vmatprep.mubr.msk.f32.mxu1 %vm124_vm0, %v93_v6  ;;  %4985 = vmatprep.subr.bf16.mxu0 %v4984_v4  ;;  %v6452_v12 = vpack.c.bf16 %v408_v9, %v405_v7  ;;  %v414_v14 = vld [vmem:[#allocation6 + $0x50] sm:$0xff]  ;;  %v413_v18 = vld [vmem:[#allocation6 + $0x48] sm:$0xff] }
  0x4c   :  { %v411_v13 = vld [vmem:[#allocation6 + $0x38] sm:$0xff]  ;;  %4987 = vmatpush1.bf16.msra.mxu0 %v4986_v8  ;;  %v6454_v15 = vpack.c.bf16 %v407_v11, %v404_v10  ;;  %v410_v17 = vld [vmem:[#allocation6 + $0x30] sm:$0xff]  ;;  %v417_v19 = vld [vmem:[#allocation6 + $0x68] sm:$0xff] }
  0x4d   :  { %4993 = vmatprep.subr.bf16.mxu0 %v6452_v12  ;;  %v6457_v16 = vpack.c.bf16 %v414_v14, %v411_v13  ;;  %v420_v20 = vld [vmem:[#allocation6 + $0x80] sm:$0xff]  ;;  %v94_v21 = vld [vmem:[%s7500_s0 + $0x8] sm:$0xff]  ;;  %v6465_v22 = vpack.c.bf16 %v413_v18, %v410_v17  ;;  %v426_v27 = vld [vmem:[#allocation6 + $0xb0] sm:$0xff] }
  0x4e   :  { %v6468_v23 = vpack.c.bf16 %v420_v20, %v417_v19  ;;  %v416_v24 = vld [vmem:[#allocation6 + $0x60] sm:$0xff]  ;;  %v419_v25 = vld [vmem:[#allocation6 + $0x78] sm:$0xff]  ;;  %v422_v34 = vld [vmem:[#allocation6 + $0x90] sm:$0xff] }
  0x4f   :  { %3955 = vmatmul.mubr.msk.f32.vlgmr.msra.gmra.mrb[0].mxu0 %vm124_vm0, %v93_v6  ;;  %v423_v26 = vld [vmem:[#allocation6 + $0x98] sm:$0xff]  ;;  %v103_v28 = vld [vmem:[#allocation4 + $0x10] sm:$0xff]  ;;  %v6476_v31 = vpack.c.bf16 %v419_v25, %v416_v24  ;;  %v425_v35 = vld [vmem:[#allocation6 + $0xa8] sm:$0xff] }
  0x50   :  { %4995 = vmatpush1.bf16.msra.mxu0 %v6454_v15  ;;  %219 = vmatprep.mubr.f32.mxu0 %v6310_v0  ;;  %v106_v29 = vld [vmem:[#allocation4 + $0x28] sm:$0xff]  ;;  %v95_v30 = vld [vmem:[%s7500_s0 + $0x10] sm:$0xff]  ;;  %v6479_v33 = vpack.c.bf16 %v426_v27, %v423_v26  ;;  %v406_v36 = vld [vmem:[#allocation6 + $0x10] sm:$0xff]  ;;  %v6489_v42 = vpack.c.bf16 %v425_v35, %v422_v34  ;;  %v109_v35 = vlaneseq }
  0x51   :  { %4997 = vmatprep.subr.bf16.mxu0 %v6457_v16  ;;  %v4988_v32 = vpack.c.bf16 %v106_v29, %v103_v28  ;;  %v429_v37 = vld [vmem:[#allocation6 + $0xc8] sm:$0xff]  ;;  %v432_v38 = vld [vmem:[#allocation6 + $0xe0] sm:$0xff]  ;;  %v415_v44 = vld [vmem:[#allocation6 + $0x58] sm:$0xff] }
  0x52   :  { %v409_v39 = vld [vmem:[#allocation6 + $0x28] sm:$0xff]  ;;  %v412_v43 = vld [vmem:[#allocation6 + $0x40] sm:$0xff]  ;;  %v6492_v45 = vpack.c.bf16 %v432_v38, %v429_v37  ;;  %v431_v47 = vld [vmem:[#allocation6 + $0xd8] sm:$0xff] }
  0x53   :  { %3956 = vmatmul.mubr.msk.f32.gmra.mrb[2].mxu0 %vm124_vm0, %v94_v21  ;;  %4989 = vmatprep.subr.bf16.mxu1 %v4988_v32  ;;  %v6482_v40 = vpack.c.bf16 %v409_v39, %v406_v36  ;;  %v96_v41 = vld [vmem:[%s7500_s0 + $0x18] sm:$0xff]  ;;  %v428_v46 = vld [vmem:[#allocation6 + $0xc0] sm:$0xff]  ;;  %v435_v49 = vld [vmem:[#allocation6 + $0xf8] sm:$0xff]  ;;  %v6498_v51 = vpack.c.bf16 %v415_v44, %v412_v43  ;;  %v6617_v36 = vshrl.u32 %v109_v35, 7 }
  0x54   :  { %4999 = vmatpush1.bf16.msra.mxu0 %v6465_v22  ;;  %225 = vmatprep.mubr.f32.mxu0 %v6310_v0  ;;  %v438_v50 = vld [vmem:[#allocation6 + $0x110] sm:$0xff]  ;;  %v6505_v53 = vpack.c.bf16 %v431_v47, %v428_v46  ;;  %v421_v55 = vld [vmem:[#allocation6 + $0x88] sm:$0xff]  ;;  %v444_v60 = vld [vmem:[#allocation6 + $0x140] sm:$0xff] }
  0x55   :  { %5001 = vmatprep.subr.bf16.mxu0 %v6468_v23  ;;  %4991 = vmatpush3.bf16.msra.mxu1 %v4988_v32  ;;  %v97_v52 = vld [vmem:[%s7500_s0 + $0x20] sm:$0xff]  ;;  %v6508_v56 = vpack.c.bf16 %v438_v50, %v435_v49  ;;  %v437_v58 = vld [vmem:[#allocation6 + $0x108] sm:$0xff]  ;;  %v98_v62 = vld [vmem:[%s7500_s0 + $0x28] sm:$0xff]  ;;  %v119_v37 = vsub.s32 2, %v6617_v36 }
  0x56   :  { %5024 = vmatprep.subr.bf16.mxu1 %v6311_v48  ;;  %v418_v54 = vld [vmem:[#allocation6 + $0x70] sm:$0xff]  ;;  %v441_v59 = vld [vmem:[#allocation6 + $0x128] sm:$0xff]  ;;  %v424_v1 = vld [vmem:[#allocation6 + $0xa0] sm:$0xff] }
  0x57   :  { %3957 = vmatmul.mubr.msk.f32.gmra.mrb[4].mxu0 %vm124_vm0, %v95_v30  ;;  %v434_v57 = vld [vmem:[#allocation6 + $0xf0] sm:$0xff]  ;;  %v6514_v61 = vpack.c.bf16 %v421_v55, %v418_v54  ;;  %v427_v2 = vld [vmem:[#allocation6 + $0xb8] sm:$0xff]  ;;  %v6524_v3 = vpack.c.bf16 %v444_v60, %v441_v59  ;;  %v440_v4 = vld [vmem:[#allocation6 + $0x120] sm:$0xff]  ;;  %v115_v55 = vsub.s32 1, %v6617_v36 }
  0x58   :  { %5003 = vmatpush1.bf16.msra.mxu0 %v6476_v31  ;;  %231 = vmatprep.mubr.f32.mxu0 %v6310_v0  ;;  %v6521_v63 = vpack.c.bf16 %v437_v58, %v434_v57  ;;  %v443_v5 = vld [vmem:[#allocation6 + $0x138] sm:$0xff]  ;;  %v450_v7 = vld [vmem:[#allocation6 + $0x170] sm:$0xff]  ;;  %v6530_v8 = vpack.c.bf16 %v427_v2, %v424_v1  ;;  %v99_v9 = vld [vmem:[%s7500_s0 + $0x30] sm:$0xff] }
  0x59   :  { %5005 = vmatprep.subr.bf16.mxu0 %v6479_v33  ;;  %4334 = vmatmul.mubr.msk.f32.vlgmr.msra.gmra.mrb[0].mxu1 %vm124_vm0, %v94_v21  ;;  %v447_v6 = vld [vmem:[#allocation6 + $0x158] sm:$0xff]  ;;  %v6537_v10 = vpack.c.bf16 %v443_v5, %v440_v4  ;;  %v430_v11 = vld [vmem:[#allocation6 + $0xd0] sm:$0xff]  ;;  %v433_v13 = vld [vmem:[#allocation6 + $0xe8] sm:$0xff] }
  0x5a   :  { %5026 = vmatpush3.bf16.msra.mxu1 %v6482_v40  ;;  %4336 = vmatprep.mubr.msk.f32.mxu1 %vm124_vm0, %v95_v30  ;;  %v6540_v14 = vpack.c.bf16 %v450_v7, %v447_v6  ;;  %v446_v17 = vld [vmem:[#allocation6 + $0x150] sm:$0xff]  ;;  %v449_v18 = vld [vmem:[#allocation6 + $0x168] sm:$0xff]  ;;  %v6546_v19 = vpack.c.bf16 %v433_v13, %v430_v11  ;;  %v436_v24 = vld [vmem:[#allocation6 + $0x100] sm:$0xff] }
  0x5b   :  { %3958 = vmatmul.mubr.msk.f32.gmra.mrb[6].mxu0 %vm124_vm0, %v96_v41  ;;  %5027 = vmatprep.subr.bf16.mxu1 %v6311_v48  ;;  %v100_v20 = vld [vmem:[%s7500_s0 + $0x38] sm:$0xff]  ;;  %v6553_v21 = vpack.c.bf16 %v449_v18, %v446_v17  ;;  %v439_v25 = vld [vmem:[#allocation6 + $0x118] sm:$0xff]  ;;  %v442_v27 = vld [vmem:[#allocation6 + $0x130] sm:$0xff] }
  0x5c   :  { %5007 = vmatpush1.bf16.msra.mxu0 %v6489_v42  ;;  %237 = vmatprep.mubr.f32.mxu0 %v6310_v0  ;;  %v6560_v26 = vpack.c.bf16 %v439_v25, %v436_v24  ;;  %v445_v28 = vld [vmem:[#allocation6 + $0x148] sm:$0xff]  ;;  %v448_v30 = vld [vmem:[#allocation6 + $0x160] sm:$0xff]  ;;  %v451_v32 = vld [vmem:[#allocation6 + $0x178] sm:$0xff] }
  0x5d   :  { %5009 = vmatprep.subr.bf16.mxu0 %v6492_v45  ;;  %4337 = vmatmul.mubr.msk.f32.gmra.mrb[2].mxu1 %vm124_vm0, %v96_v41  ;;  %v6570_v29 = vpack.c.bf16 %v445_v28, %v442_v27  ;;  %v6579_v34 = vpack.c.bf16 %v451_v32, %v448_v30  ;;  %v107_v38 = vld [vmem:[%s7503_s3] sm:$0x7] }
  0x5e   :  { %5029 = vmatpush3.bf16.msra.mxu1 %v6498_v51  ;;  %4339 = vmatprep.mubr.msk.f32.mxu1 %vm124_vm0, %v97_v52  ;;  %v120_v39 = vrot.slane %v107_v38, %v119_v37  ;;  %v6643_v2 = vrot.slane %v107_v38, %v115_v55  ;;  %v6654_v28 = vld [vmem:[%s7504_s4] ss:$0 sm:$0xff] }
  0x5f   :  { %3959 = vmatmul.mubr.msk.f32.gmra.mrb[8].mxu0 %vm124_vm0, %v97_v52  ;;  %5030 = vmatprep.subr.bf16.mxu1 %v6311_v48  ;;  %v111_v52 = vsub.s32 0, %v6617_v36 }
  0x60   :  { %5011 = vmatpush1.bf16.msra.mxu0 %v6505_v53  ;;  %243 = vmatprep.mubr.f32.mxu0 %v6310_v0 }
  0x61   :  { %5013 = vmatprep.subr.bf16.mxu0 %v6508_v56  ;;  %4340 = vmatmul.mubr.msk.f32.gmra.mrb[4].mxu1 %vm124_vm0, %v98_v62  ;;  %v6637_v59 = vrot.slane %v107_v38, %v111_v52 }
  0x62   :  { %5032 = vmatpush3.bf16.msra.mxu1 %v6514_v61  ;;  %4342 = vmatprep.mubr.msk.f32.mxu1 %vm124_vm0, %v99_v9 }
  0x63   :  { %3960 = vmatmul.mubr.msk.f32.gmra.mrb[10].mxu0 %vm124_vm0, %v98_v62  ;;  %5033 = vmatprep.subr.bf16.mxu1 %v6311_v48 }
  0x64   :  { %5015 = vmatpush1.bf16.msra.mxu0 %v6521_v63  ;;  %249 = vmatprep.mubr.f32.mxu0 %v6310_v0 }
  0x65   :  { %5017 = vmatprep.subr.bf16.mxu0 %v6524_v3  ;;  %4343 = vmatmul.mubr.msk.f32.gmra.mrb[6].mxu1 %vm124_vm0, %v100_v20 }
  0x66   :  { %5035 = vmatpush3.bf16.msra.mxu1 %v6530_v8  ;;  %4377 = vmatprep.mubr.msk.f32.mxu1 %vm6312_vm1, %v6310_v0 }
  0x67   :  { %3961 = vmatmul.mubr.msk.f32.gmra.mrb[12].mxu0 %vm124_vm0, %v99_v9  ;;  %5036 = vmatprep.subr.bf16.mxu1 %v6311_v48 }
  0x68   :  { %5019 = vmatpush1.bf16.msra.mxu0 %v6537_v10  ;;  %255 = vmatprep.mubr.f32.mxu0 %v6310_v0 }
  0x69   :  { %5021 = vmatprep.subr.bf16.mxu0 %v6540_v14 }
  0x6a   :  { %5038 = vmatpush3.bf16.msra.mxu1 %v6546_v19 }
  0x6b   :  { %3962 = vmatmul.mubr.msk.f32.gmra.mrb[14].mxu0 %vm124_vm0, %v100_v20  ;;  %5039 = vmatprep.subr.bf16.mxu1 %v6311_v48 }
  0x6c   :  { %5023 = vmatpush1.bf16.msra.mxu0 %v6553_v21  ;;  %516 = vmatprep.mubr.f32.mxu0 %v6310_v0 }
  0x6d   :  { %5049 = vmatprep.subr.bf16.mxu0 %v6452_v12 }
  0x6e   :  { %5041 = vmatpush3.bf16.msra.mxu1 %v6560_v26 }
  0x6f   :  { %517 = vmatmul.mubr.f32.vlgmr.msra.gmra.mrb[0].mxu0 %v6310_v0  ;;  %5042 = vmatprep.subr.bf16.mxu1 %v6311_v48 }
  0x70   :  { %5051 = vmatpush1.bf16.msra.mxu0 %v6454_v15  ;;  %734 = vmatprep.mubr.f32.mxu0 %v6310_v0 }
  0x71   :  { %5053 = vmatprep.subr.bf16.mxu0 %v6457_v16 }
  0x72   :  { %5044 = vmatpush3.bf16.msra.mxu1 %v6570_v29 }
  0x73   :  { %5045 = vmatprep.subr.bf16.mxu1 %v6311_v48 }
  0x74   :  { %5055 = vmatpush1.bf16.msra.mxu0 %v6465_v22 }
  0x75   :  { %5057 = vmatprep.subr.bf16.mxu0 %v6468_v23 }
  0x76   :  { %5047 = vmatpush3.bf16.msra.mxu1 %v6579_v34 }
  0x77   :  { %5080 = vmatprep.subr.bf16.mxu1 %v6311_v48 }
  0x78   :  { %5059 = vmatpush1.bf16.msra.mxu0 %v6476_v31 }
  0x79   :  { %4378 = vmatmul.mubr.f32.vlgmr.msra.gmra.mrb[8].mxu1 %v6310_v0  ;;  %5061 = vmatprep.subr.bf16.mxu0 %v6479_v33 }
  0x7a   :  { %5082 = vmatpush3.bf16.msra.mxu1 %v6482_v40  ;;  %4412 = vmatprep.mubr.msk.f32.mxu1 %vm6312_vm1, %v6310_v0 }
  0x7b   :  { %5083 = vmatprep.subr.bf16.mxu1 %v6311_v48 }
  0x7c   :  { %5063 = vmatpush1.bf16.msra.mxu0 %v6489_v42 }
  0x7d   :  { %5065 = vmatprep.subr.bf16.mxu0 %v6492_v45 }
  0x7e   :  { %5085 = vmatpush3.bf16.msra.mxu1 %v6498_v51 }
  0x7f   :  { %5086 = vmatprep.subr.bf16.mxu1 %v6311_v48 }
  0x80   :  { %5067 = vmatpush1.bf16.msra.mxu0 %v6505_v53 }
  0x81   :  { %5069 = vmatprep.subr.bf16.mxu0 %v6508_v56 }
  0x82   :  { %5088 = vmatpush3.bf16.msra.mxu1 %v6514_v61 }
  0x83   :  { %5089 = vmatprep.subr.bf16.mxu1 %v6311_v48 }
  0x84   :  { %5071 = vmatpush1.bf16.msra.mxu0 %v6521_v63 }
  0x85   :  { %5073 = vmatprep.subr.bf16.mxu0 %v6524_v3 }
  0x86   :  { %5091 = vmatpush3.bf16.msra.mxu1 %v6530_v8 }
  0x87   :  { %5092 = vmatprep.subr.bf16.mxu1 %v6311_v48 }
  0x88   :  { %5075 = vmatpush1.bf16.msra.mxu0 %v6537_v10 }
  0x89   :  { %5077 = vmatprep.subr.bf16.mxu0 %v6540_v14 }
  0x8a   :  { %5094 = vmatpush3.bf16.msra.mxu1 %v6546_v19 }
  0x8b   :  { %5095 = vmatprep.subr.bf16.mxu1 %v6311_v48 }
  0x8c   :  { %5079 = vmatpush1.bf16.msra.mxu0 %v6553_v21 }
  0x8d   :  { %5105 = vmatprep.subr.bf16.mxu0 %v6452_v12 }
  0x8e   :  { %5097 = vmatpush3.bf16.msra.mxu1 %v6560_v26 }
  0x8f   :  { %5098 = vmatprep.subr.bf16.mxu1 %v6311_v48 }
  0x92   :  { %5100 = vmatpush3.bf16.msra.mxu1 %v6570_v29 }
  0x93   :  { %5101 = vmatprep.subr.bf16.mxu1 %v6311_v48 }
  0x96   :  { %5103 = vmatpush3.bf16.msra.mxu1 %v6579_v34 }
  0x97   :  { %5136 = vmatprep.subr.bf16.mxu1 %v6311_v48 }
 0x12c   :  { %v4335_v41 = vpop.f32.mrb[0].mxu1 }
 0x12d   :  { %v6625_v43 = vadd.f32 %v4335_v41, %v120_v39  ;;  %v328_v44 = vpop.f32.mrb[1].mxu1 }
 0x12e   :  { %v329_v38 = vadd.f32 %v328_v44, %v120_v39 }
 0x130   :  { %v4338_v46 = vpop.f32.mrb[2].mxu1 }
 0x131   :  { %v6627_v47 = vadd.f32 %v4338_v46, %v120_v39  ;;  %v338_v49 = vpop.f32.mrb[3].mxu1 }
 0x132   :  { %v6629_v50 = vadd.f32 %v338_v49, %v120_v39 }
 0x134   :  { %v4341_v54 = vpop.f32.mrb[4].mxu1 }
 0x135   :  { %v6633_v57 = vadd.f32 %v4341_v54, %v120_v39  ;;  %v348_v58 = vpop.f32.mrb[5].mxu1 }
 0x136   :  { %v6639_v60 = vadd.f32 %v348_v58, %v120_v39 }
 0x138   :  { %v4344_v62 = vpop.f32.mrb[6].mxu1 }
 0x139   :  { %v6645_v4 = vadd.f32 %v4344_v62, %v120_v39  ;;  %v358_v5 = vpop.f32.mrb[7].mxu1 }
 0x13a   :  { %v6648_v9 = vadd.f32 %v358_v5, %v120_v39 }
 0x142   :  { %v518_v1 = vpop.f32.mrb[0].mxu0 }
 0x143   :  { %v5976_v6 = vadd.f32 %v518_v1, %v6637_v59  ;;  %v520_v7 = vpop.f32.mrb[1].mxu0 }
 0x144   :  { %v5977_v13 = vadd.f32 %v520_v7, %v6643_v2 }
 0x145   :  { %v3972_v11 = vmul.f32 -1.442695, %v5976_v6 }
 0x146   :  { %v3973_v17 = vmul.f32 -1.442695, %v5977_v13 }
 0x147   :  { %6049 = vpow2.f32 %v3972_v11 }
 0x148   :  { %6051 = vpow2.f32 %v3973_v17 }
 0x14c   :  { %v589_v18 = vpop.f32.mrb[8].mxu1 }
 0x14d   :  { %v4379_v20 = vpop.f32.mrb[9].mxu1  ;;  %v607_v32 = vadd.f32 %v6654_v28, %v589_v18 }
 0x151   :  { %v6050_v24 = vpop.eup %6049 }
 0x152   :  { %v597_v25 = vadd.f32 1.0, %v6050_v24  ;;  %v6052_v27 = vpop.eup %6051 }
 0x153   :  { %v604_v30 = vadd.f32 1.0, %v6052_v27 }
 0x154   :  { %6053 = vrcp.f32 %v597_v25 }
 0x155   :  { %6055 = vrcp.f32 %v604_v30 }
 0x15e   :  { %v6054_v35 = vpop.eup %6053 }
 0x15f   :  { %v608_v41 = vmul.f32 %v6054_v35, %v607_v32  ;;  %v6056_v49 = vpop.eup %6055 }
 0x160   :  { %v611_v54 = vsub.f32 1.0, %v6056_v49  ;;  %v613_v1 = vmul.f32 0.0, %v6056_v49 }
 0x161   :  { %v609_v46 = vadd.f32 %v608_v41, %v329_v38 }
 0x163   :  { %6057 = vtanh.f32 %v609_v46 }
 0x16d   :  { %v6058_v58 = vpop.eup %6057 }
 0x16e   :  { %v612_v62 = vmul.f32 %v6058_v58, %v611_v54 }
 0x170   :  { %v6657_v5 = vadd.f32 %v613_v1, %v612_v62  ;;  %v1283_v1 = vld [vmem:[#allocation6 + $0x20] sm:$0xff] }
 0x172   :  { %735 = vmatmul.mubr.f32.vlgmr.msra.gmra.mrb[2].mxu0 %v6657_v5  ;;  %4413 = vmatmul.mubr.f32.vlgmr.msra.gmra.mrb[10].mxu1 %v6657_v5 }
 0x173   :  { %5107 = vmatpush1.bf16.msra.mxu0 %v6454_v15  ;;  %5138 = vmatpush3.bf16.msra.mxu1 %v6482_v40 }
 0x174   :  { %5109 = vmatprep.subr.bf16.mxu0 %v6457_v16  ;;  %5139 = vmatprep.subr.bf16.mxu1 %v6311_v48 }
 0x175   :  { %953 = vmatprep.mubr.f32.mxu0 %v6310_v0  ;;  %4447 = vmatprep.mubr.msk.f32.mxu1 %vm6312_vm1, %v6310_v0 }
 0x177   :  { %5111 = vmatpush1.bf16.msra.mxu0 %v6465_v22  ;;  %5141 = vmatpush3.bf16.msra.mxu1 %v6498_v51 }
 0x178   :  { %5113 = vmatprep.subr.bf16.mxu0 %v6468_v23  ;;  %5142 = vmatprep.subr.bf16.mxu1 %v6311_v48 }
 0x17b   :  { %5115 = vmatpush1.bf16.msra.mxu0 %v6476_v31  ;;  %5144 = vmatpush3.bf16.msra.mxu1 %v6514_v61 }
 0x17c   :  { %5117 = vmatprep.subr.bf16.mxu0 %v6479_v33  ;;  %5145 = vmatprep.subr.bf16.mxu1 %v6311_v48 }
 0x17f   :  { %5119 = vmatpush1.bf16.msra.mxu0 %v6489_v42  ;;  %5147 = vmatpush3.bf16.msra.mxu1 %v6530_v8 }
 0x180   :  { %5121 = vmatprep.subr.bf16.mxu0 %v6492_v45  ;;  %5148 = vmatprep.subr.bf16.mxu1 %v6311_v48 }
 0x183   :  { %5123 = vmatpush1.bf16.msra.mxu0 %v6505_v53  ;;  %5150 = vmatpush3.bf16.msra.mxu1 %v6546_v19 }
 0x184   :  { %5125 = vmatprep.subr.bf16.mxu0 %v6508_v56  ;;  %5151 = vmatprep.subr.bf16.mxu1 %v6311_v48 }
 0x187   :  { %5127 = vmatpush1.bf16.msra.mxu0 %v6521_v63  ;;  %5153 = vmatpush3.bf16.msra.mxu1 %v6560_v26 }
 0x188   :  { %5129 = vmatprep.subr.bf16.mxu0 %v6524_v3  ;;  %5154 = vmatprep.subr.bf16.mxu1 %v6311_v48 }
 0x18b   :  { %5131 = vmatpush1.bf16.msra.mxu0 %v6537_v10  ;;  %5156 = vmatpush3.bf16.msra.mxu1 %v6570_v29 }
 0x18c   :  { %5133 = vmatprep.subr.bf16.mxu0 %v6540_v14  ;;  %5157 = vmatprep.subr.bf16.mxu1 %v6311_v48 }
 0x18f   :  { %5135 = vmatpush1.bf16.msra.mxu0 %v6553_v21  ;;  %5159 = vmatpush3.bf16.msra.mxu1 %v6579_v34 }
 0x190   :  { %5161 = vmatprep.subr.bf16.mxu0 %v6452_v12  ;;  %5192 = vmatprep.subr.bf16.mxu1 %v6311_v48 }
 0x245   :  { %v736_v39 = vpop.f32.mrb[2].mxu0  ;;  %v807_v44 = vpop.f32.mrb[10].mxu1 }
 0x246   :  { %v5978_v6 = vadd.f32 %v736_v39, %v6637_v59  ;;  %v738_v7 = vpop.f32.mrb[3].mxu0  ;;  %v4414_v11 = vpop.f32.mrb[11].mxu1  ;;  %v825_v12 = vadd.f32 %v6654_v28, %v807_v44  ;;  %v1282_v44 = vld [vmem:[#allocation6 + $0x18] sm:$0xff] }
 0x247   :  { %v5979_v17 = vadd.f32 %v738_v7, %v6643_v2  ;;  %v1286_v7 = vld [vmem:[#allocation6 + $0x38] sm:$0xff] }
 0x248   :  { %v3974_v13 = vmul.f32 -1.442695, %v5978_v6 }
 0x249   :  { %v3975_v18 = vmul.f32 -1.442695, %v5979_v17 }
 0x24a   :  { %6059 = vpow2.f32 %v3974_v13  ;;  %v1285_v13 = vld [vmem:[#allocation6 + $0x30] sm:$0xff] }
 0x24b   :  { %6061 = vpow2.f32 %v3975_v18  ;;  %v1292_v18 = vld [vmem:[#allocation6 + $0x68] sm:$0xff] }
 0x254   :  { %v6060_v20 = vpop.eup %6059 }
 0x255   :  { %v815_v24 = vadd.f32 1.0, %v6060_v20  ;;  %v6062_v25 = vpop.eup %6061  ;;  %v1295_v20 = vld [vmem:[#allocation6 + $0x80] sm:$0xff] }
 0x256   :  { %v822_v27 = vadd.f32 1.0, %v6062_v25  ;;  %v1291_v25 = vld [vmem:[#allocation6 + $0x60] sm:$0xff] }
 0x257   :  { %6063 = vrcp.f32 %v815_v24  ;;  %v6769_v24 = vpack.c.bf16 %v1295_v20, %v1292_v18 }
 0x258   :  { %6065 = vrcp.f32 %v822_v27  ;;  %v1294_v27 = vld [vmem:[#allocation6 + $0x78] sm:$0xff] }
 0x261   :  { %v6064_v30 = vpop.eup %6063 }
 0x262   :  { %v826_v32 = vmul.f32 %v6064_v30, %v825_v12  ;;  %v6066_v38 = vpop.eup %6065  ;;  %v6771_v12 = vpack.c.bf16 %v1294_v27, %v1291_v25  ;;  %v1298_v30 = vld [vmem:[#allocation6 + $0x98] sm:$0xff]  ;;  %v1321_v25 = vld [vmem:[#allocation6 + $0x150] sm:$0xff]  ;;  %v1324_v27 = vld [vmem:[#allocation6 + $0x168] sm:$0xff] }
 0x263   :  { %v829_v41 = vsub.f32 1.0, %v6066_v38  ;;  %v831_v54 = vmul.f32 %v6066_v38, %v6657_v5  ;;  %v1297_v38 = vld [vmem:[#allocation6 + $0x90] sm:$0xff] }
 0x264   :  { %v827_v35 = vadd.f32 %v826_v32, %v6625_v43  ;;  %v1301_v32 = vld [vmem:[#allocation6 + $0xb0] sm:$0xff] }
 0x266   :  { %6067 = vtanh.f32 %v827_v35  ;;  %v6775_v35 = vpack.c.bf16 %v1301_v32, %v1298_v30  ;;  %v1323_v30 = vld [vmem:[#allocation6 + $0x160] sm:$0xff]  ;;  %v1326_v32 = vld [vmem:[#allocation6 + $0x178] sm:$0xff] }
 0x270   :  { %v6068_v46 = vpop.eup %6067 }
 0x271   :  { %v830_v49 = vmul.f32 %v6068_v46, %v829_v41  ;;  %v1300_v41 = vld [vmem:[#allocation6 + $0xa8] sm:$0xff]  ;;  %v1299_v46 = vld [vmem:[#allocation6 + $0xa0] sm:$0xff] }
 0x273   :  { %v6701_v58 = vadd.f32 %v831_v54, %v830_v49  ;;  %v6777_v49 = vpack.c.bf16 %v1300_v41, %v1297_v38  ;;  %v1302_v54 = vld [vmem:[#allocation6 + $0xb8] sm:$0xff]  ;;  %v6815_v38 = vpack.c.bf16 %v1324_v27, %v1321_v25  ;;  %v6819_v41 = vpack.c.bf16 %v1326_v32, %v1323_v30  ;;  %v1503_v25 = vld [vmem:[#allocation6 + $0x28] sm:$0xff]  ;;  %v1506_v30 = vld [vmem:[#allocation6 + $0x40] sm:$0xff] }
 0x274   :  { %v1509_v32 = vld [vmem:[#allocation6 + $0x58] sm:$0xff] }
 0x275   :  { %954 = vmatmul.mubr.f32.vlgmr.msra.gmra.mrb[4].mxu0 %v6701_v58  ;;  %4448 = vmatmul.mubr.f32.vlgmr.msra.gmra.mrb[12].mxu1 %v6701_v58 }
 0x276   :  { %5163 = vmatpush1.bf16.msra.mxu0 %v6454_v15  ;;  %5194 = vmatpush3.bf16.msra.mxu1 %v6482_v40 }
 0x277   :  { %5165 = vmatprep.subr.bf16.mxu0 %v6457_v16  ;;  %5195 = vmatprep.subr.bf16.mxu1 %v6311_v48 }
 0x278   :  { %1172 = vmatprep.mubr.f32.mxu0 %v6310_v0  ;;  %4482 = vmatprep.mubr.msk.f32.mxu1 %vm6312_vm1, %v6310_v0 }
 0x27a   :  { %5167 = vmatpush1.bf16.msra.mxu0 %v6465_v22  ;;  %5197 = vmatpush3.bf16.msra.mxu1 %v6498_v51 }
 0x27b   :  { %5169 = vmatprep.subr.bf16.mxu0 %v6468_v23  ;;  %5198 = vmatprep.subr.bf16.mxu1 %v6311_v48 }
 0x27e   :  { %5171 = vmatpush1.bf16.msra.mxu0 %v6476_v31  ;;  %5200 = vmatpush3.bf16.msra.mxu1 %v6514_v61 }
 0x27f   :  { %5173 = vmatprep.subr.bf16.mxu0 %v6479_v33  ;;  %5201 = vmatprep.subr.bf16.mxu1 %v6311_v48 }
 0x282   :  { %5175 = vmatpush1.bf16.msra.mxu0 %v6489_v42  ;;  %5203 = vmatpush3.bf16.msra.mxu1 %v6530_v8 }
 0x283   :  { %5177 = vmatprep.subr.bf16.mxu0 %v6492_v45  ;;  %5204 = vmatprep.subr.bf16.mxu1 %v6311_v48 }
 0x286   :  { %5179 = vmatpush1.bf16.msra.mxu0 %v6505_v53  ;;  %5206 = vmatpush3.bf16.msra.mxu1 %v6546_v19 }
 0x287   :  { %5181 = vmatprep.subr.bf16.mxu0 %v6508_v56  ;;  %5207 = vmatprep.subr.bf16.mxu1 %v6311_v48 }
 0x28a   :  { %5183 = vmatpush1.bf16.msra.mxu0 %v6521_v63  ;;  %5209 = vmatpush3.bf16.msra.mxu1 %v6560_v26 }
 0x28b   :  { %5185 = vmatprep.subr.bf16.mxu0 %v6524_v3  ;;  %5210 = vmatprep.subr.bf16.mxu1 %v6311_v48 }
 0x28e   :  { %5187 = vmatpush1.bf16.msra.mxu0 %v6537_v10  ;;  %5212 = vmatpush3.bf16.msra.mxu1 %v6570_v29 }
 0x28f   :  { %5189 = vmatprep.subr.bf16.mxu0 %v6540_v14  ;;  %5213 = vmatprep.subr.bf16.mxu1 %v6311_v48 }
 0x292   :  { %5191 = vmatpush1.bf16.msra.mxu0 %v6553_v21  ;;  %5215 = vmatpush3.bf16.msra.mxu1 %v6579_v34 }
 0x293   :  { %5248 = vmatprep.subr.bf16.mxu1 %v6311_v48 }
 0x348   :  { %v955_v15 = vpop.f32.mrb[4].mxu0  ;;  %v1026_v16 = vpop.f32.mrb[12].mxu1 }
 0x349   :  { %v5980_v22 = vadd.f32 %v955_v15, %v6637_v59  ;;  %v957_v23 = vpop.f32.mrb[5].mxu0  ;;  %v4449_v31 = vpop.f32.mrb[13].mxu1  ;;  %v1044_v8 = vadd.f32 %v6654_v28, %v1026_v16  ;;  %v6780_v15 = vpack.c.bf16 %v1302_v54, %v1299_v46  ;;  %v1304_v16 = vld [vmem:[#allocation6 + $0xc8] sm:$0xff] }
 0x34a   :  { %v5981_v42 = vadd.f32 %v957_v23, %v6643_v2  ;;  %v1303_v31 = vld [vmem:[#allocation6 + $0xc0] sm:$0xff] }
 0x34b   :  { %v3976_v33 = vmul.f32 -1.442695, %v5980_v22  ;;  %v1307_v22 = vld [vmem:[#allocation6 + $0xe0] sm:$0xff] }
 0x34c   :  { %v3977_v45 = vmul.f32 -1.442695, %v5981_v42  ;;  %v6784_v23 = vpack.c.bf16 %v1307_v22, %v1304_v16  ;;  %v1305_v42 = vld [vmem:[#allocation6 + $0xd0] sm:$0xff] }
 0x34d   :  { %6069 = vpow2.f32 %v3976_v33  ;;  %v1306_v33 = vld [vmem:[#allocation6 + $0xd8] sm:$0xff] }
 0x34e   :  { %6071 = vpow2.f32 %v3977_v45  ;;  %v6787_v45 = vpack.c.bf16 %v1306_v33, %v1303_v31 }
 0x357   :  { %v6070_v53 = vpop.eup %6069 }
 0x358   :  { %v1034_v56 = vadd.f32 1.0, %v6070_v53  ;;  %v6072_v63 = vpop.eup %6071  ;;  %v1308_v53 = vld [vmem:[#allocation6 + $0xe8] sm:$0xff] }
 0x359   :  { %v1041_v3 = vadd.f32 1.0, %v6072_v63  ;;  %v1310_v63 = vld [vmem:[#allocation6 + $0xf8] sm:$0xff] }
 0x35a   :  { %6073 = vrcp.f32 %v1034_v56  ;;  %v6790_v56 = vpack.c.bf16 %v1308_v53, %v1305_v42 }
 0x35b   :  { %6075 = vrcp.f32 %v1041_v3  ;;  %v1313_v3 = vld [vmem:[#allocation6 + $0x110] sm:$0xff] }
 0x364   :  { %v6074_v10 = vpop.eup %6073 }
 0x365   :  { %v1045_v14 = vmul.f32 %v6074_v10, %v1044_v8  ;;  %v6076_v21 = vpop.eup %6075  ;;  %v1309_v8 = vld [vmem:[#allocation6 + $0xf0] sm:$0xff]  ;;  %v6794_v10 = vpack.c.bf16 %v1313_v3, %v1310_v63 }
 0x366   :  { %v1048_v26 = vsub.f32 1.0, %v6076_v21  ;;  %v1050_v43 = vmul.f32 %v6076_v21, %v6701_v58  ;;  %v1314_v21 = vld [vmem:[#allocation6 + $0x118] sm:$0xff] }
 0x367   :  { %v1046_v19 = vadd.f32 %v1045_v14, %v6629_v50  ;;  %v1280_v50 = vld [vmem:[#allocation6 + $0x8] sm:$0xff] }
 0x368   :  { %v6757_v39 = vpack.c.bf16 %v1283_v1, %v1280_v50  ;;  %v1312_v14 = vld [vmem:[#allocation6 + $0x108] sm:$0xff]  ;;  %v1315_v50 = vld [vmem:[#allocation6 + $0x120] sm:$0xff] }
 0x369   :  { %6077 = vtanh.f32 %v1046_v19  ;;  %v1311_v19 = vld [vmem:[#allocation6 + $0x100] sm:$0xff] }
 0x36a   :  { %5217 = vmatprep.subr.bf16.mxu0 %v6757_v39 }
 0x373   :  { %v6078_v29 = vpop.eup %6077 }
 0x374   :  { %v1049_v34 = vmul.f32 %v6078_v29, %v1048_v26  ;;  %v6797_v26 = vpack.c.bf16 %v1312_v14, %v1309_v8  ;;  %v6799_v29 = vpack.c.bf16 %v1314_v21, %v1311_v19 }
 0x376   :  { %v6744_v62 = vadd.f32 %v1050_v43, %v1049_v34  ;;  %v1316_v34 = vld [vmem:[#allocation6 + $0x128] sm:$0xff]  ;;  %v1319_v43 = vld [vmem:[#allocation6 + $0x140] sm:$0xff] }
 0x377   :  { %v6802_v1 = vpack.c.bf16 %v1319_v43, %v1316_v34 }
 0x378   :  { %1173 = vmatmul.mubr.f32.vlgmr.msra.gmra.mrb[6].mxu0 %v6744_v62  ;;  %4483 = vmatmul.mubr.f32.vlgmr.msra.gmra.mrb[14].mxu1 %v6744_v62 }
 0x379   :  { %5250 = vmatpush3.bf16.msra.mxu1 %v6482_v40  ;;  %1391 = vmatprep.mubr.f32.mxu0 %v6310_v0  ;;  %v1279_v40 = vld [vmem:[#allocation6] sm:$0xff] }
 0x37a   :  { %5251 = vmatprep.subr.bf16.mxu1 %v6311_v48  ;;  %4517 = vmatprep.mubr.msk.f32.mxu1 %vm6312_vm1, %v6310_v0  ;;  %v6759_v6 = vpack.c.bf16 %v1282_v44, %v1279_v40  ;;  %v1318_v40 = vld [vmem:[#allocation6 + $0x138] sm:$0xff]  ;;  %v1317_v44 = vld [vmem:[#allocation6 + $0x130] sm:$0xff] }
 0x37c   :  { %5219 = vmatpush1.bf16.msra.mxu0 %v6759_v6 }
 0x37d   :  { %5253 = vmatpush3.bf16.msra.mxu1 %v6498_v51  ;;  %v1289_v51 = vld [vmem:[#allocation6 + $0x50] sm:$0xff] }
 0x37e   :  { %5254 = vmatprep.subr.bf16.mxu1 %v6311_v48  ;;  %v6763_v11 = vpack.c.bf16 %v1289_v51, %v1286_v7  ;;  %v1320_v7 = vld [vmem:[#allocation6 + $0x148] sm:$0xff]  ;;  %v6805_v51 = vpack.c.bf16 %v1318_v40, %v1315_v50 }
 0x37f   :  { %v6809_v18 = vpack.c.bf16 %v1320_v7, %v1317_v44 }
 0x380   :  { %5221 = vmatprep.subr.bf16.mxu0 %v6763_v11 }
 0x381   :  { %5256 = vmatpush3.bf16.msra.mxu1 %v6514_v61  ;;  %v1288_v61 = vld [vmem:[#allocation6 + $0x48] sm:$0xff] }
 0x382   :  { %5257 = vmatprep.subr.bf16.mxu1 %v6311_v48  ;;  %v6765_v17 = vpack.c.bf16 %v1288_v61, %v1285_v13  ;;  %v1322_v13 = vld [vmem:[#allocation6 + $0x158] sm:$0xff]  ;;  %v1325_v61 = vld [vmem:[#allocation6 + $0x170] sm:$0xff] }
 0x383   :  { %v6811_v20 = vpack.c.bf16 %v1325_v61, %v1322_v13 }
 0x384   :  { %5223 = vmatpush1.bf16.msra.mxu0 %v6765_v17 }
 0x385   :  { %5225 = vmatprep.subr.bf16.mxu0 %v6769_v24  ;;  %5259 = vmatpush3.bf16.msra.mxu1 %v6780_v15 }
 0x386   :  { %5260 = vmatprep.subr.bf16.mxu1 %v6311_v48 }
 0x388   :  { %5227 = vmatpush1.bf16.msra.mxu0 %v6771_v12 }
 0x389   :  { %5229 = vmatprep.subr.bf16.mxu0 %v6775_v35  ;;  %5262 = vmatpush3.bf16.msra.mxu1 %v6790_v56 }
 0x38a   :  { %5263 = vmatprep.subr.bf16.mxu1 %v6311_v48 }
 0x38c   :  { %5231 = vmatpush1.bf16.msra.mxu0 %v6777_v49 }
 0x38d   :  { %5233 = vmatprep.subr.bf16.mxu0 %v6784_v23  ;;  %5265 = vmatpush3.bf16.msra.mxu1 %v6799_v29 }
 0x38e   :  { %5266 = vmatprep.subr.bf16.mxu1 %v6311_v48 }
 0x390   :  { %5235 = vmatpush1.bf16.msra.mxu0 %v6787_v45 }
 0x391   :  { %5237 = vmatprep.subr.bf16.mxu0 %v6794_v10  ;;  %5268 = vmatpush3.bf16.msra.mxu1 %v6809_v18 }
 0x392   :  { %5269 = vmatprep.subr.bf16.mxu1 %v6311_v48 }
 0x394   :  { %5239 = vmatpush1.bf16.msra.mxu0 %v6797_v26 }
 0x395   :  { %5241 = vmatprep.subr.bf16.mxu0 %v6802_v1  ;;  %5271 = vmatpush3.bf16.msra.mxu1 %v6819_v41 }
 0x396   :  { %5304 = vmatprep.subr.bf16.mxu1 %v6311_v48 }
 0x398   :  { %5243 = vmatpush1.bf16.msra.mxu0 %v6805_v51 }
 0x399   :  { %5245 = vmatprep.subr.bf16.mxu0 %v6811_v20 }
 0x39c   :  { %5247 = vmatpush1.bf16.msra.mxu0 %v6815_v38 }
 0x39d   :  { %5273 = vmatprep.subr.bf16.mxu0 %v6757_v39 }
 0x44b   :  { %v1174_v46 = vpop.f32.mrb[6].mxu0  ;;  %v1245_v54 = vpop.f32.mrb[14].mxu1 }
 0x44c   :  { %v5982_v16 = vadd.f32 %v1174_v46, %v6637_v59  ;;  %v1176_v22 = vpop.f32.mrb[7].mxu0  ;;  %v4484_v31 = vpop.f32.mrb[15].mxu1  ;;  %v1263_v19 = vadd.f32 %v6654_v28, %v1245_v54  ;;  %v6858_v46 = vpack.c.bf16 %v1509_v32, %v1506_v30  ;;  %v1512_v54 = vld [vmem:[#allocation6 + $0x70] sm:$0xff] }
 0x44d   :  { %v5983_v42 = vadd.f32 %v1176_v22, %v6643_v2 }
 0x44e   :  { %v3978_v33 = vmul.f32 -1.442695, %v5982_v16  ;;  %v1515_v16 = vld [vmem:[#allocation6 + $0x88] sm:$0xff] }
 0x44f   :  { %v3979_v53 = vmul.f32 -1.442695, %v5983_v42  ;;  %v6862_v22 = vpack.c.bf16 %v1515_v16, %v1512_v54 }
 0x450   :  { %6079 = vpow2.f32 %v3978_v33 }
 0x451   :  { %6081 = vpow2.f32 %v3979_v53 }
 0x45a   :  { %v6080_v63 = vpop.eup %6079 }
 0x45b   :  { %v1253_v3 = vadd.f32 1.0, %v6080_v63  ;;  %v6082_v8 = vpop.eup %6081 }
 0x45c   :  { %v1260_v14 = vadd.f32 1.0, %v6082_v8 }
 0x45d   :  { %6083 = vrcp.f32 %v1253_v3 }
 0x45e   :  { %6085 = vrcp.f32 %v1260_v14 }
 0x467   :  { %v6084_v21 = vpop.eup %6083 }
 0x468   :  { %v1264_v34 = vmul.f32 %v6084_v21, %v1263_v19  ;;  %v6086_v50 = vpop.eup %6085 }
 0x469   :  { %v1267_v40 = vsub.f32 1.0, %v6086_v50  ;;  %v1269_v13 = vmul.f32 %v6086_v50, %v6744_v62 }
 0x46a   :  { %v1265_v43 = vadd.f32 %v1264_v34, %v6627_v47  ;;  %v1500_v47 = vld [vmem:[#allocation6 + $0x10] sm:$0xff] }
 0x46b   :  { %v6854_v27 = vpack.c.bf16 %v1503_v25, %v1500_v47 }
 0x46c   :  { %6087 = vtanh.f32 %v1265_v43 }
 0x476   :  { %v6088_v44 = vpop.eup %6087 }
 0x477   :  { %v1268_v7 = vmul.f32 %v6088_v44, %v1267_v40 }
 0x479   :  { %v6831_v61 = vadd.f32 %v1269_v13, %v1268_v7 }
 0x47b   :  { %1392 = vmatmul.mubr.f32.vlgmr.msra.gmra.mrb[8].mxu0 %v6831_v61  ;;  %4518 = vmatmul.mubr.f32.vlgmr.msra.gmra.mrb[16].mxu1 %v6831_v61 }
 0x47c   :  { %5275 = vmatpush1.bf16.msra.mxu0 %v6759_v6  ;;  %1610 = vmatprep.mubr.f32.mxu0 %v6310_v0 }
 0x47d   :  { %5277 = vmatprep.subr.bf16.mxu0 %v6763_v11  ;;  %4552 = vmatprep.mubr.msk.f32.mxu1 %vm6312_vm1, %v6310_v0 }
 0x47e   :  { %5306 = vmatpush3.bf16.msra.mxu1 %v6854_v27 }
 0x47f   :  { %5307 = vmatprep.subr.bf16.mxu1 %v6311_v48 }
 0x480   :  { %5279 = vmatpush1.bf16.msra.mxu0 %v6765_v17 }
 0x481   :  { %5281 = vmatprep.subr.bf16.mxu0 %v6769_v24 }
 0x482   :  { %5309 = vmatpush3.bf16.msra.mxu1 %v6858_v46 }
 0x483   :  { %5310 = vmatprep.subr.bf16.mxu1 %v6311_v48 }
 0x484   :  { %5283 = vmatpush1.bf16.msra.mxu0 %v6771_v12 }
 0x485   :  { %5285 = vmatprep.subr.bf16.mxu0 %v6775_v35 }
 0x486   :  { %5312 = vmatpush3.bf16.msra.mxu1 %v6862_v22 }
 0x487   :  { %5313 = vmatprep.subr.bf16.mxu1 %v6311_v48 }
 0x488   :  { %5287 = vmatpush1.bf16.msra.mxu0 %v6777_v49 }
 0x489   :  { %5289 = vmatprep.subr.bf16.mxu0 %v6784_v23 }
 0x48a   :  { %5315 = vmatpush3.bf16.msra.mxu1 %v6780_v15 }
 0x48b   :  { %5316 = vmatprep.subr.bf16.mxu1 %v6311_v48 }
 0x48c   :  { %5291 = vmatpush1.bf16.msra.mxu0 %v6787_v45 }
 0x48d   :  { %5293 = vmatprep.subr.bf16.mxu0 %v6794_v10 }
 0x48e   :  { %5318 = vmatpush3.bf16.msra.mxu1 %v6790_v56 }
 0x48f   :  { %5319 = vmatprep.subr.bf16.mxu1 %v6311_v48 }
 0x490   :  { %5295 = vmatpush1.bf16.msra.mxu0 %v6797_v26 }
 0x491   :  { %5297 = vmatprep.subr.bf16.mxu0 %v6802_v1 }
 0x492   :  { %5321 = vmatpush3.bf16.msra.mxu1 %v6799_v29 }
 0x493   :  { %5322 = vmatprep.subr.bf16.mxu1 %v6311_v48 }
 0x494   :  { %5299 = vmatpush1.bf16.msra.mxu0 %v6805_v51 }
 0x495   :  { %5301 = vmatprep.subr.bf16.mxu0 %v6811_v20 }
 0x496   :  { %5324 = vmatpush3.bf16.msra.mxu1 %v6809_v18 }
 0x497   :  { %5325 = vmatprep.subr.bf16.mxu1 %v6311_v48 }
 0x498   :  { %5303 = vmatpush1.bf16.msra.mxu0 %v6815_v38 }
 0x499   :  { %5329 = vmatprep.subr.bf16.mxu0 %v6757_v39 }
 0x49a   :  { %5327 = vmatpush3.bf16.msra.mxu1 %v6819_v41 }
 0x49b   :  { %5360 = vmatprep.subr.bf16.mxu1 %v6311_v48 }
 0x54e   :  { %v1393_v31 = vpop.f32.mrb[8].mxu0  ;;  %v1464_v33 = vpop.f32.mrb[16].mxu1 }
 0x54f   :  { %v5984_v42 = vadd.f32 %v1393_v31, %v6637_v59  ;;  %v1395_v53 = vpop.f32.mrb[9].mxu0  ;;  %v4519_v63 = vpop.f32.mrb[17].mxu1  ;;  %v1482_v50 = vadd.f32 %v6654_v28, %v1464_v33 }
 0x550   :  { %v5985_v8 = vadd.f32 %v1395_v53, %v6643_v2 }
 0x551   :  { %v3980_v3 = vmul.f32 -1.442695, %v5984_v42 }
 0x552   :  { %v3981_v14 = vmul.f32 -1.442695, %v5985_v8 }
 0x553   :  { %6089 = vpow2.f32 %v3980_v3 }
 0x554   :  { %6091 = vpow2.f32 %v3981_v14 }
 0x55d   :  { %v6090_v19 = vpop.eup %6089 }
 0x55e   :  { %v1472_v21 = vadd.f32 1.0, %v6090_v19  ;;  %v6092_v34 = vpop.eup %6091 }
 0x55f   :  { %v1479_v43 = vadd.f32 1.0, %v6092_v34 }
 0x560   :  { %6093 = vrcp.f32 %v1472_v21 }
 0x561   :  { %6095 = vrcp.f32 %v1479_v43 }
 0x56a   :  { %v6094_v40 = vpop.eup %6093 }
 0x56b   :  { %v1483_v44 = vmul.f32 %v6094_v40, %v1482_v50  ;;  %v6096_v13 = vpop.eup %6095 }
 0x56c   :  { %v1486_v47 = vsub.f32 1.0, %v6096_v13  ;;  %v1488_v32 = vmul.f32 %v6096_v13, %v6831_v61 }
 0x56d   :  { %v1484_v7 = vadd.f32 %v1483_v44, %v6639_v60 }
 0x56f   :  { %6097 = vtanh.f32 %v1484_v7 }
 0x579   :  { %v6098_v25 = vpop.eup %6097 }
 0x57a   :  { %v1487_v30 = vmul.f32 %v6098_v25, %v1486_v47 }
 0x57c   :  { %v6881_v54 = vadd.f32 %v1488_v32, %v1487_v30  ;;  %v2157_v30 = vld [vmem:[#allocation8] sm:$0xff]  ;;  %v2160_v32 = vld [vmem:[#allocation8 + $0x18] sm:$0xff] }
 0x57e   :  { %1611 = vmatmul.mubr.f32.vlgmr.msra.gmra.mrb[10].mxu0 %v6881_v54  ;;  %4553 = vmatmul.mubr.f32.vlgmr.msra.gmra.mrb[18].mxu1 %v6881_v54 }
 0x57f   :  { %5331 = vmatpush1.bf16.msra.mxu0 %v6759_v6  ;;  %5362 = vmatpush3.bf16.msra.mxu1 %v6854_v27 }
 0x580   :  { %5333 = vmatprep.subr.bf16.mxu0 %v6763_v11  ;;  %5363 = vmatprep.subr.bf16.mxu1 %v6311_v48 }
 0x581   :  { %1829 = vmatprep.mubr.f32.mxu0 %v6310_v0  ;;  %4587 = vmatprep.mubr.msk.f32.mxu1 %vm6312_vm1, %v6310_v0 }
 0x583   :  { %5335 = vmatpush1.bf16.msra.mxu0 %v6765_v17  ;;  %5365 = vmatpush3.bf16.msra.mxu1 %v6858_v46 }
 0x584   :  { %5337 = vmatprep.subr.bf16.mxu0 %v6769_v24  ;;  %5366 = vmatprep.subr.bf16.mxu1 %v6311_v48 }
 0x587   :  { %5339 = vmatpush1.bf16.msra.mxu0 %v6771_v12  ;;  %5368 = vmatpush3.bf16.msra.mxu1 %v6862_v22 }
 0x588   :  { %5341 = vmatprep.subr.bf16.mxu0 %v6775_v35  ;;  %5369 = vmatprep.subr.bf16.mxu1 %v6311_v48 }
 0x58b   :  { %5343 = vmatpush1.bf16.msra.mxu0 %v6777_v49  ;;  %5371 = vmatpush3.bf16.msra.mxu1 %v6780_v15 }
 0x58c   :  { %5345 = vmatprep.subr.bf16.mxu0 %v6784_v23  ;;  %5372 = vmatprep.subr.bf16.mxu1 %v6311_v48 }
 0x58f   :  { %5347 = vmatpush1.bf16.msra.mxu0 %v6787_v45  ;;  %5374 = vmatpush3.bf16.msra.mxu1 %v6790_v56 }
 0x590   :  { %5349 = vmatprep.subr.bf16.mxu0 %v6794_v10  ;;  %5375 = vmatprep.subr.bf16.mxu1 %v6311_v48 }
 0x593   :  { %5351 = vmatpush1.bf16.msra.mxu0 %v6797_v26  ;;  %5377 = vmatpush3.bf16.msra.mxu1 %v6799_v29 }
 0x594   :  { %5353 = vmatprep.subr.bf16.mxu0 %v6802_v1  ;;  %5378 = vmatprep.subr.bf16.mxu1 %v6311_v48 }
 0x597   :  { %5355 = vmatpush1.bf16.msra.mxu0 %v6805_v51  ;;  %5380 = vmatpush3.bf16.msra.mxu1 %v6809_v18 }
 0x598   :  { %5357 = vmatprep.subr.bf16.mxu0 %v6811_v20  ;;  %5381 = vmatprep.subr.bf16.mxu1 %v6311_v48 }
 0x59b   :  { %5359 = vmatpush1.bf16.msra.mxu0 %v6815_v38  ;;  %5383 = vmatpush3.bf16.msra.mxu1 %v6819_v41 }
 0x59c   :  { %5385 = vmatprep.subr.bf16.mxu0 %v6757_v39  ;;  %5416 = vmatprep.subr.bf16.mxu1 %v6311_v48 }
 0x651   :  { %v1612_v60 = vpop.f32.mrb[10].mxu0  ;;  %v1683_v16 = vpop.f32.mrb[18].mxu1 }
 0x652   :  { %v5986_v31 = vadd.f32 %v1612_v60, %v6637_v59  ;;  %v1614_v33 = vpop.f32.mrb[11].mxu0  ;;  %v4554_v42 = vpop.f32.mrb[19].mxu1  ;;  %v1701_v39 = vadd.f32 %v6654_v28, %v1683_v16  ;;  %v2164_v16 = vld [vmem:[#allocation8 + $0x38] sm:$0xff] }
 0x653   :  { %v5987_v63 = vadd.f32 %v1614_v33, %v6643_v2 }
 0x654   :  { %v3982_v53 = vmul.f32 -1.442695, %v5986_v31  ;;  %v2167_v31 = vld [vmem:[#allocation8 + $0x50] sm:$0xff] }
 0x655   :  { %v3983_v3 = vmul.f32 -1.442695, %v5987_v63  ;;  %v2168_v63 = vld [vmem:[#allocation8 + $0x58] sm:$0xff] }
 0x656   :  { %6099 = vpow2.f32 %v3982_v53  ;;  %v2165_v53 = vld [vmem:[#allocation8 + $0x40] sm:$0xff] }
 0x657   :  { %6101 = vpow2.f32 %v3983_v3  ;;  %v5442_v3 = vpack.c.bf16 %v2160_v32, %v2157_v30  ;;  %v2187_v30 = vld [vmem:[#allocation8 + $0xf0] sm:$0xff]  ;;  %v2190_v32 = vld [vmem:[#allocation8 + $0x108] sm:$0xff] }
 0x660   :  { %v6100_v8 = vpop.eup %6099 }
 0x661   :  { %v1691_v14 = vadd.f32 1.0, %v6100_v8  ;;  %v6102_v19 = vpop.eup %6101  ;;  %v5444_v8 = vpack.c.bf16 %v2167_v31, %v2164_v16  ;;  %v2197_v16 = vld [vmem:[#allocation8 + $0x140] sm:$0xff]  ;;  %v2195_v31 = vld [vmem:[#allocation8 + $0x130] sm:$0xff] }
 0x662   :  { %v1698_v21 = vadd.f32 1.0, %v6102_v19  ;;  %v2166_v19 = vld [vmem:[#allocation8 + $0x48] sm:$0xff] }
 0x663   :  { %6103 = vrcp.f32 %v1691_v14  ;;  %v2163_v14 = vld [vmem:[#allocation8 + $0x30] sm:$0xff] }
 0x664   :  { %6105 = vrcp.f32 %v1698_v21  ;;  %v5476_v21 = vpack.c.bf16 %v2168_v63, %v2165_v53 }
 0x66d   :  { %v6104_v34 = vpop.eup %6103 }
 0x66e   :  { %v1702_v43 = vmul.f32 %v6104_v34, %v1701_v39  ;;  %v6106_v40 = vpop.eup %6105  ;;  %v2173_v39 = vld [vmem:[#allocation8 + $0x80] sm:$0xff]  ;;  %v2171_v34 = vld [vmem:[#allocation8 + $0x70] sm:$0xff] }
 0x66f   :  { %v1705_v44 = vsub.f32 1.0, %v6106_v40  ;;  %v1707_v47 = vmul.f32 %v6106_v40, %v6881_v54 }
 0x670   :  { %v1703_v50 = vadd.f32 %v1702_v43, %v6633_v57  ;;  %v2158_v57 = vld [vmem:[#allocation8 + $0x8] sm:$0xff] }
 0x671   :  { %v2174_v43 = vld [vmem:[#allocation8 + $0x88] sm:$0xff] }
 0x672   :  { %6107 = vtanh.f32 %v1703_v50  ;;  %v5446_v50 = vpack.c.bf16 %v2166_v19, %v2163_v14  ;;  %v2200_v14 = vld [vmem:[#allocation8 + $0x158] sm:$0xff]  ;;  %v2203_v19 = vld [vmem:[#allocation8 + $0x170] sm:$0xff] }
 0x67c   :  { %v6108_v7 = vpop.eup %6107 }
 0x67d   :  { %v1706_v13 = vmul.f32 %v6108_v7, %v1705_v44  ;;  %v5480_v44 = vpack.c.bf16 %v2174_v43, %v2171_v34  ;;  %v2169_v7 = vld [vmem:[#allocation8 + $0x60] sm:$0xff]  ;;  %v5468_v34 = vpack.c.bf16 %v2203_v19, %v2200_v14  ;;  %v2517_v19 = vld [vmem:[#allocation9 + $0x158] sm:$0xff] }
 0x67f   :  { %v6925_v25 = vadd.f32 %v1707_v47, %v1706_v13  ;;  %v2172_v13 = vld [vmem:[#allocation8 + $0x78] sm:$0xff] }
 0x680   :  { %v2176_v47 = vld [vmem:[#allocation8 + $0x98] sm:$0xff] }
 0x681   :  { %1830 = vmatmul.mubr.f32.vlgmr.msra.gmra.mrb[12].mxu0 %v6925_v25  ;;  %4588 = vmatmul.mubr.f32.vlgmr.msra.gmra.mrb[20].mxu1 %v6925_v25 }
 0x682   :  { %5387 = vmatpush1.bf16.msra.mxu0 %v6759_v6  ;;  %5418 = vmatpush3.bf16.msra.mxu1 %v6854_v27  ;;  %v2161_v6 = vld [vmem:[#allocation8 + $0x20] sm:$0xff] }
 0x683   :  { %5389 = vmatprep.subr.bf16.mxu0 %v6763_v11  ;;  %5419 = vmatprep.subr.bf16.mxu1 %v6311_v48  ;;  %v2159_v11 = vld [vmem:[#allocation8 + $0x10] sm:$0xff] }
 0x684   :  { %2048 = vmatprep.mubr.f32.mxu0 %v6310_v0  ;;  %4622 = vmatprep.mubr.msk.f32.mxu1 %vm6312_vm1, %v6310_v0 }
 0x686   :  { %5391 = vmatpush1.bf16.msra.mxu0 %v6765_v17  ;;  %5421 = vmatpush3.bf16.msra.mxu1 %v6858_v46  ;;  %v5440_v17 = vpack.c.bf16 %v2161_v6, %v2158_v57  ;;  %v2179_v57 = vld [vmem:[#allocation8 + $0xb0] sm:$0xff]  ;;  %v2177_v6 = vld [vmem:[#allocation8 + $0xa0] sm:$0xff] }
 0x687   :  { %5393 = vmatprep.subr.bf16.mxu0 %v6769_v24  ;;  %5422 = vmatprep.subr.bf16.mxu1 %v6311_v48  ;;  %v2162_v24 = vld [vmem:[#allocation8 + $0x28] sm:$0xff] }
 0x68a   :  { %5395 = vmatpush1.bf16.msra.mxu0 %v6771_v12  ;;  %5424 = vmatpush3.bf16.msra.mxu1 %v6862_v22  ;;  %v5472_v12 = vpack.c.bf16 %v2162_v24, %v2159_v11  ;;  %v2180_v11 = vld [vmem:[#allocation8 + $0xb8] sm:$0xff]  ;;  %v5452_v24 = vpack.c.bf16 %v2179_v57, %v2176_v47  ;;  %v2480_v57 = vld [vmem:[#allocation9 + $0x30] sm:$0xff] }
 0x68b   :  { %5397 = vmatprep.subr.bf16.mxu0 %v6775_v35  ;;  %5425 = vmatprep.subr.bf16.mxu1 %v6311_v48 }
 0x68e   :  { %5399 = vmatpush1.bf16.msra.mxu0 %v6777_v49  ;;  %5427 = vmatpush3.bf16.msra.mxu1 %v6780_v15 }
 0x68f   :  { %5401 = vmatprep.subr.bf16.mxu0 %v6784_v23  ;;  %5428 = vmatprep.subr.bf16.mxu1 %v6311_v48 }
 0x692   :  { %5403 = vmatpush1.bf16.msra.mxu0 %v6787_v45  ;;  %5430 = vmatpush3.bf16.msra.mxu1 %v6790_v56 }
 0x693   :  { %5405 = vmatprep.subr.bf16.mxu0 %v6794_v10  ;;  %5431 = vmatprep.subr.bf16.mxu1 %v6311_v48 }
 0x696   :  { %5407 = vmatpush1.bf16.msra.mxu0 %v6797_v26  ;;  %5433 = vmatpush3.bf16.msra.mxu1 %v6799_v29 }
 0x697   :  { %5409 = vmatprep.subr.bf16.mxu0 %v6802_v1  ;;  %5434 = vmatprep.subr.bf16.mxu1 %v6311_v48 }
 0x69a   :  { %5411 = vmatpush1.bf16.msra.mxu0 %v6805_v51  ;;  %5436 = vmatpush3.bf16.msra.mxu1 %v6809_v18 }
 0x69b   :  { %5413 = vmatprep.subr.bf16.mxu0 %v6811_v20  ;;  %5437 = vmatprep.subr.bf16.mxu1 %v6311_v48 }
 0x69e   :  { %5415 = vmatpush1.bf16.msra.mxu0 %v6815_v38  ;;  %5439 = vmatpush3.bf16.msra.mxu1 %v6819_v41 }
 0x69f   :  { %5441 = vmatprep.subr.bf16.mxu0 %v5440_v17  ;;  %5473 = vmatprep.subr.bf16.mxu1 %v5472_v12  ;;  %v5450_v17 = vpack.c.bf16 %v2172_v13, %v2169_v7  ;;  %v2474_v7 = vld [vmem:[#allocation9] sm:$0xff] }
 0x754   :  { %v1831_v35 = vpop.f32.mrb[12].mxu0  ;;  %v1902_v49 = vpop.f32.mrb[20].mxu1 }
 0x755   :  { %v5988_v15 = vadd.f32 %v1831_v35, %v6637_v59  ;;  %v1833_v23 = vpop.f32.mrb[13].mxu0  ;;  %v4589_v45 = vpop.f32.mrb[21].mxu1  ;;  %v1920_v20 = vadd.f32 %v6654_v28, %v1902_v49  ;;  %v2175_v35 = vld [vmem:[#allocation8 + $0x90] sm:$0xff]  ;;  %v2178_v49 = vld [vmem:[#allocation8 + $0xa8] sm:$0xff] }
 0x756   :  { %v5989_v10 = vadd.f32 %v1833_v23, %v6643_v2  ;;  %v2185_v23 = vld [vmem:[#allocation8 + $0xe0] sm:$0xff]  ;;  %v2183_v45 = vld [vmem:[#allocation8 + $0xd0] sm:$0xff] }
 0x757   :  { %v3984_v56 = vmul.f32 -1.442695, %v5988_v15  ;;  %v2182_v15 = vld [vmem:[#allocation8 + $0xc8] sm:$0xff] }
 0x758   :  { %v3985_v26 = vmul.f32 -1.442695, %v5989_v10  ;;  %v5454_v10 = vpack.c.bf16 %v2178_v49, %v2175_v35  ;;  %v2486_v35 = vld [vmem:[#allocation9 + $0x60] sm:$0xff]  ;;  %v2489_v49 = vld [vmem:[#allocation9 + $0x78] sm:$0xff] }
 0x759   :  { %6109 = vpow2.f32 %v3984_v56  ;;  %v2186_v56 = vld [vmem:[#allocation8 + $0xe8] sm:$0xff] }
 0x75a   :  { %6111 = vpow2.f32 %v3985_v26  ;;  %v5456_v26 = vpack.c.bf16 %v2185_v23, %v2182_v15  ;;  %v7008_v15 = vpack.c.bf16 %v2489_v49, %v2486_v35  ;;  %v2493_v23 = vld [vmem:[#allocation9 + $0x98] sm:$0xff] }
 0x75b   :  { %v2509_v35 = vld [vmem:[#allocation9 + $0x118] sm:$0xff] }
 0x763   :  { %v6110_v29 = vpop.eup %6109 }
 0x764   :  { %v1910_v1 = vadd.f32 1.0, %v6110_v29  ;;  %v6112_v51 = vpop.eup %6111  ;;  %v5488_v29 = vpack.c.bf16 %v2186_v56, %v2183_v45  ;;  %v2496_v45 = vld [vmem:[#allocation9 + $0xb0] sm:$0xff] }
 0x765   :  { %v1917_v18 = vadd.f32 1.0, %v6112_v51  ;;  %v2184_v51 = vld [vmem:[#allocation8 + $0xd8] sm:$0xff]  ;;  %v7012_v56 = vpack.c.bf16 %v2496_v45, %v2493_v23  ;;  %v2512_v23 = vld [vmem:[#allocation9 + $0x130] sm:$0xff]  ;;  %v2515_v45 = vld [vmem:[#allocation9 + $0x148] sm:$0xff] }
 0x766   :  { %6113 = vrcp.f32 %v1910_v1  ;;  %v2181_v1 = vld [vmem:[#allocation8 + $0xc0] sm:$0xff] }
 0x767   :  { %6115 = vrcp.f32 %v1917_v18  ;;  %v2188_v18 = vld [vmem:[#allocation8 + $0xf8] sm:$0xff] }
 0x770   :  { %v6114_v38 = vpop.eup %6113 }
 0x771   :  { %v1921_v41 = vmul.f32 %v6114_v38, %v1920_v20  ;;  %v6116_v46 = vpop.eup %6115  ;;  %v2191_v20 = vld [vmem:[#allocation8 + $0x110] sm:$0xff]  ;;  %v2189_v38 = vld [vmem:[#allocation8 + $0x100] sm:$0xff] }
 0x772   :  { %v1924_v22 = vsub.f32 1.0, %v6116_v46  ;;  %v1926_v42 = vmul.f32 %v6116_v46, %v6925_v25  ;;  %v5460_v46 = vpack.c.bf16 %v2191_v20, %v2188_v18  ;;  %v2498_v20 = vld [vmem:[#allocation9 + $0xc0] sm:$0xff] }
 0x773   :  { %v1922_v27 = vadd.f32 %v1921_v41, %v6648_v9  ;;  %v2170_v9 = vld [vmem:[#allocation8 + $0x68] sm:$0xff]  ;;  %v2192_v41 = vld [vmem:[#allocation8 + $0x118] sm:$0xff] }
 0x774   :  { %v5448_v40 = vpack.c.bf16 %v2173_v39, %v2170_v9  ;;  %v2201_v9 = vld [vmem:[#allocation8 + $0x160] sm:$0xff] }
 0x775   :  { %6117 = vtanh.f32 %v1922_v27  ;;  %v5458_v27 = vpack.c.bf16 %v2184_v51, %v2181_v1  ;;  %v2499_v1 = vld [vmem:[#allocation9 + $0xc8] sm:$0xff]  ;;  %v2502_v51 = vld [vmem:[#allocation9 + $0xe0] sm:$0xff] }
 0x776   :  { %v7018_v18 = vpack.c.bf16 %v2502_v51, %v2499_v1  ;;  %v2521_v1 = vld [vmem:[#allocation9 + $0x178] sm:$0xff] }
 0x77f   :  { %v6118_v60 = vpop.eup %6117 }
 0x780   :  { %v1925_v33 = vmul.f32 %v6118_v60, %v1924_v22  ;;  %v5492_v22 = vpack.c.bf16 %v2192_v41, %v2189_v38  ;;  %v2194_v60 = vld [vmem:[#allocation8 + $0x128] sm:$0xff]  ;;  %v2501_v38 = vld [vmem:[#allocation9 + $0xd8] sm:$0xff] }
 0x781   :  { %v5464_v53 = vpack.c.bf16 %v2197_v16, %v2194_v60  ;;  %v7020_v41 = vpack.c.bf16 %v2501_v38, %v2498_v20  ;;  %v2511_v16 = vld [vmem:[#allocation9 + $0x128] sm:$0xff] }
 0x782   :  { %v6967_v28 = vadd.f32 %v1926_v42, %v1925_v33  ;;  %v2198_v33 = vld [vmem:[#allocation8 + $0x148] sm:$0xff]  ;;  %v5462_v42 = vpack.c.bf16 %v2190_v32, %v2187_v30  ;;  %v2504_v30 = vld [vmem:[#allocation9 + $0xf0] sm:$0xff] }
 0x783   :  { %v5496_v63 = vpack.c.bf16 %v2198_v33, %v2195_v31  ;;  %v2507_v32 = vld [vmem:[#allocation9 + $0x108] sm:$0xff]  ;;  %v2514_v31 = vld [vmem:[#allocation9 + $0x140] sm:$0xff] }
 0x784   :  { %2049 = vmatmul.mubr.f32.vlgmr.msra.gmra.mrb[14].mxu0 %v6967_v28  ;;  %4623 = vmatmul.mubr.f32.vlgmr.msra.gmra.mrb[22].mxu1 %v6967_v28  ;;  %v7026_v60 = vpack.c.bf16 %v2507_v32, %v2504_v30  ;;  %v2510_v33 = vld [vmem:[#allocation9 + $0x120] sm:$0xff] }
 0x785   :  { %5443 = vmatpush1.bf16.msra.mxu0 %v5442_v3  ;;  %5475 = vmatpush3.bf16.msra.mxu1 %v5472_v12  ;;  %v5484_v12 = vpack.c.bf16 %v2180_v11, %v2177_v6  ;;  %v2193_v3 = vld [vmem:[#allocation8 + $0x120] sm:$0xff]  ;;  %v2483_v6 = vld [vmem:[#allocation9 + $0x48] sm:$0xff] }
 0x786   :  { %4657 = vmatprep.mubr.f32.mxu1 %v6657_v5  ;;  %5445 = vmatprep.subr.bf16.mxu0 %v5444_v8  ;;  %v2196_v8 = vld [vmem:[#allocation8 + $0x138] sm:$0xff]  ;;  %v7002_v11 = vpack.c.bf16 %v2483_v6, %v2480_v57  ;;  %v2500_v57 = vld [vmem:[#allocation9 + $0xd0] sm:$0xff]  ;;  %v2503_v6 = vld [vmem:[#allocation9 + $0xe8] sm:$0xff] }
 0x787   :  { %5477 = vmatprep.subr.bf16.mxu1 %v5476_v21  ;;  %2286 = vmatprep.mubr.f32.mxu0 %v6310_v0  ;;  %v5466_v39 = vpack.c.bf16 %v2196_v8, %v2193_v3  ;;  %v2479_v3 = vld [vmem:[#allocation9 + $0x28] sm:$0xff] }
 0x789   :  { %5447 = vmatpush1.bf16.msra.mxu0 %v5446_v50  ;;  %5479 = vmatpush3.bf16.msra.mxu1 %v5476_v21  ;;  %v2204_v21 = vld [vmem:[#allocation8 + $0x178] sm:$0xff]  ;;  %v2199_v50 = vld [vmem:[#allocation8 + $0x150] sm:$0xff] }
 0x78a   :  { %5449 = vmatprep.subr.bf16.mxu0 %v5448_v40  ;;  %5481 = vmatprep.subr.bf16.mxu1 %v5480_v44  ;;  %v5500_v43 = vpack.c.bf16 %v2204_v21, %v2201_v9  ;;  %v2202_v40 = vld [vmem:[#allocation8 + $0x168] sm:$0xff]  ;;  %v2520_v9 = vld [vmem:[#allocation9 + $0x170] sm:$0xff] }
 0x78b   :  { %v7039_v21 = vpack.c.bf16 %v2520_v9, %v2517_v19  ;;  %v6209_v19 = vld [vmem:[%s7504_s4] ss:$0 sm:$0xff] }
 0x78d   :  { %5451 = vmatpush1.bf16.msra.mxu0 %v5450_v17  ;;  %5483 = vmatpush3.bf16.msra.mxu1 %v5480_v44  ;;  %v5470_v44 = vpack.c.bf16 %v2202_v40, %v2199_v50  ;;  %v2487_v17 = vld [vmem:[#allocation9 + $0x68] sm:$0xff]  ;;  %v2482_v50 = vld [vmem:[#allocation9 + $0x40] sm:$0xff]  ;;  %v2485_v40 = vld [vmem:[#allocation9 + $0x58] sm:$0xff] }
 0x78e   :  { %5453 = vmatprep.subr.bf16.mxu0 %v5452_v24  ;;  %5485 = vmatprep.subr.bf16.mxu1 %v5484_v12  ;;  %v2490_v24 = vld [vmem:[#allocation9 + $0x80] sm:$0xff] }
 0x791   :  { %5455 = vmatpush1.bf16.msra.mxu0 %v5454_v10  ;;  %5487 = vmatpush3.bf16.msra.mxu1 %v5484_v12  ;;  %v7006_v12 = vpack.c.bf16 %v2490_v24, %v2487_v17  ;;  %v2492_v10 = vld [vmem:[#allocation9 + $0x90] sm:$0xff]  ;;  %v7058_v17 = vpack.c.bf16 %v2503_v6, %v2500_v57  ;;  %v2506_v24 = vld [vmem:[#allocation9 + $0x100] sm:$0xff] }
 0x792   :  { %5457 = vmatprep.subr.bf16.mxu0 %v5456_v26  ;;  %5489 = vmatprep.subr.bf16.mxu1 %v5488_v29  ;;  %v2495_v26 = vld [vmem:[#allocation9 + $0xa8] sm:$0xff]  ;;  %v7062_v49 = vpack.c.bf16 %v2509_v35, %v2506_v24 }
 0x795   :  { %5459 = vmatpush1.bf16.msra.mxu0 %v5458_v27  ;;  %5491 = vmatpush3.bf16.msra.mxu1 %v5488_v29  ;;  %v7014_v29 = vpack.c.bf16 %v2495_v26, %v2492_v10  ;;  %v2505_v27 = vld [vmem:[#allocation9 + $0xf8] sm:$0xff]  ;;  %v7066_v10 = vpack.c.bf16 %v2515_v45, %v2512_v23  ;;  %v2518_v26 = vld [vmem:[#allocation9 + $0x160] sm:$0xff] }
 0x796   :  { %5461 = vmatprep.subr.bf16.mxu0 %v5460_v46  ;;  %5493 = vmatprep.subr.bf16.mxu1 %v5492_v22  ;;  %v2508_v46 = vld [vmem:[#allocation9 + $0x110] sm:$0xff]  ;;  %v7070_v51 = vpack.c.bf16 %v2521_v1, %v2518_v26 }
 0x799   :  { %5463 = vmatpush1.bf16.msra.mxu0 %v5462_v42  ;;  %5495 = vmatpush3.bf16.msra.mxu1 %v5492_v22  ;;  %v7024_v22 = vpack.c.bf16 %v2508_v46, %v2505_v27  ;;  %v7030_v42 = vpack.c.bf16 %v2514_v31, %v2511_v16 }
 0x79a   :  { %5465 = vmatprep.subr.bf16.mxu0 %v5464_v53  ;;  %5497 = vmatprep.subr.bf16.mxu1 %v5496_v63  ;;  %v2513_v53 = vld [vmem:[#allocation9 + $0x138] sm:$0xff] }
 0x79b   :  { %v7032_v8 = vpack.c.bf16 %v2513_v53, %v2510_v33 }
 0x79d   :  { %5467 = vmatpush1.bf16.msra.mxu0 %v5466_v39  ;;  %5499 = vmatpush3.bf16.msra.mxu1 %v5496_v63  ;;  %v2476_v63 = vld [vmem:[#allocation9 + $0x10] sm:$0xff] }
 0x79e   :  { %5469 = vmatprep.subr.bf16.mxu0 %v5468_v34  ;;  %5501 = vmatprep.subr.bf16.mxu1 %v5500_v43  ;;  %v7034_v14 = vpack.c.bf16 %v2479_v3, %v2476_v63  ;;  %v2516_v39 = vld [vmem:[#allocation9 + $0x150] sm:$0xff]  ;;  %v2519_v34 = vld [vmem:[#allocation9 + $0x168] sm:$0xff] }
 0x7a1   :  { %5471 = vmatpush1.bf16.msra.mxu0 %v5470_v44  ;;  %5503 = vmatpush3.bf16.msra.mxu1 %v5500_v43  ;;  %v7042_v43 = vpack.c.bf16 %v2519_v34, %v2516_v39  ;;  %v7045_v44 = vpack.c.bf16 %v2485_v40, %v2482_v50 }
 0x7a2   :  { %5536 = vmatprep.subr.bf16.mxu1 %v6311_v48 }
 0x7a4   :  { %2287 = vmatmul.mubr.f32.vlgmr.msra.gmra.mrb[16].mxu0 %v6657_v5  ;;  %4658 = vmatmul.mubr.f32.vlgmr.msra.gmra.mrb[24].mxu1 %v6701_v58  ;;  %v2475_v5 = vld [vmem:[#allocation9 + $0x8] sm:$0xff] }
 0x7a5   :  { %4660 = vmatprep.mubr.f32.mxu1 %v6744_v62  ;;  %2292 = vmatprep.mubr.f32.mxu0 %v6310_v0 }
 0x7a6   :  { %5538 = vmatpush3.bf16.msra.mxu1 %v7034_v14 }
 0x7a7   :  { %5539 = vmatprep.subr.bf16.mxu1 %v6311_v48 }
 0x7a8   :  { %2293 = vmatmul.mubr.f32.gmra.mrb[18].mxu0 %v6701_v58  ;;  %4661 = vmatmul.mubr.f32.gmra.mrb[26].mxu1 %v6831_v61  ;;  %v2478_v58 = vld [vmem:[#allocation9 + $0x20] sm:$0xff] }
 0x7a9   :  { %4663 = vmatprep.mubr.f32.mxu1 %v6881_v54  ;;  %2298 = vmatprep.mubr.f32.mxu0 %v6310_v0 }
 0x7aa   :  { %5541 = vmatpush3.bf16.msra.mxu1 %v7045_v44 }
 0x7ab   :  { %5542 = vmatprep.subr.bf16.mxu1 %v6311_v48 }
 0x7ac   :  { %2299 = vmatmul.mubr.f32.gmra.mrb[20].mxu0 %v6744_v62  ;;  %4664 = vmatmul.mubr.f32.gmra.mrb[28].mxu1 %v6925_v25  ;;  %v6994_v62 = vpack.c.bf16 %v2478_v58, %v2475_v5  ;;  %v2488_v5 = vld [vmem:[#allocation9 + $0x70] sm:$0xff]  ;;  %v2491_v58 = vld [vmem:[#allocation9 + $0x88] sm:$0xff] }
 0x7ad   :  { %4666 = vmatprep.mubr.f32.mxu1 %v6967_v28  ;;  %2304 = vmatprep.mubr.f32.mxu0 %v6310_v0 }
 0x7ae   :  { %5505 = vmatprep.subr.bf16.mxu0 %v6994_v62 }
 0x7b0   :  { %2305 = vmatmul.mubr.f32.gmra.mrb[22].mxu0 %v6831_v61  ;;  %v2477_v61 = vld [vmem:[#allocation9 + $0x18] sm:$0xff] }
 0x7b1   :  { %2310 = vmatprep.mubr.f32.mxu0 %v6310_v0  ;;  %v6996_v13 = vpack.c.bf16 %v2477_v61, %v2474_v7  ;;  %v2494_v7 = vld [vmem:[#allocation9 + $0xa0] sm:$0xff]  ;;  %v7051_v61 = vpack.c.bf16 %v2491_v58, %v2488_v5 }
 0x7b3   :  { %5507 = vmatpush1.bf16.msra.mxu0 %v6996_v13  ;;  %5544 = vmatpush3.bf16.msra.mxu1 %v7051_v61 }
 0x7b4   :  { %2311 = vmatmul.mubr.f32.gmra.mrb[24].mxu0 %v6881_v54  ;;  %v2481_v54 = vld [vmem:[#allocation9 + $0x38] sm:$0xff]  ;;  %5545 = vmatprep.subr.bf16.mxu1 %v6311_v48 }
 0x7b5   :  { %2316 = vmatprep.mubr.f32.mxu0 %v6310_v0 }
 0x7b8   :  { %2317 = vmatmul.mubr.f32.gmra.mrb[26].mxu0 %v6925_v25  ;;  %v2484_v25 = vld [vmem:[#allocation9 + $0x50] sm:$0xff] }
 0x7b9   :  { %2322 = vmatprep.mubr.f32.mxu0 %v6310_v0  ;;  %v7000_v47 = vpack.c.bf16 %v2484_v25, %v2481_v54  ;;  %v2497_v54 = vld [vmem:[#allocation9 + $0xb8] sm:$0xff] }
 0x7ba   :  { %v7054_v25 = vpack.c.bf16 %v2497_v54, %v2494_v7 }
 0x7bb   :  { %5509 = vmatprep.subr.bf16.mxu0 %v7000_v47 }
 0x7bc   :  { %2323 = vmatmul.mubr.f32.gmra.mrb[28].mxu0 %v6967_v28  ;;  %5547 = vmatpush3.bf16.msra.mxu1 %v7054_v25 }
 0x7bd   :  { %2328 = vmatprep.mubr.f32.mxu0 %v6310_v0  ;;  %5511 = vmatpush1.bf16.msra.mxu0 %v7002_v11 }
 0x7be   :  { %5513 = vmatprep.subr.bf16.mxu0 %v7006_v12  ;;  %5548 = vmatprep.subr.bf16.mxu1 %v6311_v48 }
 0x7c0   :  { %5550 = vmatpush3.bf16.msra.mxu1 %v7058_v17 }
 0x7c1   :  { %5515 = vmatpush1.bf16.msra.mxu0 %v7008_v15  ;;  %5551 = vmatprep.subr.bf16.mxu1 %v6311_v48 }
 0x7c2   :  { %5517 = vmatprep.subr.bf16.mxu0 %v7012_v56 }
 0x7c4   :  { %5553 = vmatpush3.bf16.msra.mxu1 %v7062_v49 }
 0x7c5   :  { %5519 = vmatpush1.bf16.msra.mxu0 %v7014_v29  ;;  %5554 = vmatprep.subr.bf16.mxu1 %v6311_v48 }
 0x7c6   :  { %5521 = vmatprep.subr.bf16.mxu0 %v7018_v18 }
 0x7c8   :  { %5556 = vmatpush3.bf16.msra.mxu1 %v7066_v10 }
 0x7c9   :  { %5523 = vmatpush1.bf16.msra.mxu0 %v7020_v41  ;;  %5557 = vmatprep.subr.bf16.mxu1 %v6311_v48 }
 0x7ca   :  { %5525 = vmatprep.subr.bf16.mxu0 %v7024_v22 }
 0x7cc   :  { %5559 = vmatpush3.bf16.msra.mxu1 %v7070_v51 }
 0x7cd   :  { %5527 = vmatpush1.bf16.msra.mxu0 %v7026_v60  ;;  %5592 = vmatprep.subr.bf16.mxu1 %v6311_v48 }
 0x7ce   :  { %5529 = vmatprep.subr.bf16.mxu0 %v7030_v42 }
 0x7d1   :  { %5531 = vmatpush1.bf16.msra.mxu0 %v7032_v8 }
 0x7d2   :  { %5533 = vmatprep.subr.bf16.mxu0 %v7039_v21 }
 0x7d5   :  { %5535 = vmatpush1.bf16.msra.mxu0 %v7042_v43 }
 0x7d6   :  { %5561 = vmatprep.subr.bf16.mxu0 %v6994_v62 }
 0x857   :  { %v2050_v20 = vpop.f32.mrb[14].mxu0  ;;  %v2121_v38 = vpop.f32.mrb[22].mxu1 }
 0x858   :  { %v5990_v27 = vadd.f32 %v2050_v20, %v6637_v59  ;;  %v2052_v46 = vpop.f32.mrb[15].mxu0  ;;  %v4624_v30 = vpop.f32.mrb[23].mxu1  ;;  %v2139_v9 = vadd.f32 %v6209_v19, %v2121_v38 }
 0x859   :  { %v5991_v16 = vadd.f32 %v2052_v46, %v6643_v2 }
 0x85a   :  { %v3986_v32 = vmul.f32 -1.442695, %v5990_v27 }
 0x85b   :  { %v3987_v31 = vmul.f32 -1.442695, %v5991_v16 }
 0x85c   :  { %6119 = vpow2.f32 %v3986_v32 }
 0x85d   :  { %6121 = vpow2.f32 %v3987_v31 }
 0x866   :  { %v6120_v33 = vpop.eup %6119 }
 0x867   :  { %v2129_v53 = vadd.f32 1.0, %v6120_v33  ;;  %v6122_v63 = vpop.eup %6121 }
 0x868   :  { %v2136_v3 = vadd.f32 1.0, %v6122_v63 }
 0x869   :  { %6123 = vrcp.f32 %v2129_v53 }
 0x86a   :  { %6125 = vrcp.f32 %v2136_v3 }
 0x873   :  { %v6124_v39 = vpop.eup %6123 }
 0x874   :  { %v2140_v59 = vmul.f32 %v6124_v39, %v2139_v9  ;;  %v6126_v58 = vpop.eup %6125 }
 0x875   :  { %v2143_v57 = vsub.f32 1.0, %v6126_v58  ;;  %v2145_v35 = vmul.f32 %v6126_v58, %v6967_v28  ;;  %v2205_v28 = vld [vmem:[%s7507_s7] sm:$0x7] }
 0x876   :  { %v2141_v34 = vadd.f32 %v2140_v59, %v6645_v4  ;;  %v7143_v26 = vrot.slane %v2205_v28, %v111_v52  ;;  %v7147_v20 = vrot.slane %v2205_v28, %v115_v55  ;;  %v7154_v55 = vld [vmem:[%s7508_s8] ss:$0 sm:$0xff]  ;;  %v7158_v63 = vrot.slane %v2205_v28, %v119_v37 }
 0x877   :  { %v7081_v50 = vpop.f32.mrb[24].mxu1 }
 0x878   :  { %6127 = vtanh.f32 %v2141_v34  ;;  %v7083_v2 = vpop.f32.mrb[25].mxu1 }
 0x879   :  { %v2402_v39 = vadd.f32 %v7083_v2, %v7158_v63 }
 0x87b   :  { %v7085_v40 = vpop.f32.mrb[26].mxu1 }
 0x87c   :  { %v7087_v5 = vpop.f32.mrb[27].mxu1 }
 0x87f   :  { %v7089_v7 = vpop.f32.mrb[28].mxu1 }
 0x880   :  { %v7091_v54 = vpop.f32.mrb[29].mxu1 }
 0x882   :  { %v6128_v6 = vpop.eup %6127 }
 0x883   :  { %v2144_v24 = vmul.f32 %v6128_v6, %v2143_v57 }
 0x885   :  { %v2146_v4 = vadd.f32 %v2145_v35, %v2144_v24 }
 0x887   :  { %2329 = vmatmul.mubr.f32.gmra.mrb[30].mxu0 %v2146_v4  ;;  %4667 = vmatmul.mubr.f32.gmra.mrb[30].mxu1 %v2146_v4 }
 0x888   :  { %2586 = vmatprep.mubr.f32.mxu0 %v6310_v0  ;;  %4701 = vmatprep.mubr.msk.f32.mxu1 %vm6312_vm1, %v6310_v0 }
 0x88b   :  { %2587 = vmatmul.mubr.f32.vlgmr.msra.gmra.mrb[16].mxu0 %v6310_v0  ;;  %4702 = vmatmul.mubr.f32.vlgmr.msra.gmra.mrb[32].mxu1 %v6310_v0 }
 0x88c   :  { %5563 = vmatpush1.bf16.msra.mxu0 %v6996_v13  ;;  %5594 = vmatpush3.bf16.msra.mxu1 %v7034_v14 }
 0x88d   :  { %5565 = vmatprep.subr.bf16.mxu0 %v7000_v47  ;;  %5595 = vmatprep.subr.bf16.mxu1 %v6311_v48 }
 0x88e   :  { %2752 = vmatprep.mubr.f32.mxu0 %v6310_v0  ;;  %4736 = vmatprep.mubr.msk.f32.mxu1 %vm6312_vm1, %v6310_v0 }
 0x890   :  { %5567 = vmatpush1.bf16.msra.mxu0 %v7002_v11  ;;  %5597 = vmatpush3.bf16.msra.mxu1 %v7045_v44 }
 0x891   :  { %5569 = vmatprep.subr.bf16.mxu0 %v7006_v12  ;;  %5598 = vmatprep.subr.bf16.mxu1 %v6311_v48 }
 0x894   :  { %5571 = vmatpush1.bf16.msra.mxu0 %v7008_v15  ;;  %5600 = vmatpush3.bf16.msra.mxu1 %v7051_v61 }
 0x895   :  { %5573 = vmatprep.subr.bf16.mxu0 %v7012_v56  ;;  %5601 = vmatprep.subr.bf16.mxu1 %v6311_v48 }
 0x898   :  { %5575 = vmatpush1.bf16.msra.mxu0 %v7014_v29  ;;  %5603 = vmatpush3.bf16.msra.mxu1 %v7054_v25 }
 0x899   :  { %5577 = vmatprep.subr.bf16.mxu0 %v7018_v18  ;;  %5604 = vmatprep.subr.bf16.mxu1 %v6311_v48 }
 0x89c   :  { %5579 = vmatpush1.bf16.msra.mxu0 %v7020_v41  ;;  %5606 = vmatpush3.bf16.msra.mxu1 %v7058_v17 }
 0x89d   :  { %5581 = vmatprep.subr.bf16.mxu0 %v7024_v22  ;;  %5607 = vmatprep.subr.bf16.mxu1 %v6311_v48 }
 0x8a0   :  { %5583 = vmatpush1.bf16.msra.mxu0 %v7026_v60  ;;  %5609 = vmatpush3.bf16.msra.mxu1 %v7062_v49 }
 0x8a1   :  { %5585 = vmatprep.subr.bf16.mxu0 %v7030_v42  ;;  %5610 = vmatprep.subr.bf16.mxu1 %v6311_v48 }
 0x8a4   :  { %5587 = vmatpush1.bf16.msra.mxu0 %v7032_v8  ;;  %5612 = vmatpush3.bf16.msra.mxu1 %v7066_v10 }
 0x8a5   :  { %5589 = vmatprep.subr.bf16.mxu0 %v7039_v21  ;;  %5613 = vmatprep.subr.bf16.mxu1 %v6311_v48 }
 0x8a8   :  { %5591 = vmatpush1.bf16.msra.mxu0 %v7042_v43  ;;  %5615 = vmatpush3.bf16.msra.mxu1 %v7070_v51 }
 0x8a9   :  { %5617 = vmatprep.subr.bf16.mxu0 %v6994_v62  ;;  %5648 = vmatprep.subr.bf16.mxu1 %v6311_v48 }
 0x95a   :  { %v7137_v23 = vpop.f32.mrb[30].mxu1 }
 0x95b   :  { %v7139_v45 = vpop.f32.mrb[31].mxu1 }
 0x95e   :  { %v2588_v1 = vpop.f32.mrb[16].mxu0  ;;  %v2659_v38 = vpop.f32.mrb[32].mxu1 }
 0x95f   :  { %v5992_v27 = vadd.f32 %v2588_v1, %v7143_v26  ;;  %v2590_v46 = vpop.f32.mrb[17].mxu0  ;;  %v4703_v30 = vpop.f32.mrb[33].mxu1  ;;  %v2677_v19 = vadd.f32 %v7154_v55, %v2659_v38 }
 0x960   :  { %v5993_v16 = vadd.f32 %v2590_v46, %v7147_v20 }
 0x961   :  { %v3989_v32 = vmul.f32 -1.442695, %v5992_v27 }
 0x962   :  { %v3990_v31 = vmul.f32 -1.442695, %v5993_v16 }
 0x963   :  { %6129 = vpow2.f32 %v3989_v32 }
 0x964   :  { %6131 = vpow2.f32 %v3990_v31 }
 0x96d   :  { %v6130_v33 = vpop.eup %6129 }
 0x96e   :  { %v2667_v53 = vadd.f32 1.0, %v6130_v33  ;;  %v6132_v52 = vpop.eup %6131 }
 0x96f   :  { %v2674_v3 = vadd.f32 1.0, %v6132_v52  ;;  %v2407_v52 = vadd.f32 %v7081_v50, %v7158_v63 }
 0x970   :  { %6133 = vrcp.f32 %v2667_v53 }
 0x971   :  { %6135 = vrcp.f32 %v2674_v3 }
 0x97a   :  { %v6134_v9 = vpop.eup %6133 }
 0x97b   :  { %v2678_v59 = vmul.f32 %v6134_v9, %v2677_v19  ;;  %v6136_v58 = vpop.eup %6135 }
 0x97c   :  { %v2681_v57 = vsub.f32 1.0, %v6136_v58  ;;  %v2683_v35 = vmul.f32 0.0, %v6136_v58 }
 0x97d   :  { %v2679_v34 = vadd.f32 %v2678_v59, %v2402_v39 }
 0x97f   :  { %6137 = vtanh.f32 %v2679_v34 }
 0x989   :  { %v6138_v6 = vpop.eup %6137 }
 0x98a   :  { %v2682_v24 = vmul.f32 %v6138_v6, %v2681_v57 }
 0x98c   :  { %v7163_v4 = vadd.f32 %v2683_v35, %v2682_v24 }
 0x98e   :  { %2753 = vmatmul.mubr.f32.vlgmr.msra.gmra.mrb[18].mxu0 %v7163_v4  ;;  %4737 = vmatmul.mubr.f32.vlgmr.msra.gmra.mrb[34].mxu1 %v7163_v4 }
 0x98f   :  { %5619 = vmatpush1.bf16.msra.mxu0 %v6996_v13  ;;  %5650 = vmatpush3.bf16.msra.mxu1 %v7034_v14 }
 0x990   :  { %5621 = vmatprep.subr.bf16.mxu0 %v7000_v47  ;;  %5651 = vmatprep.subr.bf16.mxu1 %v6311_v48 }
 0x991   :  { %2918 = vmatprep.mubr.f32.mxu0 %v6310_v0  ;;  %4771 = vmatprep.mubr.msk.f32.mxu1 %vm6312_vm1, %v6310_v0 }
 0x993   :  { %5623 = vmatpush1.bf16.msra.mxu0 %v7002_v11  ;;  %5653 = vmatpush3.bf16.msra.mxu1 %v7045_v44 }
 0x994   :  { %5625 = vmatprep.subr.bf16.mxu0 %v7006_v12  ;;  %5654 = vmatprep.subr.bf16.mxu1 %v6311_v48 }
 0x997   :  { %5627 = vmatpush1.bf16.msra.mxu0 %v7008_v15  ;;  %5656 = vmatpush3.bf16.msra.mxu1 %v7051_v61 }
 0x998   :  { %5629 = vmatprep.subr.bf16.mxu0 %v7012_v56  ;;  %5657 = vmatprep.subr.bf16.mxu1 %v6311_v48 }
 0x99b   :  { %5631 = vmatpush1.bf16.msra.mxu0 %v7014_v29  ;;  %5659 = vmatpush3.bf16.msra.mxu1 %v7054_v25 }
 0x99c   :  { %5633 = vmatprep.subr.bf16.mxu0 %v7018_v18  ;;  %5660 = vmatprep.subr.bf16.mxu1 %v6311_v48 }
 0x99f   :  { %5635 = vmatpush1.bf16.msra.mxu0 %v7020_v41  ;;  %5662 = vmatpush3.bf16.msra.mxu1 %v7058_v17 }
 0x9a0   :  { %5637 = vmatprep.subr.bf16.mxu0 %v7024_v22  ;;  %5663 = vmatprep.subr.bf16.mxu1 %v6311_v48 }
 0x9a3   :  { %5639 = vmatpush1.bf16.msra.mxu0 %v7026_v60  ;;  %5665 = vmatpush3.bf16.msra.mxu1 %v7062_v49 }
 0x9a4   :  { %5641 = vmatprep.subr.bf16.mxu0 %v7030_v42  ;;  %5666 = vmatprep.subr.bf16.mxu1 %v6311_v48 }
 0x9a7   :  { %5643 = vmatpush1.bf16.msra.mxu0 %v7032_v8  ;;  %5668 = vmatpush3.bf16.msra.mxu1 %v7066_v10 }
 0x9a8   :  { %5645 = vmatprep.subr.bf16.mxu0 %v7039_v21  ;;  %5669 = vmatprep.subr.bf16.mxu1 %v6311_v48 }
 0x9ab   :  { %5647 = vmatpush1.bf16.msra.mxu0 %v7042_v43  ;;  %5671 = vmatpush3.bf16.msra.mxu1 %v7070_v51 }
 0x9ac   :  { %5673 = vmatprep.subr.bf16.mxu0 %v6994_v62  ;;  %5704 = vmatprep.subr.bf16.mxu1 %v6311_v48 }
 0xa61   :  { %v2754_v36 = vpop.f32.mrb[18].mxu0  ;;  %v2825_v37 = vpop.f32.mrb[34].mxu1 }
 0xa62   :  { %v5994_v2 = vadd.f32 %v2754_v36, %v7143_v26  ;;  %v2756_v28 = vpop.f32.mrb[19].mxu0  ;;  %v4738_v1 = vpop.f32.mrb[35].mxu1  ;;  %v2843_v33 = vadd.f32 %v7154_v55, %v2825_v37 }
 0xa63   :  { %v5995_v27 = vadd.f32 %v2756_v28, %v7147_v20 }
 0xa64   :  { %v3991_v38 = vmul.f32 -1.442695, %v5994_v2 }
 0xa65   :  { %v3992_v46 = vmul.f32 -1.442695, %v5995_v27 }
 0xa66   :  { %6139 = vpow2.f32 %v3991_v38 }
 0xa67   :  { %6141 = vpow2.f32 %v3992_v46 }
 0xa70   :  { %v6140_v30 = vpop.eup %6139 }
 0xa71   :  { %v2833_v32 = vadd.f32 1.0, %v6140_v30  ;;  %v6142_v16 = vpop.eup %6141 }
 0xa72   :  { %v2840_v31 = vadd.f32 1.0, %v6142_v16 }
 0xa73   :  { %6143 = vrcp.f32 %v2833_v32  ;;  %v2412_v32 = vadd.f32 %v7087_v5, %v7158_v63 }
 0xa74   :  { %6145 = vrcp.f32 %v2840_v31 }
 0xa7d   :  { %v6144_v53 = vpop.eup %6143 }
 0xa7e   :  { %v2844_v3 = vmul.f32 %v6144_v53, %v2843_v33  ;;  %v6146_v9 = vpop.eup %6145 }
 0xa7f   :  { %v2847_v39 = vsub.f32 1.0, %v6146_v9  ;;  %v2849_v58 = vmul.f32 %v6146_v9, %v7163_v4 }
 0xa80   :  { %v2845_v19 = vadd.f32 %v2844_v3, %v2407_v52 }
 0xa82   :  { %6147 = vtanh.f32 %v2845_v19 }
 0xa8c   :  { %v6148_v59 = vpop.eup %6147 }
 0xa8d   :  { %v2848_v34 = vmul.f32 %v6148_v59, %v2847_v39 }
 0xa8f   :  { %v7208_v57 = vadd.f32 %v2849_v58, %v2848_v34 }
 0xa91   :  { %2919 = vmatmul.mubr.f32.vlgmr.msra.gmra.mrb[20].mxu0 %v7208_v57  ;;  %4772 = vmatmul.mubr.f32.vlgmr.msra.gmra.mrb[36].mxu1 %v7208_v57 }
 0xa92   :  { %5675 = vmatpush1.bf16.msra.mxu0 %v6996_v13  ;;  %5706 = vmatpush3.bf16.msra.mxu1 %v7034_v14 }
 0xa93   :  { %5677 = vmatprep.subr.bf16.mxu0 %v7000_v47  ;;  %5707 = vmatprep.subr.bf16.mxu1 %v6311_v48 }
 0xa94   :  { %3084 = vmatprep.mubr.f32.mxu0 %v6310_v0  ;;  %4806 = vmatprep.mubr.msk.f32.mxu1 %vm6312_vm1, %v6310_v0 }
 0xa96   :  { %5679 = vmatpush1.bf16.msra.mxu0 %v7002_v11  ;;  %5709 = vmatpush3.bf16.msra.mxu1 %v7045_v44 }
 0xa97   :  { %5681 = vmatprep.subr.bf16.mxu0 %v7006_v12  ;;  %5710 = vmatprep.subr.bf16.mxu1 %v6311_v48 }
 0xa9a   :  { %5683 = vmatpush1.bf16.msra.mxu0 %v7008_v15  ;;  %5712 = vmatpush3.bf16.msra.mxu1 %v7051_v61 }
 0xa9b   :  { %5685 = vmatprep.subr.bf16.mxu0 %v7012_v56  ;;  %5713 = vmatprep.subr.bf16.mxu1 %v6311_v48 }
 0xa9e   :  { %5687 = vmatpush1.bf16.msra.mxu0 %v7014_v29  ;;  %5715 = vmatpush3.bf16.msra.mxu1 %v7054_v25 }
 0xa9f   :  { %5689 = vmatprep.subr.bf16.mxu0 %v7018_v18  ;;  %5716 = vmatprep.subr.bf16.mxu1 %v6311_v48 }
 0xaa2   :  { %5691 = vmatpush1.bf16.msra.mxu0 %v7020_v41  ;;  %5718 = vmatpush3.bf16.msra.mxu1 %v7058_v17 }
 0xaa3   :  { %5693 = vmatprep.subr.bf16.mxu0 %v7024_v22  ;;  %5719 = vmatprep.subr.bf16.mxu1 %v6311_v48 }
 0xaa6   :  { %5695 = vmatpush1.bf16.msra.mxu0 %v7026_v60  ;;  %5721 = vmatpush3.bf16.msra.mxu1 %v7062_v49 }
 0xaa7   :  { %5697 = vmatprep.subr.bf16.mxu0 %v7030_v42  ;;  %5722 = vmatprep.subr.bf16.mxu1 %v6311_v48 }
 0xaaa   :  { %5699 = vmatpush1.bf16.msra.mxu0 %v7032_v8  ;;  %5724 = vmatpush3.bf16.msra.mxu1 %v7066_v10 }
 0xaab   :  { %5701 = vmatprep.subr.bf16.mxu0 %v7039_v21  ;;  %5725 = vmatprep.subr.bf16.mxu1 %v6311_v48 }
 0xaae   :  { %5703 = vmatpush1.bf16.msra.mxu0 %v7042_v43  ;;  %5727 = vmatpush3.bf16.msra.mxu1 %v7070_v51 }
 0xaaf   :  { %5729 = vmatprep.subr.bf16.mxu0 %v6994_v62  ;;  %5760 = vmatprep.subr.bf16.mxu1 %v6311_v48 }
 0xb64   :  { %v2920_v50 = vpop.f32.mrb[20].mxu0  ;;  %v2991_v6 = vpop.f32.mrb[36].mxu1 }
 0xb65   :  { %v5996_v24 = vadd.f32 %v2920_v50, %v7143_v26  ;;  %v2922_v35 = vpop.f32.mrb[21].mxu0  ;;  %v4773_v4 = vpop.f32.mrb[37].mxu1  ;;  %v3009_v46 = vadd.f32 %v7154_v55, %v2991_v6 }
 0xb66   :  { %v5997_v37 = vadd.f32 %v2922_v35, %v7147_v20 }
 0xb67   :  { %v3993_v36 = vmul.f32 -1.442695, %v5996_v24 }
 0xb68   :  { %v3994_v2 = vmul.f32 -1.442695, %v5997_v37 }
 0xb69   :  { %6149 = vpow2.f32 %v3993_v36 }
 0xb6a   :  { %6151 = vpow2.f32 %v3994_v2 }
 0xb73   :  { %v6150_v28 = vpop.eup %6149 }
 0xb74   :  { %v2999_v1 = vadd.f32 1.0, %v6150_v28  ;;  %v6152_v38 = vpop.eup %6151  ;;  %v2417_v28 = vadd.f32 %v7085_v40, %v7158_v63 }
 0xb75   :  { %v3006_v27 = vadd.f32 1.0, %v6152_v38 }
 0xb76   :  { %6153 = vrcp.f32 %v2999_v1 }
 0xb77   :  { %6155 = vrcp.f32 %v3006_v27 }
 0xb80   :  { %v6154_v30 = vpop.eup %6153 }
 0xb81   :  { %v3010_v16 = vmul.f32 %v6154_v30, %v3009_v46  ;;  %v6156_v33 = vpop.eup %6155 }
 0xb82   :  { %v3013_v53 = vsub.f32 1.0, %v6156_v33  ;;  %v3015_v19 = vmul.f32 %v6156_v33, %v7208_v57 }
 0xb83   :  { %v3011_v31 = vadd.f32 %v3010_v16, %v2412_v32 }
 0xb85   :  { %6157 = vtanh.f32 %v3011_v31 }
 0xb8f   :  { %v6158_v52 = vpop.eup %6157 }
 0xb90   :  { %v3014_v3 = vmul.f32 %v6158_v52, %v3013_v53 }
 0xb92   :  { %v7253_v9 = vadd.f32 %v3015_v19, %v3014_v3 }
 0xb94   :  { %3085 = vmatmul.mubr.f32.vlgmr.msra.gmra.mrb[22].mxu0 %v7253_v9  ;;  %4807 = vmatmul.mubr.f32.vlgmr.msra.gmra.mrb[38].mxu1 %v7253_v9 }
 0xb95   :  { %5731 = vmatpush1.bf16.msra.mxu0 %v6996_v13  ;;  %5762 = vmatpush3.bf16.msra.mxu1 %v7034_v14 }
 0xb96   :  { %5733 = vmatprep.subr.bf16.mxu0 %v7000_v47  ;;  %5763 = vmatprep.subr.bf16.mxu1 %v6311_v48 }
 0xb97   :  { %3250 = vmatprep.mubr.f32.mxu0 %v6310_v0  ;;  %4841 = vmatprep.mubr.msk.f32.mxu1 %vm6312_vm1, %v6310_v0 }
 0xb99   :  { %5735 = vmatpush1.bf16.msra.mxu0 %v7002_v11  ;;  %5765 = vmatpush3.bf16.msra.mxu1 %v7045_v44 }
 0xb9a   :  { %5737 = vmatprep.subr.bf16.mxu0 %v7006_v12  ;;  %5766 = vmatprep.subr.bf16.mxu1 %v6311_v48 }
 0xb9d   :  { %5739 = vmatpush1.bf16.msra.mxu0 %v7008_v15  ;;  %5768 = vmatpush3.bf16.msra.mxu1 %v7051_v61 }
 0xb9e   :  { %5741 = vmatprep.subr.bf16.mxu0 %v7012_v56  ;;  %5769 = vmatprep.subr.bf16.mxu1 %v6311_v48 }
 0xba1   :  { %5743 = vmatpush1.bf16.msra.mxu0 %v7014_v29  ;;  %5771 = vmatpush3.bf16.msra.mxu1 %v7054_v25 }
 0xba2   :  { %5745 = vmatprep.subr.bf16.mxu0 %v7018_v18  ;;  %5772 = vmatprep.subr.bf16.mxu1 %v6311_v48 }
 0xba5   :  { %5747 = vmatpush1.bf16.msra.mxu0 %v7020_v41  ;;  %5774 = vmatpush3.bf16.msra.mxu1 %v7058_v17 }
 0xba6   :  { %5749 = vmatprep.subr.bf16.mxu0 %v7024_v22  ;;  %5775 = vmatprep.subr.bf16.mxu1 %v6311_v48 }
 0xba9   :  { %5751 = vmatpush1.bf16.msra.mxu0 %v7026_v60  ;;  %5777 = vmatpush3.bf16.msra.mxu1 %v7062_v49 }
 0xbaa   :  { %5753 = vmatprep.subr.bf16.mxu0 %v7030_v42  ;;  %5778 = vmatprep.subr.bf16.mxu1 %v6311_v48 }
 0xbad   :  { %5755 = vmatpush1.bf16.msra.mxu0 %v7032_v8  ;;  %5780 = vmatpush3.bf16.msra.mxu1 %v7066_v10 }
 0xbae   :  { %5757 = vmatprep.subr.bf16.mxu0 %v7039_v21  ;;  %5781 = vmatprep.subr.bf16.mxu1 %v6311_v48 }
 0xbb1   :  { %5759 = vmatpush1.bf16.msra.mxu0 %v7042_v43  ;;  %5783 = vmatpush3.bf16.msra.mxu1 %v7070_v51 }
 0xbb2   :  { %5785 = vmatprep.subr.bf16.mxu0 %v6994_v62  ;;  %5816 = vmatprep.subr.bf16.mxu1 %v6311_v48 }
 0xc67   :  { %v3086_v5 = vpop.f32.mrb[22].mxu0  ;;  %v3157_v39 = vpop.f32.mrb[38].mxu1 }
 0xc68   :  { %v5998_v59 = vadd.f32 %v3086_v5, %v7143_v26  ;;  %v3088_v34 = vpop.f32.mrb[23].mxu0  ;;  %v4808_v58 = vpop.f32.mrb[39].mxu1  ;;  %v3175_v37 = vadd.f32 %v7154_v55, %v3157_v39 }
 0xc69   :  { %v5999_v50 = vadd.f32 %v3088_v34, %v7147_v20 }
 0xc6a   :  { %v3995_v57 = vmul.f32 -1.442695, %v5998_v59 }
 0xc6b   :  { %v3996_v6 = vmul.f32 -1.442695, %v5999_v50 }
 0xc6c   :  { %6159 = vpow2.f32 %v3995_v57 }
 0xc6d   :  { %6161 = vpow2.f32 %v3996_v6  ;;  %v2422_v6 = vadd.f32 %v7091_v54, %v7158_v63 }
 0xc76   :  { %v6160_v24 = vpop.eup %6159 }
 0xc77   :  { %v3165_v35 = vadd.f32 1.0, %v6160_v24  ;;  %v6162_v4 = vpop.eup %6161 }
 0xc78   :  { %v3172_v36 = vadd.f32 1.0, %v6162_v4 }
 0xc79   :  { %6163 = vrcp.f32 %v3165_v35 }
 0xc7a   :  { %6165 = vrcp.f32 %v3172_v36 }
 0xc83   :  { %v6164_v2 = vpop.eup %6163 }
 0xc84   :  { %v3176_v1 = vmul.f32 %v6164_v2, %v3175_v37  ;;  %v6166_v27 = vpop.eup %6165 }
 0xc85   :  { %v3179_v46 = vsub.f32 1.0, %v6166_v27  ;;  %v3181_v16 = vmul.f32 %v6166_v27, %v7253_v9 }
 0xc86   :  { %v3177_v38 = vadd.f32 %v3176_v1, %v2417_v28 }
 0xc88   :  { %6167 = vtanh.f32 %v3177_v38 }
 0xc92   :  { %v6168_v30 = vpop.eup %6167 }
 0xc93   :  { %v3180_v32 = vmul.f32 %v6168_v30, %v3179_v46 }
 0xc95   :  { %v7298_v31 = vadd.f32 %v3181_v16, %v3180_v32 }
 0xc97   :  { %3251 = vmatmul.mubr.f32.vlgmr.msra.gmra.mrb[24].mxu0 %v7298_v31  ;;  %4842 = vmatmul.mubr.f32.vlgmr.msra.gmra.mrb[40].mxu1 %v7298_v31 }
 0xc98   :  { %5787 = vmatpush1.bf16.msra.mxu0 %v6996_v13  ;;  %5818 = vmatpush3.bf16.msra.mxu1 %v7034_v14 }
 0xc99   :  { %5789 = vmatprep.subr.bf16.mxu0 %v7000_v47  ;;  %5819 = vmatprep.subr.bf16.mxu1 %v6311_v48 }
 0xc9a   :  { %3416 = vmatprep.mubr.f32.mxu0 %v6310_v0  ;;  %4876 = vmatprep.mubr.msk.f32.mxu1 %vm6312_vm1, %v6310_v0 }
 0xc9c   :  { %5791 = vmatpush1.bf16.msra.mxu0 %v7002_v11  ;;  %5821 = vmatpush3.bf16.msra.mxu1 %v7045_v44 }
 0xc9d   :  { %5793 = vmatprep.subr.bf16.mxu0 %v7006_v12  ;;  %5822 = vmatprep.subr.bf16.mxu1 %v6311_v48 }
 0xca0   :  { %5795 = vmatpush1.bf16.msra.mxu0 %v7008_v15  ;;  %5824 = vmatpush3.bf16.msra.mxu1 %v7051_v61 }
 0xca1   :  { %5797 = vmatprep.subr.bf16.mxu0 %v7012_v56  ;;  %5825 = vmatprep.subr.bf16.mxu1 %v6311_v48 }
 0xca4   :  { %5799 = vmatpush1.bf16.msra.mxu0 %v7014_v29  ;;  %5827 = vmatpush3.bf16.msra.mxu1 %v7054_v25 }
 0xca5   :  { %5801 = vmatprep.subr.bf16.mxu0 %v7018_v18  ;;  %5828 = vmatprep.subr.bf16.mxu1 %v6311_v48 }
 0xca8   :  { %5803 = vmatpush1.bf16.msra.mxu0 %v7020_v41  ;;  %5830 = vmatpush3.bf16.msra.mxu1 %v7058_v17 }
 0xca9   :  { %5805 = vmatprep.subr.bf16.mxu0 %v7024_v22  ;;  %5831 = vmatprep.subr.bf16.mxu1 %v6311_v48 }
 0xcac   :  { %5807 = vmatpush1.bf16.msra.mxu0 %v7026_v60  ;;  %5833 = vmatpush3.bf16.msra.mxu1 %v7062_v49 }
 0xcad   :  { %5809 = vmatprep.subr.bf16.mxu0 %v7030_v42  ;;  %5834 = vmatprep.subr.bf16.mxu1 %v6311_v48 }
 0xcb0   :  { %5811 = vmatpush1.bf16.msra.mxu0 %v7032_v8  ;;  %5836 = vmatpush3.bf16.msra.mxu1 %v7066_v10 }
 0xcb1   :  { %5813 = vmatprep.subr.bf16.mxu0 %v7039_v21  ;;  %5837 = vmatprep.subr.bf16.mxu1 %v6311_v48 }
 0xcb4   :  { %5815 = vmatpush1.bf16.msra.mxu0 %v7042_v43  ;;  %5839 = vmatpush3.bf16.msra.mxu1 %v7070_v51 }
 0xcb5   :  { %5841 = vmatprep.subr.bf16.mxu0 %v6994_v62  ;;  %5872 = vmatprep.subr.bf16.mxu1 %v6311_v48 }
 0xd6a   :  { %v3252_v40 = vpop.f32.mrb[24].mxu0  ;;  %v3323_v33 = vpop.f32.mrb[40].mxu1 }
 0xd6b   :  { %v6000_v53 = vadd.f32 %v3252_v40, %v7143_v26  ;;  %v3254_v52 = vpop.f32.mrb[25].mxu0  ;;  %v4843_v3 = vpop.f32.mrb[41].mxu1  ;;  %v3341_v57 = vadd.f32 %v7154_v55, %v3323_v33 }
 0xd6c   :  { %v6001_v9 = vadd.f32 %v3254_v52, %v7147_v20 }
 0xd6d   :  { %v3997_v19 = vmul.f32 -1.442695, %v6000_v53 }
 0xd6e   :  { %v3998_v5 = vmul.f32 -1.442695, %v6001_v9 }
 0xd6f   :  { %6169 = vpow2.f32 %v3997_v19  ;;  %v2427_v19 = vadd.f32 %v7089_v7, %v7158_v63  ;;  %v3847_v7 = vld [vmem:[%s7509_s9] sm:$0xff] }
 0xd70   :  { %6171 = vpow2.f32 %v3998_v5 }
 0xd79   :  { %v6170_v39 = vpop.eup %6169 }
 0xd7a   :  { %v3331_v59 = vadd.f32 1.0, %v6170_v39  ;;  %v6172_v34 = vpop.eup %6171 }
 0xd7b   :  { %v3338_v58 = vadd.f32 1.0, %v6172_v34 }
 0xd7c   :  { %6173 = vrcp.f32 %v3331_v59 }
 0xd7d   :  { %6175 = vrcp.f32 %v3338_v58 }
 0xd86   :  { %v6174_v50 = vpop.eup %6173 }
 0xd87   :  { %v3342_v24 = vmul.f32 %v6174_v50, %v3341_v57  ;;  %v6176_v4 = vpop.eup %6175 }
 0xd88   :  { %v3345_v36 = vsub.f32 1.0, %v6176_v4  ;;  %v3347_v28 = vmul.f32 %v6176_v4, %v7298_v31  ;;  %v3851_v4 = vld [vmem:[%s7509_s9 + $0x20] sm:$0xff] }
 0xd89   :  { %v3343_v35 = vadd.f32 %v3342_v24, %v2422_v6  ;;  %v3849_v24 = vld [vmem:[%s7509_s9 + $0x10] sm:$0xff] }
 0xd8b   :  { %6177 = vtanh.f32 %v3343_v35 }
 0xd95   :  { %v6178_v37 = vpop.eup %6177 }
 0xd96   :  { %v3346_v2 = vmul.f32 %v6178_v37, %v3345_v36  ;;  %v3852_v36 = vld [vmem:[%s7509_s9 + $0x28] sm:$0xff] }
 0xd97   :  { %v5959_v37 = vpack.c.bf16 %v3852_v36, %v3851_v4 }
 0xd98   :  { %v7343_v1 = vadd.f32 %v3347_v28, %v3346_v2  ;;  %v3853_v2 = vld [vmem:[%s7509_s9 + $0x30] sm:$0xff]  ;;  %v3854_v28 = vld [vmem:[%s7509_s9 + $0x38] sm:$0xff] }
 0xd9a   :  { %3417 = vmatmul.mubr.f32.vlgmr.msra.gmra.mrb[26].mxu0 %v7343_v1  ;;  %4877 = vmatmul.mubr.f32.vlgmr.msra.gmra.mrb[42].mxu1 %v7343_v1 }
 0xd9b   :  { %5843 = vmatpush1.bf16.msra.mxu0 %v6996_v13  ;;  %5874 = vmatpush3.bf16.msra.mxu1 %v7034_v14 }
 0xd9c   :  { %5845 = vmatprep.subr.bf16.mxu0 %v7000_v47  ;;  %5875 = vmatprep.subr.bf16.mxu1 %v6311_v48 }
 0xd9d   :  { %3582 = vmatprep.mubr.f32.mxu0 %v6310_v0  ;;  %4911 = vmatprep.mubr.msk.f32.mxu1 %vm6312_vm1, %v6310_v0 }
 0xd9f   :  { %5847 = vmatpush1.bf16.msra.mxu0 %v7002_v11  ;;  %5877 = vmatpush3.bf16.msra.mxu1 %v7045_v44 }
 0xda0   :  { %5849 = vmatprep.subr.bf16.mxu0 %v7006_v12  ;;  %5878 = vmatprep.subr.bf16.mxu1 %v6311_v48 }
 0xda3   :  { %5851 = vmatpush1.bf16.msra.mxu0 %v7008_v15  ;;  %5880 = vmatpush3.bf16.msra.mxu1 %v7051_v61 }
 0xda4   :  { %5853 = vmatprep.subr.bf16.mxu0 %v7012_v56  ;;  %5881 = vmatprep.subr.bf16.mxu1 %v6311_v48 }
 0xda7   :  { %5855 = vmatpush1.bf16.msra.mxu0 %v7014_v29  ;;  %5883 = vmatpush3.bf16.msra.mxu1 %v7054_v25 }
 0xda8   :  { %5857 = vmatprep.subr.bf16.mxu0 %v7018_v18  ;;  %5884 = vmatprep.subr.bf16.mxu1 %v6311_v48 }
 0xdab   :  { %5859 = vmatpush1.bf16.msra.mxu0 %v7020_v41  ;;  %5886 = vmatpush3.bf16.msra.mxu1 %v7058_v17 }
 0xdac   :  { %5861 = vmatprep.subr.bf16.mxu0 %v7024_v22  ;;  %5887 = vmatprep.subr.bf16.mxu1 %v6311_v48 }
 0xdaf   :  { %5863 = vmatpush1.bf16.msra.mxu0 %v7026_v60  ;;  %5889 = vmatpush3.bf16.msra.mxu1 %v7062_v49 }
 0xdb0   :  { %5865 = vmatprep.subr.bf16.mxu0 %v7030_v42  ;;  %5890 = vmatprep.subr.bf16.mxu1 %v6311_v48 }
 0xdb3   :  { %5867 = vmatpush1.bf16.msra.mxu0 %v7032_v8  ;;  %5892 = vmatpush3.bf16.msra.mxu1 %v7066_v10 }
 0xdb4   :  { %5869 = vmatprep.subr.bf16.mxu0 %v7039_v21  ;;  %5893 = vmatprep.subr.bf16.mxu1 %v6311_v48 }
 0xdb7   :  { %5871 = vmatpush1.bf16.msra.mxu0 %v7042_v43  ;;  %5895 = vmatpush3.bf16.msra.mxu1 %v7070_v51 }
 0xdb8   :  { %5897 = vmatprep.subr.bf16.mxu0 %v6994_v62  ;;  %5928 = vmatprep.subr.bf16.mxu1 %v6311_v48 }
 0xe6d   :  { %v3418_v54 = vpop.f32.mrb[26].mxu0  ;;  %v3489_v38 = vpop.f32.mrb[42].mxu1 }
 0xe6e   :  { %v6002_v27 = vadd.f32 %v3418_v54, %v7143_v26  ;;  %v3420_v46 = vpop.f32.mrb[27].mxu0  ;;  %v4878_v30 = vpop.f32.mrb[43].mxu1  ;;  %v3507_v62 = vadd.f32 %v7154_v55, %v3489_v38  ;;  %v3855_v54 = vld [vmem:[%s7509_s9 + $0x40] sm:$0xff]  ;;  %v3856_v38 = vld [vmem:[%s7509_s9 + $0x48] sm:$0xff] }
 0xe6f   :  { %v6003_v16 = vadd.f32 %v3420_v46, %v7147_v20  ;;  %v3857_v46 = vld [vmem:[%s7509_s9 + $0x50] sm:$0xff]  ;;  %v3858_v30 = vld [vmem:[%s7509_s9 + $0x58] sm:$0xff] }
 0xe70   :  { %v3999_v32 = vmul.f32 -1.442695, %v6002_v27  ;;  %v5965_v27 = vpack.c.bf16 %v3856_v38, %v3855_v54 }
 0xe71   :  { %v4000_v31 = vmul.f32 -1.442695, %v6003_v16  ;;  %v3859_v16 = vld [vmem:[%s7509_s9 + $0x60] sm:$0xff] }
 0xe72   :  { %6179 = vpow2.f32 %v3999_v32  ;;  %v5968_v32 = vpack.c.bf16 %v3858_v30, %v3857_v46 }
 0xe73   :  { %6181 = vpow2.f32 %v4000_v31  ;;  %v3860_v31 = vld [vmem:[%s7509_s9 + $0x68] sm:$0xff] }
 0xe7c   :  { %v6180_v40 = vpop.eup %6179 }
 0xe7d   :  { %v3497_v33 = vadd.f32 1.0, %v6180_v40  ;;  %v6182_v53 = vpop.eup %6181  ;;  %v5971_v40 = vpack.c.bf16 %v3860_v31, %v3859_v16 }
 0xe7e   :  { %v3504_v52 = vadd.f32 1.0, %v6182_v53  ;;  %v3862_v53 = vld [vmem:[%s7509_s9 + $0x78] sm:$0xff] }
 0xe7f   :  { %6183 = vrcp.f32 %v3497_v33  ;;  %v3861_v33 = vld [vmem:[%s7509_s9 + $0x70] sm:$0xff] }
 0xe80   :  { %6185 = vrcp.f32 %v3504_v52  ;;  %v5974_v52 = vpack.c.bf16 %v3862_v53, %v3861_v33 }
 0xe89   :  { %v6184_v3 = vpop.eup %6183 }
 0xe8a   :  { %v3508_v9 = vmul.f32 %v6184_v3, %v3507_v62  ;;  %v6186_v39 = vpop.eup %6185 }
 0xe8b   :  { %v3511_v59 = vsub.f32 1.0, %v6186_v39  ;;  %v3513_v57 = vmul.f32 %v6186_v39, %v7343_v1  ;;  %v5962_v1 = vpack.c.bf16 %v3854_v28, %v3853_v2 }
 0xe8c   :  { %v3509_v5 = vadd.f32 %v3508_v9, %v2427_v19 }
 0xe8e   :  { %6187 = vtanh.f32 %v3509_v5 }
 0xe98   :  { %v6188_v34 = vpop.eup %6187 }
 0xe99   :  { %v3512_v58 = vmul.f32 %v6188_v34, %v3511_v59 }
 0xe9b   :  { %v3514_v50 = vadd.f32 %v3513_v57, %v3512_v58 }
 0xe9d   :  { %3583 = vmatmul.mubr.f32.vlgmr.msra.gmra.mrb[28].mxu0 %v3514_v50  ;;  %4912 = vmatmul.mubr.f32.vlgmr.msra.gmra.mrb[44].mxu1 %v3514_v50 }
 0xe9e   :  { %5899 = vmatpush1.bf16.msra.mxu0 %v6996_v13  ;;  %5930 = vmatpush3.bf16.msra.mxu1 %v7034_v14 }
 0xe9f   :  { %5901 = vmatprep.subr.bf16.mxu0 %v7000_v47  ;;  %5931 = vmatprep.subr.bf16.mxu1 %v6311_v48 }
 0xea0   :  { %3748 = vmatprep.mubr.f32.mxu0 %v6310_v0  ;;  %4946 = vmatprep.mubr.msk.f32.mxu1 %vm6312_vm1, %v6310_v0 }
 0xea2   :  { %5903 = vmatpush1.bf16.msra.mxu0 %v7002_v11  ;;  %5933 = vmatpush3.bf16.msra.mxu1 %v7045_v44 }
 0xea3   :  { %5905 = vmatprep.subr.bf16.mxu0 %v7006_v12  ;;  %5934 = vmatprep.subr.bf16.mxu1 %v6311_v48 }
 0xea6   :  { %5907 = vmatpush1.bf16.msra.mxu0 %v7008_v15  ;;  %5936 = vmatpush3.bf16.msra.mxu1 %v7051_v61 }
 0xea7   :  { %5909 = vmatprep.subr.bf16.mxu0 %v7012_v56  ;;  %5937 = vmatprep.subr.bf16.mxu1 %v6311_v48 }
 0xeaa   :  { %5911 = vmatpush1.bf16.msra.mxu0 %v7014_v29  ;;  %5939 = vmatpush3.bf16.msra.mxu1 %v7054_v25 }
 0xeab   :  { %5913 = vmatprep.subr.bf16.mxu0 %v7018_v18  ;;  %5940 = vmatprep.subr.bf16.mxu1 %v6311_v48 }
 0xeae   :  { %5915 = vmatpush1.bf16.msra.mxu0 %v7020_v41  ;;  %5942 = vmatpush3.bf16.msra.mxu1 %v7058_v17 }
 0xeaf   :  { %5917 = vmatprep.subr.bf16.mxu0 %v7024_v22  ;;  %5943 = vmatprep.subr.bf16.mxu1 %v6311_v48 }
 0xeb2   :  { %5919 = vmatpush1.bf16.msra.mxu0 %v7026_v60  ;;  %5945 = vmatpush3.bf16.msra.mxu1 %v7062_v49 }
 0xeb3   :  { %5921 = vmatprep.subr.bf16.mxu0 %v7030_v42  ;;  %5946 = vmatprep.subr.bf16.mxu1 %v6311_v48 }
 0xeb6   :  { %5923 = vmatpush1.bf16.msra.mxu0 %v7032_v8  ;;  %5948 = vmatpush3.bf16.msra.mxu1 %v7066_v10 }
 0xeb7   :  { %5925 = vmatprep.subr.bf16.mxu0 %v7039_v21  ;;  %5949 = vmatprep.subr.bf16.mxu1 %v6311_v48  ;;  %v2432_v21 = vadd.f32 %v7139_v45, %v7158_v63  ;;  %v3848_v45 = vld [vmem:[%s7509_s9 + $0x8] sm:$0xff] }
 0xeb8   :  { %v5953_v6 = vpack.c.bf16 %v3848_v45, %v3847_v7 }
 0xeba   :  { %5927 = vmatpush1.bf16.msra.mxu0 %v7042_v43  ;;  %5951 = vmatpush3.bf16.msra.mxu1 %v7070_v51 }
 0xebb   :  { %5952 = vmatprep.subr.bf16.mxu0 %v6311_v48 }
 0xf70   :  { %v3584_v13 = vpop.f32.mrb[28].mxu0  ;;  %v3655_v47 = vpop.f32.mrb[44].mxu1 }
 0xf71   :  { %v6004_v11 = vadd.f32 %v3584_v13, %v7143_v26  ;;  %v3586_v12 = vpop.f32.mrb[29].mxu0  ;;  %v4913_v15 = vpop.f32.mrb[45].mxu1  ;;  %v3673_v8 = vadd.f32 %v7154_v55, %v3655_v47 }
 0xf72   :  { %v6005_v29 = vadd.f32 %v3586_v12, %v7147_v20 }
 0xf73   :  { %v4001_v56 = vmul.f32 -1.442695, %v6004_v11  ;;  %v2437_v11 = vadd.f32 %v7137_v23, %v7158_v63 }
 0xf74   :  { %v4002_v18 = vmul.f32 -1.442695, %v6005_v29 }
 0xf75   :  { %6189 = vpow2.f32 %v4001_v56 }
 0xf76   :  { %6191 = vpow2.f32 %v4002_v18 }
 0xf7f   :  { %v6190_v41 = vpop.eup %6189 }
 0xf80   :  { %v3663_v22 = vadd.f32 1.0, %v6190_v41  ;;  %v6192_v60 = vpop.eup %6191 }
 0xf81   :  { %v3670_v42 = vadd.f32 1.0, %v6192_v60 }
 0xf82   :  { %6193 = vrcp.f32 %v3663_v22 }
 0xf83   :  { %6195 = vrcp.f32 %v3670_v42 }
 0xf8c   :  { %v6194_v14 = vpop.eup %6193 }
 0xf8d   :  { %v3674_v43 = vmul.f32 %v6194_v14, %v3673_v8  ;;  %v6196_v61 = vpop.eup %6195 }
 0xf8e   :  { %v3677_v25 = vsub.f32 1.0, %v6196_v61  ;;  %v3679_v10 = vmul.f32 %v6196_v61, %v3514_v50 }
 0xf8f   :  { %v3675_v44 = vadd.f32 %v3674_v43, %v2432_v21 }
 0xf91   :  { %6197 = vtanh.f32 %v3675_v44 }
 0xf9b   :  { %v6198_v17 = vpop.eup %6197 }
 0xf9c   :  { %v3678_v49 = vmul.f32 %v6198_v17, %v3677_v25 }
 0xf9e   :  { %v7427_v51 = vadd.f32 %v3679_v10, %v3678_v49 }
 0xfa0   :  { %3749 = vmatmul.mubr.f32.vlgmr.msra.gmra.mrb[30].mxu0 %v7427_v51  ;;  %4947 = vmatmul.mubr.f32.vlgmr.msra.gmra.mrb[46].mxu1 %v7427_v51 }
 0xfa1   :  { %4981 = vmatprep.mubr.msk.f32.mxu0 %vm6312_vm1, %v6310_v0  ;;  %5954 = vmatpush3.bf16.msra.mxu0 %v5953_v6  ;;  %v3850_v0 = vld [vmem:[%s7509_s9 + $0x18] sm:$0xff] }
 0xfa2   :  { %5955 = vmatprep.subr.bf16.mxu0 %v6311_v48  ;;  %v5956_v35 = vpack.c.bf16 %v3850_v0, %v3849_v24 }
 0xfa5   :  { %5957 = vmatpush3.bf16.msra.mxu0 %v5956_v35 }
 0xfa6   :  { %5958 = vmatprep.subr.bf16.mxu0 %v6311_v48 }
 0xfa9   :  { %5960 = vmatpush3.bf16.msra.mxu0 %v5959_v37 }
 0xfaa   :  { %5961 = vmatprep.subr.bf16.mxu0 %v6311_v48 }
 0xfad   :  { %5963 = vmatpush3.bf16.msra.mxu0 %v5962_v1 }
 0xfae   :  { %5964 = vmatprep.subr.bf16.mxu0 %v6311_v48 }
 0xfb1   :  { %5966 = vmatpush3.bf16.msra.mxu0 %v5965_v27 }
 0xfb2   :  { %5967 = vmatprep.subr.bf16.mxu0 %v6311_v48 }
 0xfb5   :  { %5969 = vmatpush3.bf16.msra.mxu0 %v5968_v32 }
 0xfb6   :  { %5970 = vmatprep.subr.bf16.mxu0 %v6311_v48 }
 0xfb9   :  { %5972 = vmatpush3.bf16.msra.mxu0 %v5971_v40 }
 0xfba   :  { %5973 = vmatprep.subr.bf16.mxu0 %v6311_v48 }
 0xfbd   :  { %5975 = vmatpush3.bf16.msra.mxu0 %v5974_v52 }
0x1073   :  { %v3750_v62 = vpop.f32.mrb[30].mxu0  ;;  %v3821_v3 = vpop.f32.mrb[46].mxu1 }
0x1074   :  { %v6006_v19 = vadd.f32 %v3750_v62, %v7143_v26  ;;  %v3752_v9 = vpop.f32.mrb[31].mxu0  ;;  %v4948_v5 = vpop.f32.mrb[47].mxu1  ;;  %v3839_v48 = vadd.f32 %v7154_v55, %v3821_v3  ;;  %v4005_v55 = vld [vmem:[%s7510_s10] ss:$0 sm:$0xff] }
0x1075   :  { %v6007_v59 = vadd.f32 %v3752_v9, %v7147_v20 }
0x1076   :  { %v4003_v39 = vmul.f32 -1.442695, %v6006_v19 }
0x1077   :  { %v4004_v34 = vmul.f32 -1.442695, %v6007_v59 }
0x1078   :  { %6199 = vpow2.f32 %v4003_v39 }
0x1079   :  { %6201 = vpow2.f32 %v4004_v34 }
0x1082   :  { %v6200_v58 = vpop.eup %6199 }
0x1083   :  { %v3829_v57 = vadd.f32 1.0, %v6200_v58  ;;  %v6202_v50 = vpop.eup %6201 }
0x1084   :  { %v3836_v13 = vadd.f32 1.0, %v6202_v50 }
0x1085   :  { %6203 = vrcp.f32 %v3829_v57 }
0x1086   :  { %6205 = vrcp.f32 %v3836_v13 }
0x108f   :  { %v6204_v47 = vpop.eup %6203 }
0x1090   :  { %v3840_v26 = vmul.f32 %v6204_v47, %v3839_v48  ;;  %v6206_v15 = vpop.eup %6205 }
0x1091   :  { %v3843_v20 = vsub.f32 1.0, %v6206_v15  ;;  %v3845_v18 = vmul.f32 %v6206_v15, %v7427_v51 }
0x1092   :  { %v3841_v12 = vadd.f32 %v3840_v26, %v2437_v11 }
0x1094   :  { %6207 = vtanh.f32 %v3841_v12 }
0x109e   :  { %v6208_v56 = vpop.eup %6207 }
0x109f   :  { %v3844_v29 = vmul.f32 %v6208_v56, %v3843_v20 }
0x10a1   :  { %v3846_v41 = vadd.f32 %v3845_v18, %v3844_v29 }
0x10a3   :  { %4982 = vmatmul.mubr.f32.vlgmr.msra.gmra.mrb[32].mxu0 %v3846_v41 }
0x1176   :  { %v3936_v22 = vpop.f32.mrb[32].mxu0 }
0x1177   :  { %v3937_v60 = vadd.f32 %v4005_v55, %v3936_v22  ;;  %v4983_v42 = vpop.f32.mrb[33].mxu0 }
0x1179   :  { %3940 = vst [vmem:[%s7511_s11] sm:$0xff] %v3937_v60 }
0x117a   :  { %3945 = vsyncpa [#allocation5], 1 }
0x117b   :  { %3946 = vsyncpa [#allocation7], 1 }
0x117c   :  { %3947 = vsyncpa [#allocation10], 1 }

</bundles_post_ra>
